<compile_context>
chip_gen: v7x
topology: tpu7x:2x2x1
jax: 0.10.0
libtpu: 0.0.40
codegen_flags: <defaults>
</compile_context>

<pallas_src>
import jax
import jax.numpy as jnp
from jax.experimental import pallas as pl
from jax.experimental.pallas import tpu as pltpu

H = 32        # hidden == embedding size
B = 2         # batch
S = 8         # number of context sentences (src)
SQ = 4        # number of question tokens (tgt)
NUM_HOP = 3
OUT_DIM = 2   # classification head (isRegression=False)

LANES = 128


def _round8(n):
    return (n + 7) // 8 * 8


# ------------------------- packed parameter slab layout ----------------------
# (name, shape) of every tensor stored in the slab; weights are pre-transposed
# to (in_features, out_features) so the kernel computes y = x @ W + b.
_PACK_ENTRIES = [
    ("wih_f", (H, 3 * H)), ("bih_f", (1, 3 * H)),
    ("whh_f", (H, 3 * H)), ("bhh_f", (1, 3 * H)),
    ("wih_b", (H, 3 * H)), ("bih_b", (1, 3 * H)),
    ("whh_b", (H, 3 * H)), ("bhh_b", (1, 3 * H)),
    ("q_wih", (H, 3 * H)), ("q_bih", (1, 3 * H)),
    ("q_whh", (H, 3 * H)), ("q_bhh", (1, 3 * H)),
    ("wr", (H, H)), ("bwr", (1, H)),
    ("ww", (H, H)), ("bw", (1, H)),
    ("u_cat", (H, 2 * H)), ("bu_cat", (1, 2 * H)),   # [Ur | U] fused
    ("w1", (4 * H, H)), ("b1", (1, H)),
    ("w2", (H, 1)), ("b2", (1, 1)),
    ("wnm", (3 * H, H)), ("bnm", (1, H)),
    ("wz", (2 * H, OUT_DIM)), ("bz", (1, OUT_DIM)),
]
_SHAPES = dict(_PACK_ENTRIES)
_OFF = {}
_row = 0
for _name, (_r, _c) in _PACK_ENTRIES:
    _OFF[_name] = _row
    _row += _round8(_r)          # 8-row alignment -> sublane-aligned reads
SLAB_ROWS = _round8(_row)


def pack_params(p):
    """Pack base params (plus fused derived weights) into one (rows,128) slab."""
    d = dict(p)
    d["u_cat"] = jnp.concatenate([p["ur"], p["uu"]], axis=1)
    d["bu_cat"] = jnp.concatenate([p["bur"], p["bu"]], axis=1)
    slab = jnp.zeros((SLAB_ROWS, LANES), jnp.float32)
    for name, (r, c) in _PACK_ENTRIES:
        arr = jnp.asarray(d[name], jnp.float32)
        assert arr.shape == (r, c), (name, arr.shape, (r, c))
        slab = slab.at[_OFF[name]:_OFF[name] + r, :c].set(arr)
    return slab


# ----------------------------------- kernel ----------------------------------
def dmn_kernel(src_ref, tgt_ref, slab_ref, out_ref):
    f32 = jnp.float32

    def ld(name):                               # point-of-use slab read
        off = _OFF[name]
        r, c = _SHAPES[name]
        return slab_ref[off:off + r, :c]

    def mm(a, b):
        return jnp.dot(a, b, preferred_element_type=f32)

    src_flat = src_ref[...]                     # (S*B, H)  rows = t*B + b
    tgt_flat = tgt_ref[...]                     # (SQ*B, H)

    # ---- batched (non-recurrent) GRU input projections: 3 matmuls total -----
    gi_f_all = mm(src_flat, ld("wih_f")) + ld("bih_f")    # (S*B, 3H)
    gi_b_all = mm(src_flat, ld("wih_b")) + ld("bih_b")    # (S*B, 3H)
    gi_q_all = mm(tgt_flat, ld("q_wih")) + ld("q_bih")    # (SQ*B, 3H)

    # recurrent weights loaded once; biases pre-broadcast once (not per step)
    whh_f = ld("whh_f"); bhh_f = jnp.broadcast_to(ld("bhh_f"), (B, 3 * H))
    whh_b = ld("whh_b"); bhh_b = jnp.broadcast_to(ld("bhh_b"), (B, 3 * H))
    q_whh = ld("q_whh"); q_bhh = jnp.broadcast_to(ld("q_bhh"), (B, 3 * H))

    def gru_step(gi, h, whh, bhh):
        gh = mm(h, whh) + bhh                              # (B, 3H)
        rz = jax.nn.sigmoid(gi[:, :2 * H] + gh[:, :2 * H])
        r = rz[:, :H]
        z = rz[:, H:]
        n = jnp.tanh(gi[:, 2 * H:] + r * gh[:, 2 * H:])
        return (1.0 - z) * n + z * h

    # ---- fwd / bwd / question recurrences, interleaved (independent chains) -
    h_f = jnp.zeros((B, H), f32)
    h_b = jnp.zeros((B, H), f32)
    h_q = jnp.zeros((B, H), f32)
    fwd = [None] * S
    bwd = [None] * S
    for t in range(max(S, SQ)):
        if t < S:
            h_f = gru_step(gi_f_all[t * B:(t + 1) * B, :], h_f, whh_f, bhh_f)
            fwd[t] = h_f
            tb = S - 1 - t
            h_b = gru_step(gi_b_all[tb * B:(tb + 1) * B, :], h_b, whh_b, bhh_b)
            bwd[tb] = h_b
        if t < SQ:
            h_q = gru_step(gi_q_all[t * B:(t + 1) * B, :], h_q, q_whh, q_bhh)
    question = h_q                                                   # (B, H)
    facts_flat = jnp.concatenate(
        [fwd[t] + bwd[t] for t in range(S)], axis=0)                 # (S*B, H)

    # ---- attention-GRU fact projections hoisted out of the hop loop ---------
    fr_all = mm(facts_flat, ld("wr")) + ld("bwr")                    # (S*B, H)
    fw_all = mm(facts_flat, ld("ww")) + ld("bw")                     # (S*B, H)

    # constant 0/1 matrices (hoisted): replicate (B,H)->(S*B,H) and scatter the
    # per-row attention scores (S*B,1) into (B,S) without any transpose.
    r_i = jax.lax.broadcasted_iota(jnp.int32, (S * B, B), 0)
    b_i = jax.lax.broadcasted_iota(jnp.int32, (S * B, B), 1)
    rep = ((r_i % B) == b_i).astype(f32)                             # (S*B, B)
    b_j = jax.lax.broadcasted_iota(jnp.int32, (B, S * B), 0)
    r_j = jax.lax.broadcasted_iota(jnp.int32, (B, S * B), 1)
    sel_b = ((r_j % B) == b_j).astype(f32)                           # (B, S*B)
    r_k = jax.lax.broadcasted_iota(jnp.int32, (S * B, S), 0)
    t_k = jax.lax.broadcasted_iota(jnp.int32, (S * B, S), 1)
    sel_t = ((r_k >= t_k * B) & (r_k < t_k * B + B)).astype(f32)     # (S*B, S)

    q_rep = mm(rep, question)                                        # (S*B, H)

    w1 = ld("w1"); b1 = ld("b1")
    w2 = ld("w2"); b2 = ld("b2")
    u_cat = ld("u_cat")
    bu_cat = jnp.broadcast_to(ld("bu_cat"), (B, 2 * H))
    wnm = ld("wnm"); bnm = ld("bnm")

    # ---- episodic memory: NUM_HOP hops --------------------------------------
    memory = question
    for _ in range(NUM_HOP):
        m_rep = mm(rep, memory)                                      # (S*B, H)
        z = jnp.concatenate(
            [facts_flat * q_rep, facts_flat * m_rep,
             jnp.abs(facts_flat - q_rep), jnp.abs(facts_flat - m_rep)],
            axis=1)                                                  # (S*B, 4H)
        g1 = jnp.tanh(mm(z, w1) + b1)                                # (S*B, H)
        red = mm(g1, w2) + b2                                        # (S*B, 1)
        logits = mm(sel_b, red * sel_t)                              # (B, S)

        mx = jnp.max(logits, axis=-1, keepdims=True)
        e = jnp.exp(logits - mx)
        denom = jnp.sum(e, axis=-1, keepdims=True)
        probs = e * pl.reciprocal(denom, approx=True)                # (B, S)

        # attention GRU over sentences (inherently sequential)
        c = jnp.zeros((B, H), f32)
        for t in range(S):
            guc = mm(c, u_cat) + bu_cat                              # (B, 2H)
            r = jax.nn.sigmoid(fr_all[t * B:(t + 1) * B, :] + guc[:, :H])
            h_til = jnp.tanh(fw_all[t * B:(t + 1) * B, :] + r * guc[:, H:])
            g = probs[:, t:t + 1]                                    # (B, 1)
            c = g * h_til + (1.0 - g) * c

        concat = jnp.concatenate([memory, c, question], axis=1)      # (B, 3H)
        memory = jax.nn.relu(mm(concat, wnm) + bnm)                  # (B, H)

    # ---- answer module -------------------------------------------------------
    final = jnp.concatenate([memory, question], axis=1)              # (B, 2H)
    out = mm(final, ld("wz")) + ld("bz")                             # (B, OUT)
    out_ref[...] = out.astype(out_ref.dtype)


# ---------------------------------- wrapper ----------------------------------
def dmn_plus_forward(src, tgt, slab):
    """src: (B, S, H), tgt: (B, SQ, H) batch-first; slab: packed params."""
    # time-major + flattened so in-kernel batched projections are layout no-ops
    src_tm = jnp.transpose(src, (1, 0, 2)).reshape(S * B, H).astype(jnp.float32)
    tgt_tm = jnp.transpose(tgt, (1, 0, 2)).reshape(SQ * B, H).astype(jnp.float32)
    bytes_accessed = 4 * (SLAB_ROWS * LANES + (S + SQ) * B * H + B * OUT_DIM)
    return pl.pallas_call(
        dmn_kernel,
        out_shape=jax.ShapeDtypeStruct((B, OUT_DIM), jnp.float32),
        in_specs=[pl.BlockSpec(memory_space=pltpu.MemorySpace.VMEM)] * 3,
        out_specs=pl.BlockSpec(memory_space=pltpu.MemorySpace.VMEM),
        cost_estimate=pl.CostEstimate(
            flops=2_000_000, transcendentals=10_000,
            bytes_accessed=bytes_accessed),
    )(src_tm, tgt_tm, slab)


# --------------------------- deterministic parameters ------------------------
def init_params(key):
    keys = iter(jax.random.split(key, 64))

    def xavier(shape):
        fan_in, fan_out = shape
        std = (2.0 / (fan_in + fan_out)) ** 0.5
        return std * jax.random.normal(next(keys), shape, jnp.float32)

    def lin(in_f, out_f):
        w = xavier((in_f, out_f))
        b = 0.1 * jax.random.normal(next(keys), (1, out_f), jnp.float32)
        return w, b

    p = {}
    p["wih_f"], p["bih_f"] = lin(H, 3 * H)
    p["whh_f"], p["bhh_f"] = lin(H, 3 * H)
    p["wih_b"], p["bih_b"] = lin(H, 3 * H)
    p["whh_b"], p["bhh_b"] = lin(H, 3 * H)
    p["q_wih"], p["q_bih"] = lin(H, 3 * H)
    p["q_whh"], p["q_bhh"] = lin(H, 3 * H)
    p["wr"], p["bwr"] = lin(H, H)
    p["ur"], p["bur"] = lin(H, H)
    p["ww"], p["bw"] = lin(H, H)
    p["uu"], p["bu"] = lin(H, H)
    p["w1"], p["b1"] = lin(4 * H, H)
    p["w2"], p["b2"] = lin(H, 1)
    p["wnm"], p["bnm"] = lin(3 * H, H)
    p["wz"], p["bz"] = lin(2 * H, OUT_DIM)
    return p


# ------------------------------ pure-JAX reference ---------------------------
def dmn_reference(src, tgt, p):
    def lin(x, w, b):
        return x @ w + b

    def gru_cell(x, h, wih, whh, bih, bhh):
        gi = lin(x, wih, bih)
        gh = lin(h, whh, bhh)
        r = jax.nn.sigmoid(gi[:, :H] + gh[:, :H])
        z = jax.nn.sigmoid(gi[:, H:2 * H] + gh[:, H:2 * H])
        n = jnp.tanh(gi[:, 2 * H:] + r * gh[:, 2 * H:])
        return (1.0 - z) * n + z * h

    src = src.astype(jnp.float32)
    tgt = tgt.astype(jnp.float32)

    h = jnp.zeros((B, H), jnp.float32)
    fwd = []
    for t in range(S):
        h = gru_cell(src[:, t], h, p["wih_f"], p["whh_f"], p["bih_f"], p["bhh_f"])
        fwd.append(h)
    h = jnp.zeros((B, H), jnp.float32)
    bwd = [None] * S
    for t in reversed(range(S)):
        h = gru_cell(src[:, t], h, p["wih_b"], p["whh_b"], p["bih_b"], p["bhh_b"])
        bwd[t] = h
    facts = jnp.stack([fwd[t] + bwd[t] for t in range(S)], axis=1)   # (B,S,H)

    hq = jnp.zeros((B, H), jnp.float32)
    for t in range(SQ):
        hq = gru_cell(tgt[:, t], hq, p["q_wih"], p["q_whh"], p["q_bih"], p["q_bhh"])
    question = hq

    memory = question
    for _ in range(NUM_HOP):
        q_e = question[:, None, :]
        m_e = memory[:, None, :]
        z = jnp.concatenate([facts * q_e, facts * m_e,
                             jnp.abs(facts - q_e), jnp.abs(facts - m_e)],
                            axis=2).reshape(B * S, 4 * H)
        g1 = jnp.tanh(lin(z, p["w1"], p["b1"]))
        gl = lin(g1, p["w2"], p["b2"]).reshape(B, S)
        probs = jax.nn.softmax(gl, axis=1)
        c = jnp.zeros((B, H), jnp.float32)
        for t in range(S):
            f = facts[:, t]
            r = jax.nn.sigmoid(lin(f, p["wr"], p["bwr"]) + lin(c, p["ur"], p["bur"]))
            h_til = jnp.tanh(lin(f, p["ww"], p["bw"]) + r * lin(c, p["uu"], p["bu"]))
            g = probs[:, t:t + 1]
            c = g * h_til + (1.0 - g) * c
        concat = jnp.concatenate([memory, c, question], axis=1)
        memory = jax.nn.relu(lin(concat, p["wnm"], p["bnm"]))

    return lin(jnp.concatenate([memory, question], axis=1), p["wz"], p["bz"])


# ------------------------------------ main -----------------------------------
if __name__ == "__main__":
    key = jax.random.PRNGKey(0)
    k_src, k_tgt, k_par = jax.random.split(key, 3)
    src = jax.random.normal(k_src, (B, S, H), jnp.float32)
    tgt = jax.random.normal(k_tgt, (B, SQ, H), jnp.float32)
    params = init_params(k_par)
    slab = jax.block_until_ready(pack_params(params))

    out = jax.block_until_ready(dmn_plus_forward(src, tgt, slab))

    ref = jax.block_until_ready(jax.jit(dmn_reference)(src, tgt, params))

    assert out.shape == (B, OUT_DIM)
    assert bool(jnp.all(jnp.isfinite(out)))
    assert bool(jnp.allclose(out, ref, rtol=2e-2, atol=2e-2)), (out, ref)
    print("KERNEL_OK")
</pallas_src>

<mosaic_0001>
module attributes {stable_mosaic.version = 11 : i64} {
  func.func @dmn_kernel(%arg0: memref<16x32xf32, #tpu.memory_space<vmem>>, %arg1: memref<8x32xf32, #tpu.memory_space<vmem>>, %arg2: memref<712x128xf32, #tpu.memory_space<vmem>>, %arg3: memref<2x2xf32, #tpu.memory_space<vmem>>) attributes {dimension_semantics = [], scalar_prefetch = 0 : i64, scratch_operands = 0 : i64, tpu.core_type = #tpu.core_type<tc>} {
    %c0 = arith.constant 0 : index
    %c0_0 = arith.constant 0 : index
    %0 = vector.load %arg0[%c0, %c0_0] : memref<16x32xf32, #tpu.memory_space<vmem>>, vector<16x32xf32>
    %c0_1 = arith.constant 0 : index
    %c0_2 = arith.constant 0 : index
    %1 = vector.load %arg1[%c0_1, %c0_2] : memref<8x32xf32, #tpu.memory_space<vmem>>, vector<8x32xf32>
    %c0_3 = arith.constant 0 : index
    %c0_4 = arith.constant 0 : index
    %2 = vector.load %arg2[%c0_3, %c0_4] : memref<712x128xf32, #tpu.memory_space<vmem>>, vector<32x96xf32>
    %cst = arith.constant dense<0.000000e+00> : vector<16x96xf32>
    %3 = tpu.matmul %0, %2, %cst {dimension_numbers = #tpu.dot_dimension_numbers<[1], [0], [0], [1], [0, 0, 1, 1], [], []>} : vector<16x32xf32>, vector<32x96xf32>, vector<16x96xf32> -> vector<16x96xf32>
    %c32 = arith.constant 32 : index
    %c0_5 = arith.constant 0 : index
    %4 = vector.load %arg2[%c32, %c0_5] : memref<712x128xf32, #tpu.memory_space<vmem>>, vector<1x96xf32>
    %5 = vector.broadcast %4 : vector<1x96xf32> to vector<16x96xf32>
    %6 = arith.addf %3, %5 : vector<16x96xf32>
    %c80 = arith.constant 80 : index
    %c0_6 = arith.constant 0 : index
    %7 = vector.load %arg2[%c80, %c0_6] : memref<712x128xf32, #tpu.memory_space<vmem>>, vector<32x96xf32>
    %cst_7 = arith.constant dense<0.000000e+00> : vector<16x96xf32>
    %8 = tpu.matmul %0, %7, %cst_7 {dimension_numbers = #tpu.dot_dimension_numbers<[1], [0], [0], [1], [0, 0, 1, 1], [], []>} : vector<16x32xf32>, vector<32x96xf32>, vector<16x96xf32> -> vector<16x96xf32>
    %c112 = arith.constant 112 : index
    %c0_8 = arith.constant 0 : index
    %9 = vector.load %arg2[%c112, %c0_8] : memref<712x128xf32, #tpu.memory_space<vmem>>, vector<1x96xf32>
    %10 = vector.broadcast %9 : vector<1x96xf32> to vector<16x96xf32>
    %11 = arith.addf %8, %10 : vector<16x96xf32>
    %c160 = arith.constant 160 : index
    %c0_9 = arith.constant 0 : index
    %12 = vector.load %arg2[%c160, %c0_9] : memref<712x128xf32, #tpu.memory_space<vmem>>, vector<32x96xf32>
    %cst_10 = arith.constant dense<0.000000e+00> : vector<8x96xf32>
    %13 = tpu.matmul %1, %12, %cst_10 {dimension_numbers = #tpu.dot_dimension_numbers<[1], [0], [0], [1], [0, 0, 1, 1], [], []>} : vector<8x32xf32>, vector<32x96xf32>, vector<8x96xf32> -> vector<8x96xf32>
    %c192 = arith.constant 192 : index
    %c0_11 = arith.constant 0 : index
    %14 = vector.load %arg2[%c192, %c0_11] : memref<712x128xf32, #tpu.memory_space<vmem>>, vector<1x96xf32>
    %15 = vector.broadcast %14 : vector<1x96xf32> to vector<8x96xf32>
    %16 = arith.addf %13, %15 : vector<8x96xf32>
    %c40 = arith.constant 40 : index
    %c0_12 = arith.constant 0 : index
    %17 = vector.load %arg2[%c40, %c0_12] : memref<712x128xf32, #tpu.memory_space<vmem>>, vector<32x96xf32>
    %c72 = arith.constant 72 : index
    %c0_13 = arith.constant 0 : index
    %18 = vector.load %arg2[%c72, %c0_13] : memref<712x128xf32, #tpu.memory_space<vmem>>, vector<1x96xf32>
    %19 = vector.shape_cast %18 : vector<1x96xf32> to vector<1x96xf32>
    %20 = vector.broadcast %19 : vector<1x96xf32> to vector<2x96xf32>
    %c120 = arith.constant 120 : index
    %c0_14 = arith.constant 0 : index
    %21 = vector.load %arg2[%c120, %c0_14] : memref<712x128xf32, #tpu.memory_space<vmem>>, vector<32x96xf32>
    %c152 = arith.constant 152 : index
    %c0_15 = arith.constant 0 : index
    %22 = vector.load %arg2[%c152, %c0_15] : memref<712x128xf32, #tpu.memory_space<vmem>>, vector<1x96xf32>
    %23 = vector.shape_cast %22 : vector<1x96xf32> to vector<1x96xf32>
    %24 = vector.broadcast %23 : vector<1x96xf32> to vector<2x96xf32>
    %c200 = arith.constant 200 : index
    %c0_16 = arith.constant 0 : index
    %25 = vector.load %arg2[%c200, %c0_16] : memref<712x128xf32, #tpu.memory_space<vmem>>, vector<32x96xf32>
    %c232 = arith.constant 232 : index
    %c0_17 = arith.constant 0 : index
    %26 = vector.load %arg2[%c232, %c0_17] : memref<712x128xf32, #tpu.memory_space<vmem>>, vector<1x96xf32>
    %27 = vector.shape_cast %26 : vector<1x96xf32> to vector<1x96xf32>
    %28 = vector.broadcast %27 : vector<1x96xf32> to vector<2x96xf32>
    %cst_18 = arith.constant 0.000000e+00 : f32
    %29 = vector.broadcast %cst_18 : f32 to vector<2x32xf32>
    %cst_19 = arith.constant 0.000000e+00 : f32
    %30 = vector.broadcast %cst_19 : f32 to vector<2x32xf32>
    %cst_20 = arith.constant 0.000000e+00 : f32
    %31 = vector.broadcast %cst_20 : f32 to vector<2x32xf32>
    %32 = vector.extract_strided_slice %6 {offsets = [0, 0], sizes = [2, 96], strides = [1, 1]} : vector<16x96xf32> to vector<2x96xf32>
    %cst_21 = arith.constant dense<0.000000e+00> : vector<2x96xf32>
    %33 = tpu.matmul %29, %17, %cst_21 {dimension_numbers = #tpu.dot_dimension_numbers<[1], [0], [0], [1], [0, 0, 1, 1], [], []>} : vector<2x32xf32>, vector<32x96xf32>, vector<2x96xf32> -> vector<2x96xf32>
    %34 = arith.addf %33, %20 : vector<2x96xf32>
    %35 = vector.extract_strided_slice %32 {offsets = [0, 0], sizes = [2, 64], strides = [1, 1]} : vector<2x96xf32> to vector<2x64xf32>
    %36 = vector.extract_strided_slice %34 {offsets = [0, 0], sizes = [2, 64], strides = [1, 1]} : vector<2x96xf32> to vector<2x64xf32>
    %37 = arith.addf %35, %36 : vector<2x64xf32>
    %38 = arith.negf %37 : vector<2x64xf32>
    %39 = math.exp %38 : vector<2x64xf32>
    %cst_22 = arith.constant 1.000000e+00 : f32
    %40 = vector.broadcast %cst_22 : f32 to vector<2x64xf32>
    %41 = arith.addf %40, %39 : vector<2x64xf32>
    %42 = arith.divf %40, %41 : vector<2x64xf32>
    %43 = vector.extract_strided_slice %42 {offsets = [0, 0], sizes = [2, 32], strides = [1, 1]} : vector<2x64xf32> to vector<2x32xf32>
    %44 = vector.extract_strided_slice %42 {offsets = [0, 32], sizes = [2, 32], strides = [1, 1]} : vector<2x64xf32> to vector<2x32xf32>
    %45 = vector.extract_strided_slice %32 {offsets = [0, 64], sizes = [2, 32], strides = [1, 1]} : vector<2x96xf32> to vector<2x32xf32>
    %46 = vector.extract_strided_slice %34 {offsets = [0, 64], sizes = [2, 32], strides = [1, 1]} : vector<2x96xf32> to vector<2x32xf32>
    %47 = arith.mulf %43, %46 : vector<2x32xf32>
    %48 = arith.addf %45, %47 : vector<2x32xf32>
    %49 = math.tanh %48 : vector<2x32xf32>
    %cst_23 = arith.constant 1.000000e+00 : f32
    %50 = vector.broadcast %cst_23 : f32 to vector<2x32xf32>
    %51 = arith.subf %50, %44 : vector<2x32xf32>
    %52 = arith.mulf %51, %49 : vector<2x32xf32>
    %53 = arith.mulf %44, %29 : vector<2x32xf32>
    %54 = arith.addf %52, %53 : vector<2x32xf32>
    %55 = vector.extract_strided_slice %11 {offsets = [14, 0], sizes = [2, 96], strides = [1, 1]} : vector<16x96xf32> to vector<2x96xf32>
    %cst_24 = arith.constant dense<0.000000e+00> : vector<2x96xf32>
    %56 = tpu.matmul %30, %21, %cst_24 {dimension_numbers = #tpu.dot_dimension_numbers<[1], [0], [0], [1], [0, 0, 1, 1], [], []>} : vector<2x32xf32>, vector<32x96xf32>, vector<2x96xf32> -> vector<2x96xf32>
    %57 = arith.addf %56, %24 : vector<2x96xf32>
    %58 = vector.extract_strided_slice %55 {offsets = [0, 0], sizes = [2, 64], strides = [1, 1]} : vector<2x96xf32> to vector<2x64xf32>
    %59 = vector.extract_strided_slice %57 {offsets = [0, 0], sizes = [2, 64], strides = [1, 1]} : vector<2x96xf32> to vector<2x64xf32>
    %60 = arith.addf %58, %59 : vector<2x64xf32>
    %61 = arith.negf %60 : vector<2x64xf32>
    %62 = math.exp %61 : vector<2x64xf32>
    %cst_25 = arith.constant 1.000000e+00 : f32
    %63 = vector.broadcast %cst_25 : f32 to vector<2x64xf32>
    %64 = arith.addf %63, %62 : vector<2x64xf32>
    %65 = arith.divf %63, %64 : vector<2x64xf32>
    %66 = vector.extract_strided_slice %65 {offsets = [0, 0], sizes = [2, 32], strides = [1, 1]} : vector<2x64xf32> to vector<2x32xf32>
    %67 = vector.extract_strided_slice %65 {offsets = [0, 32], sizes = [2, 32], strides = [1, 1]} : vector<2x64xf32> to vector<2x32xf32>
    %68 = vector.extract_strided_slice %55 {offsets = [0, 64], sizes = [2, 32], strides = [1, 1]} : vector<2x96xf32> to vector<2x32xf32>
    %69 = vector.extract_strided_slice %57 {offsets = [0, 64], sizes = [2, 32], strides = [1, 1]} : vector<2x96xf32> to vector<2x32xf32>
    %70 = arith.mulf %66, %69 : vector<2x32xf32>
    %71 = arith.addf %68, %70 : vector<2x32xf32>
    %72 = math.tanh %71 : vector<2x32xf32>
    %cst_26 = arith.constant 1.000000e+00 : f32
    %73 = vector.broadcast %cst_26 : f32 to vector<2x32xf32>
    %74 = arith.subf %73, %67 : vector<2x32xf32>
    %75 = arith.mulf %74, %72 : vector<2x32xf32>
    %76 = arith.mulf %67, %30 : vector<2x32xf32>
    %77 = arith.addf %75, %76 : vector<2x32xf32>
    %78 = vector.extract_strided_slice %16 {offsets = [0, 0], sizes = [2, 96], strides = [1, 1]} : vector<8x96xf32> to vector<2x96xf32>
    %cst_27 = arith.constant dense<0.000000e+00> : vector<2x96xf32>
    %79 = tpu.matmul %31, %25, %cst_27 {dimension_numbers = #tpu.dot_dimension_numbers<[1], [0], [0], [1], [0, 0, 1, 1], [], []>} : vector<2x32xf32>, vector<32x96xf32>, vector<2x96xf32> -> vector<2x96xf32>
    %80 = arith.addf %79, %28 : vector<2x96xf32>
    %81 = vector.extract_strided_slice %78 {offsets = [0, 0], sizes = [2, 64], strides = [1, 1]} : vector<2x96xf32> to vector<2x64xf32>
    %82 = vector.extract_strided_slice %80 {offsets = [0, 0], sizes = [2, 64], strides = [1, 1]} : vector<2x96xf32> to vector<2x64xf32>
    %83 = arith.addf %81, %82 : vector<2x64xf32>
    %84 = arith.negf %83 : vector<2x64xf32>
    %85 = math.exp %84 : vector<2x64xf32>
    %cst_28 = arith.constant 1.000000e+00 : f32
    %86 = vector.broadcast %cst_28 : f32 to vector<2x64xf32>
    %87 = arith.addf %86, %85 : vector<2x64xf32>
    %88 = arith.divf %86, %87 : vector<2x64xf32>
    %89 = vector.extract_strided_slice %88 {offsets = [0, 0], sizes = [2, 32], strides = [1, 1]} : vector<2x64xf32> to vector<2x32xf32>
    %90 = vector.extract_strided_slice %88 {offsets = [0, 32], sizes = [2, 32], strides = [1, 1]} : vector<2x64xf32> to vector<2x32xf32>
    %91 = vector.extract_strided_slice %78 {offsets = [0, 64], sizes = [2, 32], strides = [1, 1]} : vector<2x96xf32> to vector<2x32xf32>
    %92 = vector.extract_strided_slice %80 {offsets = [0, 64], sizes = [2, 32], strides = [1, 1]} : vector<2x96xf32> to vector<2x32xf32>
    %93 = arith.mulf %89, %92 : vector<2x32xf32>
    %94 = arith.addf %91, %93 : vector<2x32xf32>
    %95 = math.tanh %94 : vector<2x32xf32>
    %cst_29 = arith.constant 1.000000e+00 : f32
    %96 = vector.broadcast %cst_29 : f32 to vector<2x32xf32>
    %97 = arith.subf %96, %90 : vector<2x32xf32>
    %98 = arith.mulf %97, %95 : vector<2x32xf32>
    %99 = arith.mulf %90, %31 : vector<2x32xf32>
    %100 = arith.addf %98, %99 : vector<2x32xf32>
    %101 = vector.extract_strided_slice %6 {offsets = [2, 0], sizes = [2, 96], strides = [1, 1]} : vector<16x96xf32> to vector<2x96xf32>
    %cst_30 = arith.constant dense<0.000000e+00> : vector<2x96xf32>
    %102 = tpu.matmul %54, %17, %cst_30 {dimension_numbers = #tpu.dot_dimension_numbers<[1], [0], [0], [1], [0, 0, 1, 1], [], []>} : vector<2x32xf32>, vector<32x96xf32>, vector<2x96xf32> -> vector<2x96xf32>
    %103 = arith.addf %102, %20 : vector<2x96xf32>
    %104 = vector.extract_strided_slice %101 {offsets = [0, 0], sizes = [2, 64], strides = [1, 1]} : vector<2x96xf32> to vector<2x64xf32>
    %105 = vector.extract_strided_slice %103 {offsets = [0, 0], sizes = [2, 64], strides = [1, 1]} : vector<2x96xf32> to vector<2x64xf32>
    %106 = arith.addf %104, %105 : vector<2x64xf32>
    %107 = arith.negf %106 : vector<2x64xf32>
    %108 = math.exp %107 : vector<2x64xf32>
    %cst_31 = arith.constant 1.000000e+00 : f32
    %109 = vector.broadcast %cst_31 : f32 to vector<2x64xf32>
    %110 = arith.addf %109, %108 : vector<2x64xf32>
    %111 = arith.divf %109, %110 : vector<2x64xf32>
    %112 = vector.extract_strided_slice %111 {offsets = [0, 0], sizes = [2, 32], strides = [1, 1]} : vector<2x64xf32> to vector<2x32xf32>
    %113 = vector.extract_strided_slice %111 {offsets = [0, 32], sizes = [2, 32], strides = [1, 1]} : vector<2x64xf32> to vector<2x32xf32>
    %114 = vector.extract_strided_slice %101 {offsets = [0, 64], sizes = [2, 32], strides = [1, 1]} : vector<2x96xf32> to vector<2x32xf32>
    %115 = vector.extract_strided_slice %103 {offsets = [0, 64], sizes = [2, 32], strides = [1, 1]} : vector<2x96xf32> to vector<2x32xf32>
    %116 = arith.mulf %112, %115 : vector<2x32xf32>
    %117 = arith.addf %114, %116 : vector<2x32xf32>
    %118 = math.tanh %117 : vector<2x32xf32>
    %cst_32 = arith.constant 1.000000e+00 : f32
    %119 = vector.broadcast %cst_32 : f32 to vector<2x32xf32>
    %120 = arith.subf %119, %113 : vector<2x32xf32>
    %121 = arith.mulf %120, %118 : vector<2x32xf32>
    %122 = arith.mulf %113, %54 : vector<2x32xf32>
    %123 = arith.addf %121, %122 : vector<2x32xf32>
    %124 = vector.extract_strided_slice %11 {offsets = [12, 0], sizes = [2, 96], strides = [1, 1]} : vector<16x96xf32> to vector<2x96xf32>
    %cst_33 = arith.constant dense<0.000000e+00> : vector<2x96xf32>
    %125 = tpu.matmul %77, %21, %cst_33 {dimension_numbers = #tpu.dot_dimension_numbers<[1], [0], [0], [1], [0, 0, 1, 1], [], []>} : vector<2x32xf32>, vector<32x96xf32>, vector<2x96xf32> -> vector<2x96xf32>
    %126 = arith.addf %125, %24 : vector<2x96xf32>
    %127 = vector.extract_strided_slice %124 {offsets = [0, 0], sizes = [2, 64], strides = [1, 1]} : vector<2x96xf32> to vector<2x64xf32>
    %128 = vector.extract_strided_slice %126 {offsets = [0, 0], sizes = [2, 64], strides = [1, 1]} : vector<2x96xf32> to vector<2x64xf32>
    %129 = arith.addf %127, %128 : vector<2x64xf32>
    %130 = arith.negf %129 : vector<2x64xf32>
    %131 = math.exp %130 : vector<2x64xf32>
    %cst_34 = arith.constant 1.000000e+00 : f32
    %132 = vector.broadcast %cst_34 : f32 to vector<2x64xf32>
    %133 = arith.addf %132, %131 : vector<2x64xf32>
    %134 = arith.divf %132, %133 : vector<2x64xf32>
    %135 = vector.extract_strided_slice %134 {offsets = [0, 0], sizes = [2, 32], strides = [1, 1]} : vector<2x64xf32> to vector<2x32xf32>
    %136 = vector.extract_strided_slice %134 {offsets = [0, 32], sizes = [2, 32], strides = [1, 1]} : vector<2x64xf32> to vector<2x32xf32>
    %137 = vector.extract_strided_slice %124 {offsets = [0, 64], sizes = [2, 32], strides = [1, 1]} : vector<2x96xf32> to vector<2x32xf32>
    %138 = vector.extract_strided_slice %126 {offsets = [0, 64], sizes = [2, 32], strides = [1, 1]} : vector<2x96xf32> to vector<2x32xf32>
    %139 = arith.mulf %135, %138 : vector<2x32xf32>
    %140 = arith.addf %137, %139 : vector<2x32xf32>
    %141 = math.tanh %140 : vector<2x32xf32>
    %cst_35 = arith.constant 1.000000e+00 : f32
    %142 = vector.broadcast %cst_35 : f32 to vector<2x32xf32>
    %143 = arith.subf %142, %136 : vector<2x32xf32>
    %144 = arith.mulf %143, %141 : vector<2x32xf32>
    %145 = arith.mulf %136, %77 : vector<2x32xf32>
    %146 = arith.addf %144, %145 : vector<2x32xf32>
    %147 = vector.extract_strided_slice %16 {offsets = [2, 0], sizes = [2, 96], strides = [1, 1]} : vector<8x96xf32> to vector<2x96xf32>
    %cst_36 = arith.constant dense<0.000000e+00> : vector<2x96xf32>
    %148 = tpu.matmul %100, %25, %cst_36 {dimension_numbers = #tpu.dot_dimension_numbers<[1], [0], [0], [1], [0, 0, 1, 1], [], []>} : vector<2x32xf32>, vector<32x96xf32>, vector<2x96xf32> -> vector<2x96xf32>
    %149 = arith.addf %148, %28 : vector<2x96xf32>
    %150 = vector.extract_strided_slice %147 {offsets = [0, 0], sizes = [2, 64], strides = [1, 1]} : vector<2x96xf32> to vector<2x64xf32>
    %151 = vector.extract_strided_slice %149 {offsets = [0, 0], sizes = [2, 64], strides = [1, 1]} : vector<2x96xf32> to vector<2x64xf32>
    %152 = arith.addf %150, %151 : vector<2x64xf32>
    %153 = arith.negf %152 : vector<2x64xf32>
    %154 = math.exp %153 : vector<2x64xf32>
    %cst_37 = arith.constant 1.000000e+00 : f32
    %155 = vector.broadcast %cst_37 : f32 to vector<2x64xf32>
    %156 = arith.addf %155, %154 : vector<2x64xf32>
    %157 = arith.divf %155, %156 : vector<2x64xf32>
    %158 = vector.extract_strided_slice %157 {offsets = [0, 0], sizes = [2, 32], strides = [1, 1]} : vector<2x64xf32> to vector<2x32xf32>
    %159 = vector.extract_strided_slice %157 {offsets = [0, 32], sizes = [2, 32], strides = [1, 1]} : vector<2x64xf32> to vector<2x32xf32>
    %160 = vector.extract_strided_slice %147 {offsets = [0, 64], sizes = [2, 32], strides = [1, 1]} : vector<2x96xf32> to vector<2x32xf32>
    %161 = vector.extract_strided_slice %149 {offsets = [0, 64], sizes = [2, 32], strides = [1, 1]} : vector<2x96xf32> to vector<2x32xf32>
    %162 = arith.mulf %158, %161 : vector<2x32xf32>
    %163 = arith.addf %160, %162 : vector<2x32xf32>
    %164 = math.tanh %163 : vector<2x32xf32>
    %cst_38 = arith.constant 1.000000e+00 : f32
    %165 = vector.broadcast %cst_38 : f32 to vector<2x32xf32>
    %166 = arith.subf %165, %159 : vector<2x32xf32>
    %167 = arith.mulf %166, %164 : vector<2x32xf32>
    %168 = arith.mulf %159, %100 : vector<2x32xf32>
    %169 = arith.addf %167, %168 : vector<2x32xf32>
    %170 = vector.extract_strided_slice %6 {offsets = [4, 0], sizes = [2, 96], strides = [1, 1]} : vector<16x96xf32> to vector<2x96xf32>
    %cst_39 = arith.constant dense<0.000000e+00> : vector<2x96xf32>
    %171 = tpu.matmul %123, %17, %cst_39 {dimension_numbers = #tpu.dot_dimension_numbers<[1], [0], [0], [1], [0, 0, 1, 1], [], []>} : vector<2x32xf32>, vector<32x96xf32>, vector<2x96xf32> -> vector<2x96xf32>
    %172 = arith.addf %171, %20 : vector<2x96xf32>
    %173 = vector.extract_strided_slice %170 {offsets = [0, 0], sizes = [2, 64], strides = [1, 1]} : vector<2x96xf32> to vector<2x64xf32>
    %174 = vector.extract_strided_slice %172 {offsets = [0, 0], sizes = [2, 64], strides = [1, 1]} : vector<2x96xf32> to vector<2x64xf32>
    %175 = arith.addf %173, %174 : vector<2x64xf32>
    %176 = arith.negf %175 : vector<2x64xf32>
    %177 = math.exp %176 : vector<2x64xf32>
    %cst_40 = arith.constant 1.000000e+00 : f32
    %178 = vector.broadcast %cst_40 : f32 to vector<2x64xf32>
    %179 = arith.addf %178, %177 : vector<2x64xf32>
    %180 = arith.divf %178, %179 : vector<2x64xf32>
    %181 = vector.extract_strided_slice %180 {offsets = [0, 0], sizes = [2, 32], strides = [1, 1]} : vector<2x64xf32> to vector<2x32xf32>
    %182 = vector.extract_strided_slice %180 {offsets = [0, 32], sizes = [2, 32], strides = [1, 1]} : vector<2x64xf32> to vector<2x32xf32>
    %183 = vector.extract_strided_slice %170 {offsets = [0, 64], sizes = [2, 32], strides = [1, 1]} : vector<2x96xf32> to vector<2x32xf32>
    %184 = vector.extract_strided_slice %172 {offsets = [0, 64], sizes = [2, 32], strides = [1, 1]} : vector<2x96xf32> to vector<2x32xf32>
    %185 = arith.mulf %181, %184 : vector<2x32xf32>
    %186 = arith.addf %183, %185 : vector<2x32xf32>
    %187 = math.tanh %186 : vector<2x32xf32>
    %cst_41 = arith.constant 1.000000e+00 : f32
    %188 = vector.broadcast %cst_41 : f32 to vector<2x32xf32>
    %189 = arith.subf %188, %182 : vector<2x32xf32>
    %190 = arith.mulf %189, %187 : vector<2x32xf32>
    %191 = arith.mulf %182, %123 : vector<2x32xf32>
    %192 = arith.addf %190, %191 : vector<2x32xf32>
    %193 = vector.extract_strided_slice %11 {offsets = [10, 0], sizes = [2, 96], strides = [1, 1]} : vector<16x96xf32> to vector<2x96xf32>
    %cst_42 = arith.constant dense<0.000000e+00> : vector<2x96xf32>
    %194 = tpu.matmul %146, %21, %cst_42 {dimension_numbers = #tpu.dot_dimension_numbers<[1], [0], [0], [1], [0, 0, 1, 1], [], []>} : vector<2x32xf32>, vector<32x96xf32>, vector<2x96xf32> -> vector<2x96xf32>
    %195 = arith.addf %194, %24 : vector<2x96xf32>
    %196 = vector.extract_strided_slice %193 {offsets = [0, 0], sizes = [2, 64], strides = [1, 1]} : vector<2x96xf32> to vector<2x64xf32>
    %197 = vector.extract_strided_slice %195 {offsets = [0, 0], sizes = [2, 64], strides = [1, 1]} : vector<2x96xf32> to vector<2x64xf32>
    %198 = arith.addf %196, %197 : vector<2x64xf32>
    %199 = arith.negf %198 : vector<2x64xf32>
    %200 = math.exp %199 : vector<2x64xf32>
    %cst_43 = arith.constant 1.000000e+00 : f32
    %201 = vector.broadcast %cst_43 : f32 to vector<2x64xf32>
    %202 = arith.addf %201, %200 : vector<2x64xf32>
    %203 = arith.divf %201, %202 : vector<2x64xf32>
    %204 = vector.extract_strided_slice %203 {offsets = [0, 0], sizes = [2, 32], strides = [1, 1]} : vector<2x64xf32> to vector<2x32xf32>
    %205 = vector.extract_strided_slice %203 {offsets = [0, 32], sizes = [2, 32], strides = [1, 1]} : vector<2x64xf32> to vector<2x32xf32>
    %206 = vector.extract_strided_slice %193 {offsets = [0, 64], sizes = [2, 32], strides = [1, 1]} : vector<2x96xf32> to vector<2x32xf32>
    %207 = vector.extract_strided_slice %195 {offsets = [0, 64], sizes = [2, 32], strides = [1, 1]} : vector<2x96xf32> to vector<2x32xf32>
    %208 = arith.mulf %204, %207 : vector<2x32xf32>
    %209 = arith.addf %206, %208 : vector<2x32xf32>
    %210 = math.tanh %209 : vector<2x32xf32>
    %cst_44 = arith.constant 1.000000e+00 : f32
    %211 = vector.broadcast %cst_44 : f32 to vector<2x32xf32>
    %212 = arith.subf %211, %205 : vector<2x32xf32>
    %213 = arith.mulf %212, %210 : vector<2x32xf32>
    %214 = arith.mulf %205, %146 : vector<2x32xf32>
    %215 = arith.addf %213, %214 : vector<2x32xf32>
    %216 = vector.extract_strided_slice %16 {offsets = [4, 0], sizes = [2, 96], strides = [1, 1]} : vector<8x96xf32> to vector<2x96xf32>
    %cst_45 = arith.constant dense<0.000000e+00> : vector<2x96xf32>
    %217 = tpu.matmul %169, %25, %cst_45 {dimension_numbers = #tpu.dot_dimension_numbers<[1], [0], [0], [1], [0, 0, 1, 1], [], []>} : vector<2x32xf32>, vector<32x96xf32>, vector<2x96xf32> -> vector<2x96xf32>
    %218 = arith.addf %217, %28 : vector<2x96xf32>
    %219 = vector.extract_strided_slice %216 {offsets = [0, 0], sizes = [2, 64], strides = [1, 1]} : vector<2x96xf32> to vector<2x64xf32>
    %220 = vector.extract_strided_slice %218 {offsets = [0, 0], sizes = [2, 64], strides = [1, 1]} : vector<2x96xf32> to vector<2x64xf32>
    %221 = arith.addf %219, %220 : vector<2x64xf32>
    %222 = arith.negf %221 : vector<2x64xf32>
    %223 = math.exp %222 : vector<2x64xf32>
    %cst_46 = arith.constant 1.000000e+00 : f32
    %224 = vector.broadcast %cst_46 : f32 to vector<2x64xf32>
    %225 = arith.addf %224, %223 : vector<2x64xf32>
    %226 = arith.divf %224, %225 : vector<2x64xf32>
    %227 = vector.extract_strided_slice %226 {offsets = [0, 0], sizes = [2, 32], strides = [1, 1]} : vector<2x64xf32> to vector<2x32xf32>
    %228 = vector.extract_strided_slice %226 {offsets = [0, 32], sizes = [2, 32], strides = [1, 1]} : vector<2x64xf32> to vector<2x32xf32>
    %229 = vector.extract_strided_slice %216 {offsets = [0, 64], sizes = [2, 32], strides = [1, 1]} : vector<2x96xf32> to vector<2x32xf32>
    %230 = vector.extract_strided_slice %218 {offsets = [0, 64], sizes = [2, 32], strides = [1, 1]} : vector<2x96xf32> to vector<2x32xf32>
    %231 = arith.mulf %227, %230 : vector<2x32xf32>
    %232 = arith.addf %229, %231 : vector<2x32xf32>
    %233 = math.tanh %232 : vector<2x32xf32>
    %cst_47 = arith.constant 1.000000e+00 : f32
    %234 = vector.broadcast %cst_47 : f32 to vector<2x32xf32>
    %235 = arith.subf %234, %228 : vector<2x32xf32>
    %236 = arith.mulf %235, %233 : vector<2x32xf32>
    %237 = arith.mulf %228, %169 : vector<2x32xf32>
    %238 = arith.addf %236, %237 : vector<2x32xf32>
    %239 = vector.extract_strided_slice %6 {offsets = [6, 0], sizes = [2, 96], strides = [1, 1]} : vector<16x96xf32> to vector<2x96xf32>
    %cst_48 = arith.constant dense<0.000000e+00> : vector<2x96xf32>
    %240 = tpu.matmul %192, %17, %cst_48 {dimension_numbers = #tpu.dot_dimension_numbers<[1], [0], [0], [1], [0, 0, 1, 1], [], []>} : vector<2x32xf32>, vector<32x96xf32>, vector<2x96xf32> -> vector<2x96xf32>
    %241 = arith.addf %240, %20 : vector<2x96xf32>
    %242 = vector.extract_strided_slice %239 {offsets = [0, 0], sizes = [2, 64], strides = [1, 1]} : vector<2x96xf32> to vector<2x64xf32>
    %243 = vector.extract_strided_slice %241 {offsets = [0, 0], sizes = [2, 64], strides = [1, 1]} : vector<2x96xf32> to vector<2x64xf32>
    %244 = arith.addf %242, %243 : vector<2x64xf32>
    %245 = arith.negf %244 : vector<2x64xf32>
    %246 = math.exp %245 : vector<2x64xf32>
    %cst_49 = arith.constant 1.000000e+00 : f32
    %247 = vector.broadcast %cst_49 : f32 to vector<2x64xf32>
    %248 = arith.addf %247, %246 : vector<2x64xf32>
    %249 = arith.divf %247, %248 : vector<2x64xf32>
    %250 = vector.extract_strided_slice %249 {offsets = [0, 0], sizes = [2, 32], strides = [1, 1]} : vector<2x64xf32> to vector<2x32xf32>
    %251 = vector.extract_strided_slice %249 {offsets = [0, 32], sizes = [2, 32], strides = [1, 1]} : vector<2x64xf32> to vector<2x32xf32>
    %252 = vector.extract_strided_slice %239 {offsets = [0, 64], sizes = [2, 32], strides = [1, 1]} : vector<2x96xf32> to vector<2x32xf32>
    %253 = vector.extract_strided_slice %241 {offsets = [0, 64], sizes = [2, 32], strides = [1, 1]} : vector<2x96xf32> to vector<2x32xf32>
    %254 = arith.mulf %250, %253 : vector<2x32xf32>
    %255 = arith.addf %252, %254 : vector<2x32xf32>
    %256 = math.tanh %255 : vector<2x32xf32>
    %cst_50 = arith.constant 1.000000e+00 : f32
    %257 = vector.broadcast %cst_50 : f32 to vector<2x32xf32>
    %258 = arith.subf %257, %251 : vector<2x32xf32>
    %259 = arith.mulf %258, %256 : vector<2x32xf32>
    %260 = arith.mulf %251, %192 : vector<2x32xf32>
    %261 = arith.addf %259, %260 : vector<2x32xf32>
    %262 = vector.extract_strided_slice %11 {offsets = [8, 0], sizes = [2, 96], strides = [1, 1]} : vector<16x96xf32> to vector<2x96xf32>
    %cst_51 = arith.constant dense<0.000000e+00> : vector<2x96xf32>
    %263 = tpu.matmul %215, %21, %cst_51 {dimension_numbers = #tpu.dot_dimension_numbers<[1], [0], [0], [1], [0, 0, 1, 1], [], []>} : vector<2x32xf32>, vector<32x96xf32>, vector<2x96xf32> -> vector<2x96xf32>
    %264 = arith.addf %263, %24 : vector<2x96xf32>
    %265 = vector.extract_strided_slice %262 {offsets = [0, 0], sizes = [2, 64], strides = [1, 1]} : vector<2x96xf32> to vector<2x64xf32>
    %266 = vector.extract_strided_slice %264 {offsets = [0, 0], sizes = [2, 64], strides = [1, 1]} : vector<2x96xf32> to vector<2x64xf32>
    %267 = arith.addf %265, %266 : vector<2x64xf32>
    %268 = arith.negf %267 : vector<2x64xf32>
    %269 = math.exp %268 : vector<2x64xf32>
    %cst_52 = arith.constant 1.000000e+00 : f32
    %270 = vector.broadcast %cst_52 : f32 to vector<2x64xf32>
    %271 = arith.addf %270, %269 : vector<2x64xf32>
    %272 = arith.divf %270, %271 : vector<2x64xf32>
    %273 = vector.extract_strided_slice %272 {offsets = [0, 0], sizes = [2, 32], strides = [1, 1]} : vector<2x64xf32> to vector<2x32xf32>
    %274 = vector.extract_strided_slice %272 {offsets = [0, 32], sizes = [2, 32], strides = [1, 1]} : vector<2x64xf32> to vector<2x32xf32>
    %275 = vector.extract_strided_slice %262 {offsets = [0, 64], sizes = [2, 32], strides = [1, 1]} : vector<2x96xf32> to vector<2x32xf32>
    %276 = vector.extract_strided_slice %264 {offsets = [0, 64], sizes = [2, 32], strides = [1, 1]} : vector<2x96xf32> to vector<2x32xf32>
    %277 = arith.mulf %273, %276 : vector<2x32xf32>
    %278 = arith.addf %275, %277 : vector<2x32xf32>
    %279 = math.tanh %278 : vector<2x32xf32>
    %cst_53 = arith.constant 1.000000e+00 : f32
    %280 = vector.broadcast %cst_53 : f32 to vector<2x32xf32>
    %281 = arith.subf %280, %274 : vector<2x32xf32>
    %282 = arith.mulf %281, %279 : vector<2x32xf32>
    %283 = arith.mulf %274, %215 : vector<2x32xf32>
    %284 = arith.addf %282, %283 : vector<2x32xf32>
    %285 = vector.extract_strided_slice %16 {offsets = [6, 0], sizes = [2, 96], strides = [1, 1]} : vector<8x96xf32> to vector<2x96xf32>
    %cst_54 = arith.constant dense<0.000000e+00> : vector<2x96xf32>
    %286 = tpu.matmul %238, %25, %cst_54 {dimension_numbers = #tpu.dot_dimension_numbers<[1], [0], [0], [1], [0, 0, 1, 1], [], []>} : vector<2x32xf32>, vector<32x96xf32>, vector<2x96xf32> -> vector<2x96xf32>
    %287 = arith.addf %286, %28 : vector<2x96xf32>
    %288 = vector.extract_strided_slice %285 {offsets = [0, 0], sizes = [2, 64], strides = [1, 1]} : vector<2x96xf32> to vector<2x64xf32>
    %289 = vector.extract_strided_slice %287 {offsets = [0, 0], sizes = [2, 64], strides = [1, 1]} : vector<2x96xf32> to vector<2x64xf32>
    %290 = arith.addf %288, %289 : vector<2x64xf32>
    %291 = arith.negf %290 : vector<2x64xf32>
    %292 = math.exp %291 : vector<2x64xf32>
    %cst_55 = arith.constant 1.000000e+00 : f32
    %293 = vector.broadcast %cst_55 : f32 to vector<2x64xf32>
    %294 = arith.addf %293, %292 : vector<2x64xf32>
    %295 = arith.divf %293, %294 : vector<2x64xf32>
    %296 = vector.extract_strided_slice %295 {offsets = [0, 0], sizes = [2, 32], strides = [1, 1]} : vector<2x64xf32> to vector<2x32xf32>
    %297 = vector.extract_strided_slice %295 {offsets = [0, 32], sizes = [2, 32], strides = [1, 1]} : vector<2x64xf32> to vector<2x32xf32>
    %298 = vector.extract_strided_slice %285 {offsets = [0, 64], sizes = [2, 32], strides = [1, 1]} : vector<2x96xf32> to vector<2x32xf32>
    %299 = vector.extract_strided_slice %287 {offsets = [0, 64], sizes = [2, 32], strides = [1, 1]} : vector<2x96xf32> to vector<2x32xf32>
    %300 = arith.mulf %296, %299 : vector<2x32xf32>
    %301 = arith.addf %298, %300 : vector<2x32xf32>
    %302 = math.tanh %301 : vector<2x32xf32>
    %cst_56 = arith.constant 1.000000e+00 : f32
    %303 = vector.broadcast %cst_56 : f32 to vector<2x32xf32>
    %304 = arith.subf %303, %297 : vector<2x32xf32>
    %305 = arith.mulf %304, %302 : vector<2x32xf32>
    %306 = arith.mulf %297, %238 : vector<2x32xf32>
    %307 = arith.addf %305, %306 : vector<2x32xf32>
    %308 = vector.extract_strided_slice %6 {offsets = [8, 0], sizes = [2, 96], strides = [1, 1]} : vector<16x96xf32> to vector<2x96xf32>
    %cst_57 = arith.constant dense<0.000000e+00> : vector<2x96xf32>
    %309 = tpu.matmul %261, %17, %cst_57 {dimension_numbers = #tpu.dot_dimension_numbers<[1], [0], [0], [1], [0, 0, 1, 1], [], []>} : vector<2x32xf32>, vector<32x96xf32>, vector<2x96xf32> -> vector<2x96xf32>
    %310 = arith.addf %309, %20 : vector<2x96xf32>
    %311 = vector.extract_strided_slice %308 {offsets = [0, 0], sizes = [2, 64], strides = [1, 1]} : vector<2x96xf32> to vector<2x64xf32>
    %312 = vector.extract_strided_slice %310 {offsets = [0, 0], sizes = [2, 64], strides = [1, 1]} : vector<2x96xf32> to vector<2x64xf32>
    %313 = arith.addf %311, %312 : vector<2x64xf32>
    %314 = arith.negf %313 : vector<2x64xf32>
    %315 = math.exp %314 : vector<2x64xf32>
    %cst_58 = arith.constant 1.000000e+00 : f32
    %316 = vector.broadcast %cst_58 : f32 to vector<2x64xf32>
    %317 = arith.addf %316, %315 : vector<2x64xf32>
    %318 = arith.divf %316, %317 : vector<2x64xf32>
    %319 = vector.extract_strided_slice %318 {offsets = [0, 0], sizes = [2, 32], strides = [1, 1]} : vector<2x64xf32> to vector<2x32xf32>
    %320 = vector.extract_strided_slice %318 {offsets = [0, 32], sizes = [2, 32], strides = [1, 1]} : vector<2x64xf32> to vector<2x32xf32>
    %321 = vector.extract_strided_slice %308 {offsets = [0, 64], sizes = [2, 32], strides = [1, 1]} : vector<2x96xf32> to vector<2x32xf32>
    %322 = vector.extract_strided_slice %310 {offsets = [0, 64], sizes = [2, 32], strides = [1, 1]} : vector<2x96xf32> to vector<2x32xf32>
    %323 = arith.mulf %319, %322 : vector<2x32xf32>
    %324 = arith.addf %321, %323 : vector<2x32xf32>
    %325 = math.tanh %324 : vector<2x32xf32>
    %cst_59 = arith.constant 1.000000e+00 : f32
    %326 = vector.broadcast %cst_59 : f32 to vector<2x32xf32>
    %327 = arith.subf %326, %320 : vector<2x32xf32>
    %328 = arith.mulf %327, %325 : vector<2x32xf32>
    %329 = arith.mulf %320, %261 : vector<2x32xf32>
    %330 = arith.addf %328, %329 : vector<2x32xf32>
    %331 = vector.extract_strided_slice %11 {offsets = [6, 0], sizes = [2, 96], strides = [1, 1]} : vector<16x96xf32> to vector<2x96xf32>
    %cst_60 = arith.constant dense<0.000000e+00> : vector<2x96xf32>
    %332 = tpu.matmul %284, %21, %cst_60 {dimension_numbers = #tpu.dot_dimension_numbers<[1], [0], [0], [1], [0, 0, 1, 1], [], []>} : vector<2x32xf32>, vector<32x96xf32>, vector<2x96xf32> -> vector<2x96xf32>
    %333 = arith.addf %332, %24 : vector<2x96xf32>
    %334 = vector.extract_strided_slice %331 {offsets = [0, 0], sizes = [2, 64], strides = [1, 1]} : vector<2x96xf32> to vector<2x64xf32>
    %335 = vector.extract_strided_slice %333 {offsets = [0, 0], sizes = [2, 64], strides = [1, 1]} : vector<2x96xf32> to vector<2x64xf32>
    %336 = arith.addf %334, %335 : vector<2x64xf32>
    %337 = arith.negf %336 : vector<2x64xf32>
    %338 = math.exp %337 : vector<2x64xf32>
    %cst_61 = arith.constant 1.000000e+00 : f32
    %339 = vector.broadcast %cst_61 : f32 to vector<2x64xf32>
    %340 = arith.addf %339, %338 : vector<2x64xf32>
    %341 = arith.divf %339, %340 : vector<2x64xf32>
    %342 = vector.extract_strided_slice %341 {offsets = [0, 0], sizes = [2, 32], strides = [1, 1]} : vector<2x64xf32> to vector<2x32xf32>
    %343 = vector.extract_strided_slice %341 {offsets = [0, 32], sizes = [2, 32], strides = [1, 1]} : vector<2x64xf32> to vector<2x32xf32>
    %344 = vector.extract_strided_slice %331 {offsets = [0, 64], sizes = [2, 32], strides = [1, 1]} : vector<2x96xf32> to vector<2x32xf32>
    %345 = vector.extract_strided_slice %333 {offsets = [0, 64], sizes = [2, 32], strides = [1, 1]} : vector<2x96xf32> to vector<2x32xf32>
    %346 = arith.mulf %342, %345 : vector<2x32xf32>
    %347 = arith.addf %344, %346 : vector<2x32xf32>
    %348 = math.tanh %347 : vector<2x32xf32>
    %cst_62 = arith.constant 1.000000e+00 : f32
    %349 = vector.broadcast %cst_62 : f32 to vector<2x32xf32>
    %350 = arith.subf %349, %343 : vector<2x32xf32>
    %351 = arith.mulf %350, %348 : vector<2x32xf32>
    %352 = arith.mulf %343, %284 : vector<2x32xf32>
    %353 = arith.addf %351, %352 : vector<2x32xf32>
    %354 = vector.extract_strided_slice %6 {offsets = [10, 0], sizes = [2, 96], strides = [1, 1]} : vector<16x96xf32> to vector<2x96xf32>
    %cst_63 = arith.constant dense<0.000000e+00> : vector<2x96xf32>
    %355 = tpu.matmul %330, %17, %cst_63 {dimension_numbers = #tpu.dot_dimension_numbers<[1], [0], [0], [1], [0, 0, 1, 1], [], []>} : vector<2x32xf32>, vector<32x96xf32>, vector<2x96xf32> -> vector<2x96xf32>
    %356 = arith.addf %355, %20 : vector<2x96xf32>
    %357 = vector.extract_strided_slice %354 {offsets = [0, 0], sizes = [2, 64], strides = [1, 1]} : vector<2x96xf32> to vector<2x64xf32>
    %358 = vector.extract_strided_slice %356 {offsets = [0, 0], sizes = [2, 64], strides = [1, 1]} : vector<2x96xf32> to vector<2x64xf32>
    %359 = arith.addf %357, %358 : vector<2x64xf32>
    %360 = arith.negf %359 : vector<2x64xf32>
    %361 = math.exp %360 : vector<2x64xf32>
    %cst_64 = arith.constant 1.000000e+00 : f32
    %362 = vector.broadcast %cst_64 : f32 to vector<2x64xf32>
    %363 = arith.addf %362, %361 : vector<2x64xf32>
    %364 = arith.divf %362, %363 : vector<2x64xf32>
    %365 = vector.extract_strided_slice %364 {offsets = [0, 0], sizes = [2, 32], strides = [1, 1]} : vector<2x64xf32> to vector<2x32xf32>
    %366 = vector.extract_strided_slice %364 {offsets = [0, 32], sizes = [2, 32], strides = [1, 1]} : vector<2x64xf32> to vector<2x32xf32>
    %367 = vector.extract_strided_slice %354 {offsets = [0, 64], sizes = [2, 32], strides = [1, 1]} : vector<2x96xf32> to vector<2x32xf32>
    %368 = vector.extract_strided_slice %356 {offsets = [0, 64], sizes = [2, 32], strides = [1, 1]} : vector<2x96xf32> to vector<2x32xf32>
    %369 = arith.mulf %365, %368 : vector<2x32xf32>
    %370 = arith.addf %367, %369 : vector<2x32xf32>
    %371 = math.tanh %370 : vector<2x32xf32>
    %cst_65 = arith.constant 1.000000e+00 : f32
    %372 = vector.broadcast %cst_65 : f32 to vector<2x32xf32>
    %373 = arith.subf %372, %366 : vector<2x32xf32>
    %374 = arith.mulf %373, %371 : vector<2x32xf32>
    %375 = arith.mulf %366, %330 : vector<2x32xf32>
    %376 = arith.addf %374, %375 : vector<2x32xf32>
    %377 = vector.extract_strided_slice %11 {offsets = [4, 0], sizes = [2, 96], strides = [1, 1]} : vector<16x96xf32> to vector<2x96xf32>
    %cst_66 = arith.constant dense<0.000000e+00> : vector<2x96xf32>
    %378 = tpu.matmul %353, %21, %cst_66 {dimension_numbers = #tpu.dot_dimension_numbers<[1], [0], [0], [1], [0, 0, 1, 1], [], []>} : vector<2x32xf32>, vector<32x96xf32>, vector<2x96xf32> -> vector<2x96xf32>
    %379 = arith.addf %378, %24 : vector<2x96xf32>
    %380 = vector.extract_strided_slice %377 {offsets = [0, 0], sizes = [2, 64], strides = [1, 1]} : vector<2x96xf32> to vector<2x64xf32>
    %381 = vector.extract_strided_slice %379 {offsets = [0, 0], sizes = [2, 64], strides = [1, 1]} : vector<2x96xf32> to vector<2x64xf32>
    %382 = arith.addf %380, %381 : vector<2x64xf32>
    %383 = arith.negf %382 : vector<2x64xf32>
    %384 = math.exp %383 : vector<2x64xf32>
    %cst_67 = arith.constant 1.000000e+00 : f32
    %385 = vector.broadcast %cst_67 : f32 to vector<2x64xf32>
    %386 = arith.addf %385, %384 : vector<2x64xf32>
    %387 = arith.divf %385, %386 : vector<2x64xf32>
    %388 = vector.extract_strided_slice %387 {offsets = [0, 0], sizes = [2, 32], strides = [1, 1]} : vector<2x64xf32> to vector<2x32xf32>
    %389 = vector.extract_strided_slice %387 {offsets = [0, 32], sizes = [2, 32], strides = [1, 1]} : vector<2x64xf32> to vector<2x32xf32>
    %390 = vector.extract_strided_slice %377 {offsets = [0, 64], sizes = [2, 32], strides = [1, 1]} : vector<2x96xf32> to vector<2x32xf32>
    %391 = vector.extract_strided_slice %379 {offsets = [0, 64], sizes = [2, 32], strides = [1, 1]} : vector<2x96xf32> to vector<2x32xf32>
    %392 = arith.mulf %388, %391 : vector<2x32xf32>
    %393 = arith.addf %390, %392 : vector<2x32xf32>
    %394 = math.tanh %393 : vector<2x32xf32>
    %cst_68 = arith.constant 1.000000e+00 : f32
    %395 = vector.broadcast %cst_68 : f32 to vector<2x32xf32>
    %396 = arith.subf %395, %389 : vector<2x32xf32>
    %397 = arith.mulf %396, %394 : vector<2x32xf32>
    %398 = arith.mulf %389, %353 : vector<2x32xf32>
    %399 = arith.addf %397, %398 : vector<2x32xf32>
    %400 = vector.extract_strided_slice %6 {offsets = [12, 0], sizes = [2, 96], strides = [1, 1]} : vector<16x96xf32> to vector<2x96xf32>
    %cst_69 = arith.constant dense<0.000000e+00> : vector<2x96xf32>
    %401 = tpu.matmul %376, %17, %cst_69 {dimension_numbers = #tpu.dot_dimension_numbers<[1], [0], [0], [1], [0, 0, 1, 1], [], []>} : vector<2x32xf32>, vector<32x96xf32>, vector<2x96xf32> -> vector<2x96xf32>
    %402 = arith.addf %401, %20 : vector<2x96xf32>
    %403 = vector.extract_strided_slice %400 {offsets = [0, 0], sizes = [2, 64], strides = [1, 1]} : vector<2x96xf32> to vector<2x64xf32>
    %404 = vector.extract_strided_slice %402 {offsets = [0, 0], sizes = [2, 64], strides = [1, 1]} : vector<2x96xf32> to vector<2x64xf32>
    %405 = arith.addf %403, %404 : vector<2x64xf32>
    %406 = arith.negf %405 : vector<2x64xf32>
    %407 = math.exp %406 : vector<2x64xf32>
    %cst_70 = arith.constant 1.000000e+00 : f32
    %408 = vector.broadcast %cst_70 : f32 to vector<2x64xf32>
    %409 = arith.addf %408, %407 : vector<2x64xf32>
    %410 = arith.divf %408, %409 : vector<2x64xf32>
    %411 = vector.extract_strided_slice %410 {offsets = [0, 0], sizes = [2, 32], strides = [1, 1]} : vector<2x64xf32> to vector<2x32xf32>
    %412 = vector.extract_strided_slice %410 {offsets = [0, 32], sizes = [2, 32], strides = [1, 1]} : vector<2x64xf32> to vector<2x32xf32>
    %413 = vector.extract_strided_slice %400 {offsets = [0, 64], sizes = [2, 32], strides = [1, 1]} : vector<2x96xf32> to vector<2x32xf32>
    %414 = vector.extract_strided_slice %402 {offsets = [0, 64], sizes = [2, 32], strides = [1, 1]} : vector<2x96xf32> to vector<2x32xf32>
    %415 = arith.mulf %411, %414 : vector<2x32xf32>
    %416 = arith.addf %413, %415 : vector<2x32xf32>
    %417 = math.tanh %416 : vector<2x32xf32>
    %cst_71 = arith.constant 1.000000e+00 : f32
    %418 = vector.broadcast %cst_71 : f32 to vector<2x32xf32>
    %419 = arith.subf %418, %412 : vector<2x32xf32>
    %420 = arith.mulf %419, %417 : vector<2x32xf32>
    %421 = arith.mulf %412, %376 : vector<2x32xf32>
    %422 = arith.addf %420, %421 : vector<2x32xf32>
    %423 = vector.extract_strided_slice %11 {offsets = [2, 0], sizes = [2, 96], strides = [1, 1]} : vector<16x96xf32> to vector<2x96xf32>
    %cst_72 = arith.constant dense<0.000000e+00> : vector<2x96xf32>
    %424 = tpu.matmul %399, %21, %cst_72 {dimension_numbers = #tpu.dot_dimension_numbers<[1], [0], [0], [1], [0, 0, 1, 1], [], []>} : vector<2x32xf32>, vector<32x96xf32>, vector<2x96xf32> -> vector<2x96xf32>
    %425 = arith.addf %424, %24 : vector<2x96xf32>
    %426 = vector.extract_strided_slice %423 {offsets = [0, 0], sizes = [2, 64], strides = [1, 1]} : vector<2x96xf32> to vector<2x64xf32>
    %427 = vector.extract_strided_slice %425 {offsets = [0, 0], sizes = [2, 64], strides = [1, 1]} : vector<2x96xf32> to vector<2x64xf32>
    %428 = arith.addf %426, %427 : vector<2x64xf32>
    %429 = arith.negf %428 : vector<2x64xf32>
    %430 = math.exp %429 : vector<2x64xf32>
    %cst_73 = arith.constant 1.000000e+00 : f32
    %431 = vector.broadcast %cst_73 : f32 to vector<2x64xf32>
    %432 = arith.addf %431, %430 : vector<2x64xf32>
    %433 = arith.divf %431, %432 : vector<2x64xf32>
    %434 = vector.extract_strided_slice %433 {offsets = [0, 0], sizes = [2, 32], strides = [1, 1]} : vector<2x64xf32> to vector<2x32xf32>
    %435 = vector.extract_strided_slice %433 {offsets = [0, 32], sizes = [2, 32], strides = [1, 1]} : vector<2x64xf32> to vector<2x32xf32>
    %436 = vector.extract_strided_slice %423 {offsets = [0, 64], sizes = [2, 32], strides = [1, 1]} : vector<2x96xf32> to vector<2x32xf32>
    %437 = vector.extract_strided_slice %425 {offsets = [0, 64], sizes = [2, 32], strides = [1, 1]} : vector<2x96xf32> to vector<2x32xf32>
    %438 = arith.mulf %434, %437 : vector<2x32xf32>
    %439 = arith.addf %436, %438 : vector<2x32xf32>
    %440 = math.tanh %439 : vector<2x32xf32>
    %cst_74 = arith.constant 1.000000e+00 : f32
    %441 = vector.broadcast %cst_74 : f32 to vector<2x32xf32>
    %442 = arith.subf %441, %435 : vector<2x32xf32>
    %443 = arith.mulf %442, %440 : vector<2x32xf32>
    %444 = arith.mulf %435, %399 : vector<2x32xf32>
    %445 = arith.addf %443, %444 : vector<2x32xf32>
    %446 = vector.extract_strided_slice %6 {offsets = [14, 0], sizes = [2, 96], strides = [1, 1]} : vector<16x96xf32> to vector<2x96xf32>
    %cst_75 = arith.constant dense<0.000000e+00> : vector<2x96xf32>
    %447 = tpu.matmul %422, %17, %cst_75 {dimension_numbers = #tpu.dot_dimension_numbers<[1], [0], [0], [1], [0, 0, 1, 1], [], []>} : vector<2x32xf32>, vector<32x96xf32>, vector<2x96xf32> -> vector<2x96xf32>
    %448 = arith.addf %447, %20 : vector<2x96xf32>
    %449 = vector.extract_strided_slice %446 {offsets = [0, 0], sizes = [2, 64], strides = [1, 1]} : vector<2x96xf32> to vector<2x64xf32>
    %450 = vector.extract_strided_slice %448 {offsets = [0, 0], sizes = [2, 64], strides = [1, 1]} : vector<2x96xf32> to vector<2x64xf32>
    %451 = arith.addf %449, %450 : vector<2x64xf32>
    %452 = arith.negf %451 : vector<2x64xf32>
    %453 = math.exp %452 : vector<2x64xf32>
    %cst_76 = arith.constant 1.000000e+00 : f32
    %454 = vector.broadcast %cst_76 : f32 to vector<2x64xf32>
    %455 = arith.addf %454, %453 : vector<2x64xf32>
    %456 = arith.divf %454, %455 : vector<2x64xf32>
    %457 = vector.extract_strided_slice %456 {offsets = [0, 0], sizes = [2, 32], strides = [1, 1]} : vector<2x64xf32> to vector<2x32xf32>
    %458 = vector.extract_strided_slice %456 {offsets = [0, 32], sizes = [2, 32], strides = [1, 1]} : vector<2x64xf32> to vector<2x32xf32>
    %459 = vector.extract_strided_slice %446 {offsets = [0, 64], sizes = [2, 32], strides = [1, 1]} : vector<2x96xf32> to vector<2x32xf32>
    %460 = vector.extract_strided_slice %448 {offsets = [0, 64], sizes = [2, 32], strides = [1, 1]} : vector<2x96xf32> to vector<2x32xf32>
    %461 = arith.mulf %457, %460 : vector<2x32xf32>
    %462 = arith.addf %459, %461 : vector<2x32xf32>
    %463 = math.tanh %462 : vector<2x32xf32>
    %cst_77 = arith.constant 1.000000e+00 : f32
    %464 = vector.broadcast %cst_77 : f32 to vector<2x32xf32>
    %465 = arith.subf %464, %458 : vector<2x32xf32>
    %466 = arith.mulf %465, %463 : vector<2x32xf32>
    %467 = arith.mulf %458, %422 : vector<2x32xf32>
    %468 = arith.addf %466, %467 : vector<2x32xf32>
    %469 = vector.extract_strided_slice %11 {offsets = [0, 0], sizes = [2, 96], strides = [1, 1]} : vector<16x96xf32> to vector<2x96xf32>
    %cst_78 = arith.constant dense<0.000000e+00> : vector<2x96xf32>
    %470 = tpu.matmul %445, %21, %cst_78 {dimension_numbers = #tpu.dot_dimension_numbers<[1], [0], [0], [1], [0, 0, 1, 1], [], []>} : vector<2x32xf32>, vector<32x96xf32>, vector<2x96xf32> -> vector<2x96xf32>
    %471 = arith.addf %470, %24 : vector<2x96xf32>
    %472 = vector.extract_strided_slice %469 {offsets = [0, 0], sizes = [2, 64], strides = [1, 1]} : vector<2x96xf32> to vector<2x64xf32>
    %473 = vector.extract_strided_slice %471 {offsets = [0, 0], sizes = [2, 64], strides = [1, 1]} : vector<2x96xf32> to vector<2x64xf32>
    %474 = arith.addf %472, %473 : vector<2x64xf32>
    %475 = arith.negf %474 : vector<2x64xf32>
    %476 = math.exp %475 : vector<2x64xf32>
    %cst_79 = arith.constant 1.000000e+00 : f32
    %477 = vector.broadcast %cst_79 : f32 to vector<2x64xf32>
    %478 = arith.addf %477, %476 : vector<2x64xf32>
    %479 = arith.divf %477, %478 : vector<2x64xf32>
    %480 = vector.extract_strided_slice %479 {offsets = [0, 0], sizes = [2, 32], strides = [1, 1]} : vector<2x64xf32> to vector<2x32xf32>
    %481 = vector.extract_strided_slice %479 {offsets = [0, 32], sizes = [2, 32], strides = [1, 1]} : vector<2x64xf32> to vector<2x32xf32>
    %482 = vector.extract_strided_slice %469 {offsets = [0, 64], sizes = [2, 32], strides = [1, 1]} : vector<2x96xf32> to vector<2x32xf32>
    %483 = vector.extract_strided_slice %471 {offsets = [0, 64], sizes = [2, 32], strides = [1, 1]} : vector<2x96xf32> to vector<2x32xf32>
    %484 = arith.mulf %480, %483 : vector<2x32xf32>
    %485 = arith.addf %482, %484 : vector<2x32xf32>
    %486 = math.tanh %485 : vector<2x32xf32>
    %cst_80 = arith.constant 1.000000e+00 : f32
    %487 = vector.broadcast %cst_80 : f32 to vector<2x32xf32>
    %488 = arith.subf %487, %481 : vector<2x32xf32>
    %489 = arith.mulf %488, %486 : vector<2x32xf32>
    %490 = arith.mulf %481, %445 : vector<2x32xf32>
    %491 = arith.addf %489, %490 : vector<2x32xf32>
    %492 = arith.addf %54, %491 : vector<2x32xf32>
    %493 = arith.addf %123, %445 : vector<2x32xf32>
    %494 = arith.addf %192, %399 : vector<2x32xf32>
    %495 = arith.addf %261, %353 : vector<2x32xf32>
    %496 = arith.addf %330, %284 : vector<2x32xf32>
    %497 = arith.addf %376, %215 : vector<2x32xf32>
    %498 = arith.addf %422, %146 : vector<2x32xf32>
    %499 = arith.addf %468, %77 : vector<2x32xf32>
    %500 = tpu.concatenate %492, %493, %494, %495, %496, %497, %498, %499 in 0 : vector<2x32xf32>, vector<2x32xf32>, vector<2x32xf32>, vector<2x32xf32>, vector<2x32xf32>, vector<2x32xf32>, vector<2x32xf32>, vector<2x32xf32> -> vector<16x32xf32>
    %c240 = arith.constant 240 : index
    %c0_81 = arith.constant 0 : index
    %501 = vector.load %arg2[%c240, %c0_81] : memref<712x128xf32, #tpu.memory_space<vmem>>, vector<32x32xf32>
    %cst_82 = arith.constant dense<0.000000e+00> : vector<16x32xf32>
    %502 = tpu.matmul %500, %501, %cst_82 {dimension_numbers = #tpu.dot_dimension_numbers<[1], [0], [0], [1], [0, 0, 1, 1], [], []>} : vector<16x32xf32>, vector<32x32xf32>, vector<16x32xf32> -> vector<16x32xf32>
    %c272 = arith.constant 272 : index
    %c0_83 = arith.constant 0 : index
    %503 = vector.load %arg2[%c272, %c0_83] : memref<712x128xf32, #tpu.memory_space<vmem>>, vector<1x32xf32>
    %504 = vector.broadcast %503 : vector<1x32xf32> to vector<16x32xf32>
    %505 = arith.addf %502, %504 : vector<16x32xf32>
    %c280 = arith.constant 280 : index
    %c0_84 = arith.constant 0 : index
    %506 = vector.load %arg2[%c280, %c0_84] : memref<712x128xf32, #tpu.memory_space<vmem>>, vector<32x32xf32>
    %cst_85 = arith.constant dense<0.000000e+00> : vector<16x32xf32>
    %507 = tpu.matmul %500, %506, %cst_85 {dimension_numbers = #tpu.dot_dimension_numbers<[1], [0], [0], [1], [0, 0, 1, 1], [], []>} : vector<16x32xf32>, vector<32x32xf32>, vector<16x32xf32> -> vector<16x32xf32>
    %c312 = arith.constant 312 : index
    %c0_86 = arith.constant 0 : index
    %508 = vector.load %arg2[%c312, %c0_86] : memref<712x128xf32, #tpu.memory_space<vmem>>, vector<1x32xf32>
    %509 = vector.broadcast %508 : vector<1x32xf32> to vector<16x32xf32>
    %510 = arith.addf %507, %509 : vector<16x32xf32>
    %511 = tpu.iota {dimensions = array<i32: 0>} : vector<16x2xi32>
    %512 = tpu.iota {dimensions = array<i32: 1>} : vector<16x2xi32>
    %c2_i32 = arith.constant 2 : i32
    %c0_i32 = arith.constant 0 : i32
    %513 = arith.cmpi eq, %c2_i32, %c0_i32 : i32
    %c1_i32 = arith.constant 1 : i32
    %514 = arith.select %513, %c1_i32, %c2_i32 : i32
    %515 = vector.broadcast %514 : i32 to vector<16x2xi32>
    %516 = arith.remsi %511, %515 : vector<16x2xi32>
    %c0_i32_87 = arith.constant 0 : i32
    %517 = vector.broadcast %c0_i32_87 : i32 to vector<16x2xi32>
    %518 = arith.cmpi ne, %516, %517 : vector<16x2xi32>
    %c0_i32_88 = arith.constant 0 : i32
    %519 = vector.broadcast %c0_i32_88 : i32 to vector<16x2xi32>
    %520 = arith.cmpi slt, %516, %519 : vector<16x2xi32>
    %c0_i32_89 = arith.constant 0 : i32
    %521 = arith.cmpi slt, %514, %c0_i32_89 : i32
    %522 = vector.broadcast %521 : i1 to vector<16x2xi1>
    %523 = vector.broadcast %522 : vector<16x2xi1> to vector<16x2xi1>
    %524 = arith.xori %520, %523 : vector<16x2xi1>
    %525 = arith.andi %524, %518 : vector<16x2xi1>
    %526 = vector.broadcast %514 : i32 to vector<16x2xi32>
    %527 = arith.addi %516, %526 : vector<16x2xi32>
    %528 = arith.select %525, %527, %516 : vector<16x2xi1>, vector<16x2xi32>
    %529 = arith.cmpi eq, %528, %512 : vector<16x2xi32>
    %530 = arith.extui %529 : vector<16x2xi1> to vector<16x2xi32>
    %531 = arith.sitofp %530 : vector<16x2xi32> to vector<16x2xf32>
    %532 = tpu.iota {dimensions = array<i32: 0>} : vector<2x16xi32>
    %533 = tpu.iota {dimensions = array<i32: 1>} : vector<2x16xi32>
    %c2_i32_90 = arith.constant 2 : i32
    %c0_i32_91 = arith.constant 0 : i32
    %534 = arith.cmpi eq, %c2_i32_90, %c0_i32_91 : i32
    %c1_i32_92 = arith.constant 1 : i32
    %535 = arith.select %534, %c1_i32_92, %c2_i32_90 : i32
    %536 = vector.broadcast %535 : i32 to vector<2x16xi32>
    %537 = arith.remsi %533, %536 : vector<2x16xi32>
    %c0_i32_93 = arith.constant 0 : i32
    %538 = vector.broadcast %c0_i32_93 : i32 to vector<2x16xi32>
    %539 = arith.cmpi ne, %537, %538 : vector<2x16xi32>
    %c0_i32_94 = arith.constant 0 : i32
    %540 = vector.broadcast %c0_i32_94 : i32 to vector<2x16xi32>
    %541 = arith.cmpi slt, %537, %540 : vector<2x16xi32>
    %c0_i32_95 = arith.constant 0 : i32
    %542 = arith.cmpi slt, %535, %c0_i32_95 : i32
    %543 = vector.broadcast %542 : i1 to vector<2x16xi1>
    %544 = vector.broadcast %543 : vector<2x16xi1> to vector<2x16xi1>
    %545 = arith.xori %541, %544 : vector<2x16xi1>
    %546 = arith.andi %545, %539 : vector<2x16xi1>
    %547 = vector.broadcast %535 : i32 to vector<2x16xi32>
    %548 = arith.addi %537, %547 : vector<2x16xi32>
    %549 = arith.select %546, %548, %537 : vector<2x16xi1>, vector<2x16xi32>
    %550 = arith.cmpi eq, %549, %532 : vector<2x16xi32>
    %551 = arith.extui %550 : vector<2x16xi1> to vector<2x16xi32>
    %552 = arith.sitofp %551 : vector<2x16xi32> to vector<2x16xf32>
    %553 = tpu.iota {dimensions = array<i32: 0>} : vector<16x8xi32>
    %554 = tpu.iota {dimensions = array<i32: 1>} : vector<16x8xi32>
    %c2_i32_96 = arith.constant 2 : i32
    %555 = vector.broadcast %c2_i32_96 : i32 to vector<16x8xi32>
    %556 = arith.muli %554, %555 : vector<16x8xi32>
    %557 = arith.cmpi sge, %553, %556 : vector<16x8xi32>
    %c2_i32_97 = arith.constant 2 : i32
    %558 = vector.broadcast %c2_i32_97 : i32 to vector<16x8xi32>
    %559 = arith.muli %554, %558 : vector<16x8xi32>
    %c2_i32_98 = arith.constant 2 : i32
    %560 = vector.broadcast %c2_i32_98 : i32 to vector<16x8xi32>
    %561 = arith.addi %559, %560 : vector<16x8xi32>
    %562 = arith.cmpi slt, %553, %561 : vector<16x8xi32>
    %563 = arith.andi %557, %562 : vector<16x8xi1>
    %564 = arith.extui %563 : vector<16x8xi1> to vector<16x8xi32>
    %565 = arith.sitofp %564 : vector<16x8xi32> to vector<16x8xf32>
    %cst_99 = arith.constant dense<0.000000e+00> : vector<16x32xf32>
    %566 = tpu.matmul %531, %307, %cst_99 {dimension_numbers = #tpu.dot_dimension_numbers<[1], [0], [0], [1], [0, 0, 1, 1], [], []>} : vector<16x2xf32>, vector<2x32xf32>, vector<16x32xf32> -> vector<16x32xf32>
    %c360 = arith.constant 360 : index
    %c0_100 = arith.constant 0 : index
    %567 = vector.load %arg2[%c360, %c0_100] : memref<712x128xf32, #tpu.memory_space<vmem>>, vector<128x32xf32>
    %c488 = arith.constant 488 : index
    %c0_101 = arith.constant 0 : index
    %568 = vector.load %arg2[%c488, %c0_101] : memref<712x128xf32, #tpu.memory_space<vmem>>, vector<1x32xf32>
    %c496 = arith.constant 496 : index
    %c0_102 = arith.constant 0 : index
    %569 = vector.load %arg2[%c496, %c0_102] : memref<712x128xf32, #tpu.memory_space<vmem>>, vector<32x1xf32>
    %c528 = arith.constant 528 : index
    %c0_103 = arith.constant 0 : index
    %570 = vector.load %arg2[%c528, %c0_103] : memref<712x128xf32, #tpu.memory_space<vmem>>, vector<1x1xf32>
    %c320 = arith.constant 320 : index
    %c0_104 = arith.constant 0 : index
    %571 = vector.load %arg2[%c320, %c0_104] : memref<712x128xf32, #tpu.memory_space<vmem>>, vector<32x64xf32>
    %c352 = arith.constant 352 : index
    %c0_105 = arith.constant 0 : index
    %572 = vector.load %arg2[%c352, %c0_105] : memref<712x128xf32, #tpu.memory_space<vmem>>, vector<1x64xf32>
    %573 = vector.shape_cast %572 : vector<1x64xf32> to vector<1x64xf32>
    %574 = vector.broadcast %573 : vector<1x64xf32> to vector<2x64xf32>
    %c536 = arith.constant 536 : index
    %c0_106 = arith.constant 0 : index
    %575 = vector.load %arg2[%c536, %c0_106] : memref<712x128xf32, #tpu.memory_space<vmem>>, vector<96x32xf32>
    %c632 = arith.constant 632 : index
    %c0_107 = arith.constant 0 : index
    %576 = vector.load %arg2[%c632, %c0_107] : memref<712x128xf32, #tpu.memory_space<vmem>>, vector<1x32xf32>
    %cst_108 = arith.constant dense<0.000000e+00> : vector<16x32xf32>
    %577 = tpu.matmul %531, %307, %cst_108 {dimension_numbers = #tpu.dot_dimension_numbers<[1], [0], [0], [1], [0, 0, 1, 1], [], []>} : vector<16x2xf32>, vector<2x32xf32>, vector<16x32xf32> -> vector<16x32xf32>
    %578 = arith.mulf %500, %566 : vector<16x32xf32>
    %579 = arith.mulf %500, %577 : vector<16x32xf32>
    %580 = arith.subf %500, %566 : vector<16x32xf32>
    %581 = math.absf %580 : vector<16x32xf32>
    %582 = arith.subf %500, %577 : vector<16x32xf32>
    %583 = math.absf %582 : vector<16x32xf32>
    %584 = tpu.concatenate %578, %579, %581, %583 in 1 : vector<16x32xf32>, vector<16x32xf32>, vector<16x32xf32>, vector<16x32xf32> -> vector<16x128xf32>
    %cst_109 = arith.constant dense<0.000000e+00> : vector<16x32xf32>
    %585 = tpu.matmul %584, %567, %cst_109 {dimension_numbers = #tpu.dot_dimension_numbers<[1], [0], [0], [1], [0, 0, 1, 1], [], []>} : vector<16x128xf32>, vector<128x32xf32>, vector<16x32xf32> -> vector<16x32xf32>
    %586 = vector.broadcast %568 : vector<1x32xf32> to vector<16x32xf32>
    %587 = arith.addf %585, %586 : vector<16x32xf32>
    %588 = math.tanh %587 : vector<16x32xf32>
    %cst_110 = arith.constant dense<0.000000e+00> : vector<16x1xf32>
    %589 = tpu.matmul %588, %569, %cst_110 {dimension_numbers = #tpu.dot_dimension_numbers<[1], [0], [0], [1], [0, 0, 1, 1], [], []>} : vector<16x32xf32>, vector<32x1xf32>, vector<16x1xf32> -> vector<16x1xf32>
    %590 = vector.broadcast %570 : vector<1x1xf32> to vector<16x1xf32>
    %591 = arith.addf %589, %590 : vector<16x1xf32>
    %592 = vector.broadcast %591 : vector<16x1xf32> to vector<16x8xf32>
    %593 = arith.mulf %592, %565 : vector<16x8xf32>
    %cst_111 = arith.constant dense<0.000000e+00> : vector<2x8xf32>
    %594 = tpu.matmul %552, %593, %cst_111 {dimension_numbers = #tpu.dot_dimension_numbers<[1], [0], [0], [1], [0, 0, 1, 1], [], []>} : vector<2x16xf32>, vector<16x8xf32>, vector<2x8xf32> -> vector<2x8xf32>
    %cst_112 = arith.constant dense<0xFF800000> : vector<2xf32>
    %595 = vector.multi_reduction <maximumf>, %594, %cst_112 [1] : vector<2x8xf32> to vector<2xf32>
    %596 = vector.shape_cast %595 : vector<2xf32> to vector<2x1xf32>
    %597 = vector.broadcast %596 : vector<2x1xf32> to vector<2x8xf32>
    %598 = arith.subf %594, %597 : vector<2x8xf32>
    %599 = math.exp %598 : vector<2x8xf32>
    %cst_113 = arith.constant dense<0.000000e+00> : vector<2xf32>
    %600 = vector.multi_reduction <add>, %599, %cst_113 [1] : vector<2x8xf32> to vector<2xf32>
    %601 = vector.shape_cast %600 : vector<2xf32> to vector<2x1xf32>
    %602 = tpu.reciprocal %601 {approx = true} : vector<2x1xf32> -> vector<2x1xf32>
    %603 = vector.broadcast %602 : vector<2x1xf32> to vector<2x8xf32>
    %604 = arith.mulf %599, %603 : vector<2x8xf32>
    %cst_114 = arith.constant 0.000000e+00 : f32
    %605 = vector.broadcast %cst_114 : f32 to vector<2x32xf32>
    %cst_115 = arith.constant dense<0.000000e+00> : vector<2x64xf32>
    %606 = tpu.matmul %605, %571, %cst_115 {dimension_numbers = #tpu.dot_dimension_numbers<[1], [0], [0], [1], [0, 0, 1, 1], [], []>} : vector<2x32xf32>, vector<32x64xf32>, vector<2x64xf32> -> vector<2x64xf32>
    %607 = arith.addf %606, %574 : vector<2x64xf32>
    %608 = vector.extract_strided_slice %505 {offsets = [0, 0], sizes = [2, 32], strides = [1, 1]} : vector<16x32xf32> to vector<2x32xf32>
    %609 = vector.extract_strided_slice %607 {offsets = [0, 0], sizes = [2, 32], strides = [1, 1]} : vector<2x64xf32> to vector<2x32xf32>
    %610 = arith.addf %608, %609 : vector<2x32xf32>
    %611 = arith.negf %610 : vector<2x32xf32>
    %612 = math.exp %611 : vector<2x32xf32>
    %cst_116 = arith.constant 1.000000e+00 : f32
    %613 = vector.broadcast %cst_116 : f32 to vector<2x32xf32>
    %614 = arith.addf %613, %612 : vector<2x32xf32>
    %615 = arith.divf %613, %614 : vector<2x32xf32>
    %616 = vector.extract_strided_slice %510 {offsets = [0, 0], sizes = [2, 32], strides = [1, 1]} : vector<16x32xf32> to vector<2x32xf32>
    %617 = vector.extract_strided_slice %607 {offsets = [0, 32], sizes = [2, 32], strides = [1, 1]} : vector<2x64xf32> to vector<2x32xf32>
    %618 = arith.mulf %615, %617 : vector<2x32xf32>
    %619 = arith.addf %616, %618 : vector<2x32xf32>
    %620 = math.tanh %619 : vector<2x32xf32>
    %621 = vector.extract_strided_slice %604 {offsets = [0, 0], sizes = [2, 1], strides = [1, 1]} : vector<2x8xf32> to vector<2x1xf32>
    %622 = vector.broadcast %621 : vector<2x1xf32> to vector<2x32xf32>
    %623 = arith.mulf %622, %620 : vector<2x32xf32>
    %cst_117 = arith.constant 1.000000e+00 : f32
    %624 = vector.broadcast %cst_117 : f32 to vector<2x1xf32>
    %625 = arith.subf %624, %621 : vector<2x1xf32>
    %626 = vector.broadcast %625 : vector<2x1xf32> to vector<2x32xf32>
    %627 = arith.mulf %626, %605 : vector<2x32xf32>
    %628 = arith.addf %623, %627 : vector<2x32xf32>
    %cst_118 = arith.constant dense<0.000000e+00> : vector<2x64xf32>
    %629 = tpu.matmul %628, %571, %cst_118 {dimension_numbers = #tpu.dot_dimension_numbers<[1], [0], [0], [1], [0, 0, 1, 1], [], []>} : vector<2x32xf32>, vector<32x64xf32>, vector<2x64xf32> -> vector<2x64xf32>
    %630 = arith.addf %629, %574 : vector<2x64xf32>
    %631 = vector.extract_strided_slice %505 {offsets = [2, 0], sizes = [2, 32], strides = [1, 1]} : vector<16x32xf32> to vector<2x32xf32>
    %632 = vector.extract_strided_slice %630 {offsets = [0, 0], sizes = [2, 32], strides = [1, 1]} : vector<2x64xf32> to vector<2x32xf32>
    %633 = arith.addf %631, %632 : vector<2x32xf32>
    %634 = arith.negf %633 : vector<2x32xf32>
    %635 = math.exp %634 : vector<2x32xf32>
    %cst_119 = arith.constant 1.000000e+00 : f32
    %636 = vector.broadcast %cst_119 : f32 to vector<2x32xf32>
    %637 = arith.addf %636, %635 : vector<2x32xf32>
    %638 = arith.divf %636, %637 : vector<2x32xf32>
    %639 = vector.extract_strided_slice %510 {offsets = [2, 0], sizes = [2, 32], strides = [1, 1]} : vector<16x32xf32> to vector<2x32xf32>
    %640 = vector.extract_strided_slice %630 {offsets = [0, 32], sizes = [2, 32], strides = [1, 1]} : vector<2x64xf32> to vector<2x32xf32>
    %641 = arith.mulf %638, %640 : vector<2x32xf32>
    %642 = arith.addf %639, %641 : vector<2x32xf32>
    %643 = math.tanh %642 : vector<2x32xf32>
    %644 = vector.extract_strided_slice %604 {offsets = [0, 1], sizes = [2, 1], strides = [1, 1]} : vector<2x8xf32> to vector<2x1xf32>
    %645 = vector.broadcast %644 : vector<2x1xf32> to vector<2x32xf32>
    %646 = arith.mulf %645, %643 : vector<2x32xf32>
    %cst_120 = arith.constant 1.000000e+00 : f32
    %647 = vector.broadcast %cst_120 : f32 to vector<2x1xf32>
    %648 = arith.subf %647, %644 : vector<2x1xf32>
    %649 = vector.broadcast %648 : vector<2x1xf32> to vector<2x32xf32>
    %650 = arith.mulf %649, %628 : vector<2x32xf32>
    %651 = arith.addf %646, %650 : vector<2x32xf32>
    %cst_121 = arith.constant dense<0.000000e+00> : vector<2x64xf32>
    %652 = tpu.matmul %651, %571, %cst_121 {dimension_numbers = #tpu.dot_dimension_numbers<[1], [0], [0], [1], [0, 0, 1, 1], [], []>} : vector<2x32xf32>, vector<32x64xf32>, vector<2x64xf32> -> vector<2x64xf32>
    %653 = arith.addf %652, %574 : vector<2x64xf32>
    %654 = vector.extract_strided_slice %505 {offsets = [4, 0], sizes = [2, 32], strides = [1, 1]} : vector<16x32xf32> to vector<2x32xf32>
    %655 = vector.extract_strided_slice %653 {offsets = [0, 0], sizes = [2, 32], strides = [1, 1]} : vector<2x64xf32> to vector<2x32xf32>
    %656 = arith.addf %654, %655 : vector<2x32xf32>
    %657 = arith.negf %656 : vector<2x32xf32>
    %658 = math.exp %657 : vector<2x32xf32>
    %cst_122 = arith.constant 1.000000e+00 : f32
    %659 = vector.broadcast %cst_122 : f32 to vector<2x32xf32>
    %660 = arith.addf %659, %658 : vector<2x32xf32>
    %661 = arith.divf %659, %660 : vector<2x32xf32>
    %662 = vector.extract_strided_slice %510 {offsets = [4, 0], sizes = [2, 32], strides = [1, 1]} : vector<16x32xf32> to vector<2x32xf32>
    %663 = vector.extract_strided_slice %653 {offsets = [0, 32], sizes = [2, 32], strides = [1, 1]} : vector<2x64xf32> to vector<2x32xf32>
    %664 = arith.mulf %661, %663 : vector<2x32xf32>
    %665 = arith.addf %662, %664 : vector<2x32xf32>
    %666 = math.tanh %665 : vector<2x32xf32>
    %667 = vector.extract_strided_slice %604 {offsets = [0, 2], sizes = [2, 1], strides = [1, 1]} : vector<2x8xf32> to vector<2x1xf32>
    %668 = vector.broadcast %667 : vector<2x1xf32> to vector<2x32xf32>
    %669 = arith.mulf %668, %666 : vector<2x32xf32>
    %cst_123 = arith.constant 1.000000e+00 : f32
    %670 = vector.broadcast %cst_123 : f32 to vector<2x1xf32>
    %671 = arith.subf %670, %667 : vector<2x1xf32>
    %672 = vector.broadcast %671 : vector<2x1xf32> to vector<2x32xf32>
    %673 = arith.mulf %672, %651 : vector<2x32xf32>
    %674 = arith.addf %669, %673 : vector<2x32xf32>
    %cst_124 = arith.constant dense<0.000000e+00> : vector<2x64xf32>
    %675 = tpu.matmul %674, %571, %cst_124 {dimension_numbers = #tpu.dot_dimension_numbers<[1], [0], [0], [1], [0, 0, 1, 1], [], []>} : vector<2x32xf32>, vector<32x64xf32>, vector<2x64xf32> -> vector<2x64xf32>
    %676 = arith.addf %675, %574 : vector<2x64xf32>
    %677 = vector.extract_strided_slice %505 {offsets = [6, 0], sizes = [2, 32], strides = [1, 1]} : vector<16x32xf32> to vector<2x32xf32>
    %678 = vector.extract_strided_slice %676 {offsets = [0, 0], sizes = [2, 32], strides = [1, 1]} : vector<2x64xf32> to vector<2x32xf32>
    %679 = arith.addf %677, %678 : vector<2x32xf32>
    %680 = arith.negf %679 : vector<2x32xf32>
    %681 = math.exp %680 : vector<2x32xf32>
    %cst_125 = arith.constant 1.000000e+00 : f32
    %682 = vector.broadcast %cst_125 : f32 to vector<2x32xf32>
    %683 = arith.addf %682, %681 : vector<2x32xf32>
    %684 = arith.divf %682, %683 : vector<2x32xf32>
    %685 = vector.extract_strided_slice %510 {offsets = [6, 0], sizes = [2, 32], strides = [1, 1]} : vector<16x32xf32> to vector<2x32xf32>
    %686 = vector.extract_strided_slice %676 {offsets = [0, 32], sizes = [2, 32], strides = [1, 1]} : vector<2x64xf32> to vector<2x32xf32>
    %687 = arith.mulf %684, %686 : vector<2x32xf32>
    %688 = arith.addf %685, %687 : vector<2x32xf32>
    %689 = math.tanh %688 : vector<2x32xf32>
    %690 = vector.extract_strided_slice %604 {offsets = [0, 3], sizes = [2, 1], strides = [1, 1]} : vector<2x8xf32> to vector<2x1xf32>
    %691 = vector.broadcast %690 : vector<2x1xf32> to vector<2x32xf32>
    %692 = arith.mulf %691, %689 : vector<2x32xf32>
    %cst_126 = arith.constant 1.000000e+00 : f32
    %693 = vector.broadcast %cst_126 : f32 to vector<2x1xf32>
    %694 = arith.subf %693, %690 : vector<2x1xf32>
    %695 = vector.broadcast %694 : vector<2x1xf32> to vector<2x32xf32>
    %696 = arith.mulf %695, %674 : vector<2x32xf32>
    %697 = arith.addf %692, %696 : vector<2x32xf32>
    %cst_127 = arith.constant dense<0.000000e+00> : vector<2x64xf32>
    %698 = tpu.matmul %697, %571, %cst_127 {dimension_numbers = #tpu.dot_dimension_numbers<[1], [0], [0], [1], [0, 0, 1, 1], [], []>} : vector<2x32xf32>, vector<32x64xf32>, vector<2x64xf32> -> vector<2x64xf32>
    %699 = arith.addf %698, %574 : vector<2x64xf32>
    %700 = vector.extract_strided_slice %505 {offsets = [8, 0], sizes = [2, 32], strides = [1, 1]} : vector<16x32xf32> to vector<2x32xf32>
    %701 = vector.extract_strided_slice %699 {offsets = [0, 0], sizes = [2, 32], strides = [1, 1]} : vector<2x64xf32> to vector<2x32xf32>
    %702 = arith.addf %700, %701 : vector<2x32xf32>
    %703 = arith.negf %702 : vector<2x32xf32>
    %704 = math.exp %703 : vector<2x32xf32>
    %cst_128 = arith.constant 1.000000e+00 : f32
    %705 = vector.broadcast %cst_128 : f32 to vector<2x32xf32>
    %706 = arith.addf %705, %704 : vector<2x32xf32>
    %707 = arith.divf %705, %706 : vector<2x32xf32>
    %708 = vector.extract_strided_slice %510 {offsets = [8, 0], sizes = [2, 32], strides = [1, 1]} : vector<16x32xf32> to vector<2x32xf32>
    %709 = vector.extract_strided_slice %699 {offsets = [0, 32], sizes = [2, 32], strides = [1, 1]} : vector<2x64xf32> to vector<2x32xf32>
    %710 = arith.mulf %707, %709 : vector<2x32xf32>
    %711 = arith.addf %708, %710 : vector<2x32xf32>
    %712 = math.tanh %711 : vector<2x32xf32>
    %713 = vector.extract_strided_slice %604 {offsets = [0, 4], sizes = [2, 1], strides = [1, 1]} : vector<2x8xf32> to vector<2x1xf32>
    %714 = vector.broadcast %713 : vector<2x1xf32> to vector<2x32xf32>
    %715 = arith.mulf %714, %712 : vector<2x32xf32>
    %cst_129 = arith.constant 1.000000e+00 : f32
    %716 = vector.broadcast %cst_129 : f32 to vector<2x1xf32>
    %717 = arith.subf %716, %713 : vector<2x1xf32>
    %718 = vector.broadcast %717 : vector<2x1xf32> to vector<2x32xf32>
    %719 = arith.mulf %718, %697 : vector<2x32xf32>
    %720 = arith.addf %715, %719 : vector<2x32xf32>
    %cst_130 = arith.constant dense<0.000000e+00> : vector<2x64xf32>
    %721 = tpu.matmul %720, %571, %cst_130 {dimension_numbers = #tpu.dot_dimension_numbers<[1], [0], [0], [1], [0, 0, 1, 1], [], []>} : vector<2x32xf32>, vector<32x64xf32>, vector<2x64xf32> -> vector<2x64xf32>
    %722 = arith.addf %721, %574 : vector<2x64xf32>
    %723 = vector.extract_strided_slice %505 {offsets = [10, 0], sizes = [2, 32], strides = [1, 1]} : vector<16x32xf32> to vector<2x32xf32>
    %724 = vector.extract_strided_slice %722 {offsets = [0, 0], sizes = [2, 32], strides = [1, 1]} : vector<2x64xf32> to vector<2x32xf32>
    %725 = arith.addf %723, %724 : vector<2x32xf32>
    %726 = arith.negf %725 : vector<2x32xf32>
    %727 = math.exp %726 : vector<2x32xf32>
    %cst_131 = arith.constant 1.000000e+00 : f32
    %728 = vector.broadcast %cst_131 : f32 to vector<2x32xf32>
    %729 = arith.addf %728, %727 : vector<2x32xf32>
    %730 = arith.divf %728, %729 : vector<2x32xf32>
    %731 = vector.extract_strided_slice %510 {offsets = [10, 0], sizes = [2, 32], strides = [1, 1]} : vector<16x32xf32> to vector<2x32xf32>
    %732 = vector.extract_strided_slice %722 {offsets = [0, 32], sizes = [2, 32], strides = [1, 1]} : vector<2x64xf32> to vector<2x32xf32>
    %733 = arith.mulf %730, %732 : vector<2x32xf32>
    %734 = arith.addf %731, %733 : vector<2x32xf32>
    %735 = math.tanh %734 : vector<2x32xf32>
    %736 = vector.extract_strided_slice %604 {offsets = [0, 5], sizes = [2, 1], strides = [1, 1]} : vector<2x8xf32> to vector<2x1xf32>
    %737 = vector.broadcast %736 : vector<2x1xf32> to vector<2x32xf32>
    %738 = arith.mulf %737, %735 : vector<2x32xf32>
    %cst_132 = arith.constant 1.000000e+00 : f32
    %739 = vector.broadcast %cst_132 : f32 to vector<2x1xf32>
    %740 = arith.subf %739, %736 : vector<2x1xf32>
    %741 = vector.broadcast %740 : vector<2x1xf32> to vector<2x32xf32>
    %742 = arith.mulf %741, %720 : vector<2x32xf32>
    %743 = arith.addf %738, %742 : vector<2x32xf32>
    %cst_133 = arith.constant dense<0.000000e+00> : vector<2x64xf32>
    %744 = tpu.matmul %743, %571, %cst_133 {dimension_numbers = #tpu.dot_dimension_numbers<[1], [0], [0], [1], [0, 0, 1, 1], [], []>} : vector<2x32xf32>, vector<32x64xf32>, vector<2x64xf32> -> vector<2x64xf32>
    %745 = arith.addf %744, %574 : vector<2x64xf32>
    %746 = vector.extract_strided_slice %505 {offsets = [12, 0], sizes = [2, 32], strides = [1, 1]} : vector<16x32xf32> to vector<2x32xf32>
    %747 = vector.extract_strided_slice %745 {offsets = [0, 0], sizes = [2, 32], strides = [1, 1]} : vector<2x64xf32> to vector<2x32xf32>
    %748 = arith.addf %746, %747 : vector<2x32xf32>
    %749 = arith.negf %748 : vector<2x32xf32>
    %750 = math.exp %749 : vector<2x32xf32>
    %cst_134 = arith.constant 1.000000e+00 : f32
    %751 = vector.broadcast %cst_134 : f32 to vector<2x32xf32>
    %752 = arith.addf %751, %750 : vector<2x32xf32>
    %753 = arith.divf %751, %752 : vector<2x32xf32>
    %754 = vector.extract_strided_slice %510 {offsets = [12, 0], sizes = [2, 32], strides = [1, 1]} : vector<16x32xf32> to vector<2x32xf32>
    %755 = vector.extract_strided_slice %745 {offsets = [0, 32], sizes = [2, 32], strides = [1, 1]} : vector<2x64xf32> to vector<2x32xf32>
    %756 = arith.mulf %753, %755 : vector<2x32xf32>
    %757 = arith.addf %754, %756 : vector<2x32xf32>
    %758 = math.tanh %757 : vector<2x32xf32>
    %759 = vector.extract_strided_slice %604 {offsets = [0, 6], sizes = [2, 1], strides = [1, 1]} : vector<2x8xf32> to vector<2x1xf32>
    %760 = vector.broadcast %759 : vector<2x1xf32> to vector<2x32xf32>
    %761 = arith.mulf %760, %758 : vector<2x32xf32>
    %cst_135 = arith.constant 1.000000e+00 : f32
    %762 = vector.broadcast %cst_135 : f32 to vector<2x1xf32>
    %763 = arith.subf %762, %759 : vector<2x1xf32>
    %764 = vector.broadcast %763 : vector<2x1xf32> to vector<2x32xf32>
    %765 = arith.mulf %764, %743 : vector<2x32xf32>
    %766 = arith.addf %761, %765 : vector<2x32xf32>
    %cst_136 = arith.constant dense<0.000000e+00> : vector<2x64xf32>
    %767 = tpu.matmul %766, %571, %cst_136 {dimension_numbers = #tpu.dot_dimension_numbers<[1], [0], [0], [1], [0, 0, 1, 1], [], []>} : vector<2x32xf32>, vector<32x64xf32>, vector<2x64xf32> -> vector<2x64xf32>
    %768 = arith.addf %767, %574 : vector<2x64xf32>
    %769 = vector.extract_strided_slice %505 {offsets = [14, 0], sizes = [2, 32], strides = [1, 1]} : vector<16x32xf32> to vector<2x32xf32>
    %770 = vector.extract_strided_slice %768 {offsets = [0, 0], sizes = [2, 32], strides = [1, 1]} : vector<2x64xf32> to vector<2x32xf32>
    %771 = arith.addf %769, %770 : vector<2x32xf32>
    %772 = arith.negf %771 : vector<2x32xf32>
    %773 = math.exp %772 : vector<2x32xf32>
    %cst_137 = arith.constant 1.000000e+00 : f32
    %774 = vector.broadcast %cst_137 : f32 to vector<2x32xf32>
    %775 = arith.addf %774, %773 : vector<2x32xf32>
    %776 = arith.divf %774, %775 : vector<2x32xf32>
    %777 = vector.extract_strided_slice %510 {offsets = [14, 0], sizes = [2, 32], strides = [1, 1]} : vector<16x32xf32> to vector<2x32xf32>
    %778 = vector.extract_strided_slice %768 {offsets = [0, 32], sizes = [2, 32], strides = [1, 1]} : vector<2x64xf32> to vector<2x32xf32>
    %779 = arith.mulf %776, %778 : vector<2x32xf32>
    %780 = arith.addf %777, %779 : vector<2x32xf32>
    %781 = math.tanh %780 : vector<2x32xf32>
    %782 = vector.extract_strided_slice %604 {offsets = [0, 7], sizes = [2, 1], strides = [1, 1]} : vector<2x8xf32> to vector<2x1xf32>
    %783 = vector.broadcast %782 : vector<2x1xf32> to vector<2x32xf32>
    %784 = arith.mulf %783, %781 : vector<2x32xf32>
    %cst_138 = arith.constant 1.000000e+00 : f32
    %785 = vector.broadcast %cst_138 : f32 to vector<2x1xf32>
    %786 = arith.subf %785, %782 : vector<2x1xf32>
    %787 = vector.broadcast %786 : vector<2x1xf32> to vector<2x32xf32>
    %788 = arith.mulf %787, %766 : vector<2x32xf32>
    %789 = arith.addf %784, %788 : vector<2x32xf32>
    %790 = tpu.concatenate %307, %789, %307 in 1 : vector<2x32xf32>, vector<2x32xf32>, vector<2x32xf32> -> vector<2x96xf32>
    %cst_139 = arith.constant dense<0.000000e+00> : vector<2x32xf32>
    %791 = tpu.matmul %790, %575, %cst_139 {dimension_numbers = #tpu.dot_dimension_numbers<[1], [0], [0], [1], [0, 0, 1, 1], [], []>} : vector<2x96xf32>, vector<96x32xf32>, vector<2x32xf32> -> vector<2x32xf32>
    %792 = vector.broadcast %576 : vector<1x32xf32> to vector<2x32xf32>
    %793 = arith.addf %791, %792 : vector<2x32xf32>
    %cst_140 = arith.constant 0.000000e+00 : f32
    %794 = vector.broadcast %cst_140 : f32 to vector<2x32xf32>
    %795 = arith.maximumf %793, %794 : vector<2x32xf32>
    %cst_141 = arith.constant dense<0.000000e+00> : vector<16x32xf32>
    %796 = tpu.matmul %531, %795, %cst_141 {dimension_numbers = #tpu.dot_dimension_numbers<[1], [0], [0], [1], [0, 0, 1, 1], [], []>} : vector<16x2xf32>, vector<2x32xf32>, vector<16x32xf32> -> vector<16x32xf32>
    %797 = arith.mulf %500, %566 : vector<16x32xf32>
    %798 = arith.mulf %500, %796 : vector<16x32xf32>
    %799 = arith.subf %500, %566 : vector<16x32xf32>
    %800 = math.absf %799 : vector<16x32xf32>
    %801 = arith.subf %500, %796 : vector<16x32xf32>
    %802 = math.absf %801 : vector<16x32xf32>
    %803 = tpu.concatenate %797, %798, %800, %802 in 1 : vector<16x32xf32>, vector<16x32xf32>, vector<16x32xf32>, vector<16x32xf32> -> vector<16x128xf32>
    %cst_142 = arith.constant dense<0.000000e+00> : vector<16x32xf32>
    %804 = tpu.matmul %803, %567, %cst_142 {dimension_numbers = #tpu.dot_dimension_numbers<[1], [0], [0], [1], [0, 0, 1, 1], [], []>} : vector<16x128xf32>, vector<128x32xf32>, vector<16x32xf32> -> vector<16x32xf32>
    %805 = vector.broadcast %568 : vector<1x32xf32> to vector<16x32xf32>
    %806 = arith.addf %804, %805 : vector<16x32xf32>
    %807 = math.tanh %806 : vector<16x32xf32>
    %cst_143 = arith.constant dense<0.000000e+00> : vector<16x1xf32>
    %808 = tpu.matmul %807, %569, %cst_143 {dimension_numbers = #tpu.dot_dimension_numbers<[1], [0], [0], [1], [0, 0, 1, 1], [], []>} : vector<16x32xf32>, vector<32x1xf32>, vector<16x1xf32> -> vector<16x1xf32>
    %809 = vector.broadcast %570 : vector<1x1xf32> to vector<16x1xf32>
    %810 = arith.addf %808, %809 : vector<16x1xf32>
    %811 = vector.broadcast %810 : vector<16x1xf32> to vector<16x8xf32>
    %812 = arith.mulf %811, %565 : vector<16x8xf32>
    %cst_144 = arith.constant dense<0.000000e+00> : vector<2x8xf32>
    %813 = tpu.matmul %552, %812, %cst_144 {dimension_numbers = #tpu.dot_dimension_numbers<[1], [0], [0], [1], [0, 0, 1, 1], [], []>} : vector<2x16xf32>, vector<16x8xf32>, vector<2x8xf32> -> vector<2x8xf32>
    %cst_145 = arith.constant dense<0xFF800000> : vector<2xf32>
    %814 = vector.multi_reduction <maximumf>, %813, %cst_145 [1] : vector<2x8xf32> to vector<2xf32>
    %815 = vector.shape_cast %814 : vector<2xf32> to vector<2x1xf32>
    %816 = vector.broadcast %815 : vector<2x1xf32> to vector<2x8xf32>
    %817 = arith.subf %813, %816 : vector<2x8xf32>
    %818 = math.exp %817 : vector<2x8xf32>
    %cst_146 = arith.constant dense<0.000000e+00> : vector<2xf32>
    %819 = vector.multi_reduction <add>, %818, %cst_146 [1] : vector<2x8xf32> to vector<2xf32>
    %820 = vector.shape_cast %819 : vector<2xf32> to vector<2x1xf32>
    %821 = tpu.reciprocal %820 {approx = true} : vector<2x1xf32> -> vector<2x1xf32>
    %822 = vector.broadcast %821 : vector<2x1xf32> to vector<2x8xf32>
    %823 = arith.mulf %818, %822 : vector<2x8xf32>
    %cst_147 = arith.constant 0.000000e+00 : f32
    %824 = vector.broadcast %cst_147 : f32 to vector<2x32xf32>
    %cst_148 = arith.constant dense<0.000000e+00> : vector<2x64xf32>
    %825 = tpu.matmul %824, %571, %cst_148 {dimension_numbers = #tpu.dot_dimension_numbers<[1], [0], [0], [1], [0, 0, 1, 1], [], []>} : vector<2x32xf32>, vector<32x64xf32>, vector<2x64xf32> -> vector<2x64xf32>
    %826 = arith.addf %825, %574 : vector<2x64xf32>
    %827 = vector.extract_strided_slice %505 {offsets = [0, 0], sizes = [2, 32], strides = [1, 1]} : vector<16x32xf32> to vector<2x32xf32>
    %828 = vector.extract_strided_slice %826 {offsets = [0, 0], sizes = [2, 32], strides = [1, 1]} : vector<2x64xf32> to vector<2x32xf32>
    %829 = arith.addf %827, %828 : vector<2x32xf32>
    %830 = arith.negf %829 : vector<2x32xf32>
    %831 = math.exp %830 : vector<2x32xf32>
    %cst_149 = arith.constant 1.000000e+00 : f32
    %832 = vector.broadcast %cst_149 : f32 to vector<2x32xf32>
    %833 = arith.addf %832, %831 : vector<2x32xf32>
    %834 = arith.divf %832, %833 : vector<2x32xf32>
    %835 = vector.extract_strided_slice %510 {offsets = [0, 0], sizes = [2, 32], strides = [1, 1]} : vector<16x32xf32> to vector<2x32xf32>
    %836 = vector.extract_strided_slice %826 {offsets = [0, 32], sizes = [2, 32], strides = [1, 1]} : vector<2x64xf32> to vector<2x32xf32>
    %837 = arith.mulf %834, %836 : vector<2x32xf32>
    %838 = arith.addf %835, %837 : vector<2x32xf32>
    %839 = math.tanh %838 : vector<2x32xf32>
    %840 = vector.extract_strided_slice %823 {offsets = [0, 0], sizes = [2, 1], strides = [1, 1]} : vector<2x8xf32> to vector<2x1xf32>
    %841 = vector.broadcast %840 : vector<2x1xf32> to vector<2x32xf32>
    %842 = arith.mulf %841, %839 : vector<2x32xf32>
    %cst_150 = arith.constant 1.000000e+00 : f32
    %843 = vector.broadcast %cst_150 : f32 to vector<2x1xf32>
    %844 = arith.subf %843, %840 : vector<2x1xf32>
    %845 = vector.broadcast %844 : vector<2x1xf32> to vector<2x32xf32>
    %846 = arith.mulf %845, %824 : vector<2x32xf32>
    %847 = arith.addf %842, %846 : vector<2x32xf32>
    %cst_151 = arith.constant dense<0.000000e+00> : vector<2x64xf32>
    %848 = tpu.matmul %847, %571, %cst_151 {dimension_numbers = #tpu.dot_dimension_numbers<[1], [0], [0], [1], [0, 0, 1, 1], [], []>} : vector<2x32xf32>, vector<32x64xf32>, vector<2x64xf32> -> vector<2x64xf32>
    %849 = arith.addf %848, %574 : vector<2x64xf32>
    %850 = vector.extract_strided_slice %505 {offsets = [2, 0], sizes = [2, 32], strides = [1, 1]} : vector<16x32xf32> to vector<2x32xf32>
    %851 = vector.extract_strided_slice %849 {offsets = [0, 0], sizes = [2, 32], strides = [1, 1]} : vector<2x64xf32> to vector<2x32xf32>
    %852 = arith.addf %850, %851 : vector<2x32xf32>
    %853 = arith.negf %852 : vector<2x32xf32>
    %854 = math.exp %853 : vector<2x32xf32>
    %cst_152 = arith.constant 1.000000e+00 : f32
    %855 = vector.broadcast %cst_152 : f32 to vector<2x32xf32>
    %856 = arith.addf %855, %854 : vector<2x32xf32>
    %857 = arith.divf %855, %856 : vector<2x32xf32>
    %858 = vector.extract_strided_slice %510 {offsets = [2, 0], sizes = [2, 32], strides = [1, 1]} : vector<16x32xf32> to vector<2x32xf32>
    %859 = vector.extract_strided_slice %849 {offsets = [0, 32], sizes = [2, 32], strides = [1, 1]} : vector<2x64xf32> to vector<2x32xf32>
    %860 = arith.mulf %857, %859 : vector<2x32xf32>
    %861 = arith.addf %858, %860 : vector<2x32xf32>
    %862 = math.tanh %861 : vector<2x32xf32>
    %863 = vector.extract_strided_slice %823 {offsets = [0, 1], sizes = [2, 1], strides = [1, 1]} : vector<2x8xf32> to vector<2x1xf32>
    %864 = vector.broadcast %863 : vector<2x1xf32> to vector<2x32xf32>
    %865 = arith.mulf %864, %862 : vector<2x32xf32>
    %cst_153 = arith.constant 1.000000e+00 : f32
    %866 = vector.broadcast %cst_153 : f32 to vector<2x1xf32>
    %867 = arith.subf %866, %863 : vector<2x1xf32>
    %868 = vector.broadcast %867 : vector<2x1xf32> to vector<2x32xf32>
    %869 = arith.mulf %868, %847 : vector<2x32xf32>
    %870 = arith.addf %865, %869 : vector<2x32xf32>
    %cst_154 = arith.constant dense<0.000000e+00> : vector<2x64xf32>
    %871 = tpu.matmul %870, %571, %cst_154 {dimension_numbers = #tpu.dot_dimension_numbers<[1], [0], [0], [1], [0, 0, 1, 1], [], []>} : vector<2x32xf32>, vector<32x64xf32>, vector<2x64xf32> -> vector<2x64xf32>
    %872 = arith.addf %871, %574 : vector<2x64xf32>
    %873 = vector.extract_strided_slice %505 {offsets = [4, 0], sizes = [2, 32], strides = [1, 1]} : vector<16x32xf32> to vector<2x32xf32>
    %874 = vector.extract_strided_slice %872 {offsets = [0, 0], sizes = [2, 32], strides = [1, 1]} : vector<2x64xf32> to vector<2x32xf32>
    %875 = arith.addf %873, %874 : vector<2x32xf32>
    %876 = arith.negf %875 : vector<2x32xf32>
    %877 = math.exp %876 : vector<2x32xf32>
    %cst_155 = arith.constant 1.000000e+00 : f32
    %878 = vector.broadcast %cst_155 : f32 to vector<2x32xf32>
    %879 = arith.addf %878, %877 : vector<2x32xf32>
    %880 = arith.divf %878, %879 : vector<2x32xf32>
    %881 = vector.extract_strided_slice %510 {offsets = [4, 0], sizes = [2, 32], strides = [1, 1]} : vector<16x32xf32> to vector<2x32xf32>
    %882 = vector.extract_strided_slice %872 {offsets = [0, 32], sizes = [2, 32], strides = [1, 1]} : vector<2x64xf32> to vector<2x32xf32>
    %883 = arith.mulf %880, %882 : vector<2x32xf32>
    %884 = arith.addf %881, %883 : vector<2x32xf32>
    %885 = math.tanh %884 : vector<2x32xf32>
    %886 = vector.extract_strided_slice %823 {offsets = [0, 2], sizes = [2, 1], strides = [1, 1]} : vector<2x8xf32> to vector<2x1xf32>
    %887 = vector.broadcast %886 : vector<2x1xf32> to vector<2x32xf32>
    %888 = arith.mulf %887, %885 : vector<2x32xf32>
    %cst_156 = arith.constant 1.000000e+00 : f32
    %889 = vector.broadcast %cst_156 : f32 to vector<2x1xf32>
    %890 = arith.subf %889, %886 : vector<2x1xf32>
    %891 = vector.broadcast %890 : vector<2x1xf32> to vector<2x32xf32>
    %892 = arith.mulf %891, %870 : vector<2x32xf32>
    %893 = arith.addf %888, %892 : vector<2x32xf32>
    %cst_157 = arith.constant dense<0.000000e+00> : vector<2x64xf32>
    %894 = tpu.matmul %893, %571, %cst_157 {dimension_numbers = #tpu.dot_dimension_numbers<[1], [0], [0], [1], [0, 0, 1, 1], [], []>} : vector<2x32xf32>, vector<32x64xf32>, vector<2x64xf32> -> vector<2x64xf32>
    %895 = arith.addf %894, %574 : vector<2x64xf32>
    %896 = vector.extract_strided_slice %505 {offsets = [6, 0], sizes = [2, 32], strides = [1, 1]} : vector<16x32xf32> to vector<2x32xf32>
    %897 = vector.extract_strided_slice %895 {offsets = [0, 0], sizes = [2, 32], strides = [1, 1]} : vector<2x64xf32> to vector<2x32xf32>
    %898 = arith.addf %896, %897 : vector<2x32xf32>
    %899 = arith.negf %898 : vector<2x32xf32>
    %900 = math.exp %899 : vector<2x32xf32>
    %cst_158 = arith.constant 1.000000e+00 : f32
    %901 = vector.broadcast %cst_158 : f32 to vector<2x32xf32>
    %902 = arith.addf %901, %900 : vector<2x32xf32>
    %903 = arith.divf %901, %902 : vector<2x32xf32>
    %904 = vector.extract_strided_slice %510 {offsets = [6, 0], sizes = [2, 32], strides = [1, 1]} : vector<16x32xf32> to vector<2x32xf32>
    %905 = vector.extract_strided_slice %895 {offsets = [0, 32], sizes = [2, 32], strides = [1, 1]} : vector<2x64xf32> to vector<2x32xf32>
    %906 = arith.mulf %903, %905 : vector<2x32xf32>
    %907 = arith.addf %904, %906 : vector<2x32xf32>
    %908 = math.tanh %907 : vector<2x32xf32>
    %909 = vector.extract_strided_slice %823 {offsets = [0, 3], sizes = [2, 1], strides = [1, 1]} : vector<2x8xf32> to vector<2x1xf32>
    %910 = vector.broadcast %909 : vector<2x1xf32> to vector<2x32xf32>
    %911 = arith.mulf %910, %908 : vector<2x32xf32>
    %cst_159 = arith.constant 1.000000e+00 : f32
    %912 = vector.broadcast %cst_159 : f32 to vector<2x1xf32>
    %913 = arith.subf %912, %909 : vector<2x1xf32>
    %914 = vector.broadcast %913 : vector<2x1xf32> to vector<2x32xf32>
    %915 = arith.mulf %914, %893 : vector<2x32xf32>
    %916 = arith.addf %911, %915 : vector<2x32xf32>
    %cst_160 = arith.constant dense<0.000000e+00> : vector<2x64xf32>
    %917 = tpu.matmul %916, %571, %cst_160 {dimension_numbers = #tpu.dot_dimension_numbers<[1], [0], [0], [1], [0, 0, 1, 1], [], []>} : vector<2x32xf32>, vector<32x64xf32>, vector<2x64xf32> -> vector<2x64xf32>
    %918 = arith.addf %917, %574 : vector<2x64xf32>
    %919 = vector.extract_strided_slice %505 {offsets = [8, 0], sizes = [2, 32], strides = [1, 1]} : vector<16x32xf32> to vector<2x32xf32>
    %920 = vector.extract_strided_slice %918 {offsets = [0, 0], sizes = [2, 32], strides = [1, 1]} : vector<2x64xf32> to vector<2x32xf32>
    %921 = arith.addf %919, %920 : vector<2x32xf32>
    %922 = arith.negf %921 : vector<2x32xf32>
    %923 = math.exp %922 : vector<2x32xf32>
    %cst_161 = arith.constant 1.000000e+00 : f32
    %924 = vector.broadcast %cst_161 : f32 to vector<2x32xf32>
    %925 = arith.addf %924, %923 : vector<2x32xf32>
    %926 = arith.divf %924, %925 : vector<2x32xf32>
    %927 = vector.extract_strided_slice %510 {offsets = [8, 0], sizes = [2, 32], strides = [1, 1]} : vector<16x32xf32> to vector<2x32xf32>
    %928 = vector.extract_strided_slice %918 {offsets = [0, 32], sizes = [2, 32], strides = [1, 1]} : vector<2x64xf32> to vector<2x32xf32>
    %929 = arith.mulf %926, %928 : vector<2x32xf32>
    %930 = arith.addf %927, %929 : vector<2x32xf32>
    %931 = math.tanh %930 : vector<2x32xf32>
    %932 = vector.extract_strided_slice %823 {offsets = [0, 4], sizes = [2, 1], strides = [1, 1]} : vector<2x8xf32> to vector<2x1xf32>
    %933 = vector.broadcast %932 : vector<2x1xf32> to vector<2x32xf32>
    %934 = arith.mulf %933, %931 : vector<2x32xf32>
    %cst_162 = arith.constant 1.000000e+00 : f32
    %935 = vector.broadcast %cst_162 : f32 to vector<2x1xf32>
    %936 = arith.subf %935, %932 : vector<2x1xf32>
    %937 = vector.broadcast %936 : vector<2x1xf32> to vector<2x32xf32>
    %938 = arith.mulf %937, %916 : vector<2x32xf32>
    %939 = arith.addf %934, %938 : vector<2x32xf32>
    %cst_163 = arith.constant dense<0.000000e+00> : vector<2x64xf32>
    %940 = tpu.matmul %939, %571, %cst_163 {dimension_numbers = #tpu.dot_dimension_numbers<[1], [0], [0], [1], [0, 0, 1, 1], [], []>} : vector<2x32xf32>, vector<32x64xf32>, vector<2x64xf32> -> vector<2x64xf32>
    %941 = arith.addf %940, %574 : vector<2x64xf32>
    %942 = vector.extract_strided_slice %505 {offsets = [10, 0], sizes = [2, 32], strides = [1, 1]} : vector<16x32xf32> to vector<2x32xf32>
    %943 = vector.extract_strided_slice %941 {offsets = [0, 0], sizes = [2, 32], strides = [1, 1]} : vector<2x64xf32> to vector<2x32xf32>
    %944 = arith.addf %942, %943 : vector<2x32xf32>
    %945 = arith.negf %944 : vector<2x32xf32>
    %946 = math.exp %945 : vector<2x32xf32>
    %cst_164 = arith.constant 1.000000e+00 : f32
    %947 = vector.broadcast %cst_164 : f32 to vector<2x32xf32>
    %948 = arith.addf %947, %946 : vector<2x32xf32>
    %949 = arith.divf %947, %948 : vector<2x32xf32>
    %950 = vector.extract_strided_slice %510 {offsets = [10, 0], sizes = [2, 32], strides = [1, 1]} : vector<16x32xf32> to vector<2x32xf32>
    %951 = vector.extract_strided_slice %941 {offsets = [0, 32], sizes = [2, 32], strides = [1, 1]} : vector<2x64xf32> to vector<2x32xf32>
    %952 = arith.mulf %949, %951 : vector<2x32xf32>
    %953 = arith.addf %950, %952 : vector<2x32xf32>
    %954 = math.tanh %953 : vector<2x32xf32>
    %955 = vector.extract_strided_slice %823 {offsets = [0, 5], sizes = [2, 1], strides = [1, 1]} : vector<2x8xf32> to vector<2x1xf32>
    %956 = vector.broadcast %955 : vector<2x1xf32> to vector<2x32xf32>
    %957 = arith.mulf %956, %954 : vector<2x32xf32>
    %cst_165 = arith.constant 1.000000e+00 : f32
    %958 = vector.broadcast %cst_165 : f32 to vector<2x1xf32>
    %959 = arith.subf %958, %955 : vector<2x1xf32>
    %960 = vector.broadcast %959 : vector<2x1xf32> to vector<2x32xf32>
    %961 = arith.mulf %960, %939 : vector<2x32xf32>
    %962 = arith.addf %957, %961 : vector<2x32xf32>
    %cst_166 = arith.constant dense<0.000000e+00> : vector<2x64xf32>
    %963 = tpu.matmul %962, %571, %cst_166 {dimension_numbers = #tpu.dot_dimension_numbers<[1], [0], [0], [1], [0, 0, 1, 1], [], []>} : vector<2x32xf32>, vector<32x64xf32>, vector<2x64xf32> -> vector<2x64xf32>
    %964 = arith.addf %963, %574 : vector<2x64xf32>
    %965 = vector.extract_strided_slice %505 {offsets = [12, 0], sizes = [2, 32], strides = [1, 1]} : vector<16x32xf32> to vector<2x32xf32>
    %966 = vector.extract_strided_slice %964 {offsets = [0, 0], sizes = [2, 32], strides = [1, 1]} : vector<2x64xf32> to vector<2x32xf32>
    %967 = arith.addf %965, %966 : vector<2x32xf32>
    %968 = arith.negf %967 : vector<2x32xf32>
    %969 = math.exp %968 : vector<2x32xf32>
    %cst_167 = arith.constant 1.000000e+00 : f32
    %970 = vector.broadcast %cst_167 : f32 to vector<2x32xf32>
    %971 = arith.addf %970, %969 : vector<2x32xf32>
    %972 = arith.divf %970, %971 : vector<2x32xf32>
    %973 = vector.extract_strided_slice %510 {offsets = [12, 0], sizes = [2, 32], strides = [1, 1]} : vector<16x32xf32> to vector<2x32xf32>
    %974 = vector.extract_strided_slice %964 {offsets = [0, 32], sizes = [2, 32], strides = [1, 1]} : vector<2x64xf32> to vector<2x32xf32>
    %975 = arith.mulf %972, %974 : vector<2x32xf32>
    %976 = arith.addf %973, %975 : vector<2x32xf32>
    %977 = math.tanh %976 : vector<2x32xf32>
    %978 = vector.extract_strided_slice %823 {offsets = [0, 6], sizes = [2, 1], strides = [1, 1]} : vector<2x8xf32> to vector<2x1xf32>
    %979 = vector.broadcast %978 : vector<2x1xf32> to vector<2x32xf32>
    %980 = arith.mulf %979, %977 : vector<2x32xf32>
    %cst_168 = arith.constant 1.000000e+00 : f32
    %981 = vector.broadcast %cst_168 : f32 to vector<2x1xf32>
    %982 = arith.subf %981, %978 : vector<2x1xf32>
    %983 = vector.broadcast %982 : vector<2x1xf32> to vector<2x32xf32>
    %984 = arith.mulf %983, %962 : vector<2x32xf32>
    %985 = arith.addf %980, %984 : vector<2x32xf32>
    %cst_169 = arith.constant dense<0.000000e+00> : vector<2x64xf32>
    %986 = tpu.matmul %985, %571, %cst_169 {dimension_numbers = #tpu.dot_dimension_numbers<[1], [0], [0], [1], [0, 0, 1, 1], [], []>} : vector<2x32xf32>, vector<32x64xf32>, vector<2x64xf32> -> vector<2x64xf32>
    %987 = arith.addf %986, %574 : vector<2x64xf32>
    %988 = vector.extract_strided_slice %505 {offsets = [14, 0], sizes = [2, 32], strides = [1, 1]} : vector<16x32xf32> to vector<2x32xf32>
    %989 = vector.extract_strided_slice %987 {offsets = [0, 0], sizes = [2, 32], strides = [1, 1]} : vector<2x64xf32> to vector<2x32xf32>
    %990 = arith.addf %988, %989 : vector<2x32xf32>
    %991 = arith.negf %990 : vector<2x32xf32>
    %992 = math.exp %991 : vector<2x32xf32>
    %cst_170 = arith.constant 1.000000e+00 : f32
    %993 = vector.broadcast %cst_170 : f32 to vector<2x32xf32>
    %994 = arith.addf %993, %992 : vector<2x32xf32>
    %995 = arith.divf %993, %994 : vector<2x32xf32>
    %996 = vector.extract_strided_slice %510 {offsets = [14, 0], sizes = [2, 32], strides = [1, 1]} : vector<16x32xf32> to vector<2x32xf32>
    %997 = vector.extract_strided_slice %987 {offsets = [0, 32], sizes = [2, 32], strides = [1, 1]} : vector<2x64xf32> to vector<2x32xf32>
    %998 = arith.mulf %995, %997 : vector<2x32xf32>
    %999 = arith.addf %996, %998 : vector<2x32xf32>
    %1000 = math.tanh %999 : vector<2x32xf32>
    %1001 = vector.extract_strided_slice %823 {offsets = [0, 7], sizes = [2, 1], strides = [1, 1]} : vector<2x8xf32> to vector<2x1xf32>
    %1002 = vector.broadcast %1001 : vector<2x1xf32> to vector<2x32xf32>
    %1003 = arith.mulf %1002, %1000 : vector<2x32xf32>
    %cst_171 = arith.constant 1.000000e+00 : f32
    %1004 = vector.broadcast %cst_171 : f32 to vector<2x1xf32>
    %1005 = arith.subf %1004, %1001 : vector<2x1xf32>
    %1006 = vector.broadcast %1005 : vector<2x1xf32> to vector<2x32xf32>
    %1007 = arith.mulf %1006, %985 : vector<2x32xf32>
    %1008 = arith.addf %1003, %1007 : vector<2x32xf32>
    %1009 = tpu.concatenate %795, %1008, %307 in 1 : vector<2x32xf32>, vector<2x32xf32>, vector<2x32xf32> -> vector<2x96xf32>
    %cst_172 = arith.constant dense<0.000000e+00> : vector<2x32xf32>
    %1010 = tpu.matmul %1009, %575, %cst_172 {dimension_numbers = #tpu.dot_dimension_numbers<[1], [0], [0], [1], [0, 0, 1, 1], [], []>} : vector<2x96xf32>, vector<96x32xf32>, vector<2x32xf32> -> vector<2x32xf32>
    %1011 = vector.broadcast %576 : vector<1x32xf32> to vector<2x32xf32>
    %1012 = arith.addf %1010, %1011 : vector<2x32xf32>
    %cst_173 = arith.constant 0.000000e+00 : f32
    %1013 = vector.broadcast %cst_173 : f32 to vector<2x32xf32>
    %1014 = arith.maximumf %1012, %1013 : vector<2x32xf32>
    %cst_174 = arith.constant dense<0.000000e+00> : vector<16x32xf32>
    %1015 = tpu.matmul %531, %1014, %cst_174 {dimension_numbers = #tpu.dot_dimension_numbers<[1], [0], [0], [1], [0, 0, 1, 1], [], []>} : vector<16x2xf32>, vector<2x32xf32>, vector<16x32xf32> -> vector<16x32xf32>
    %1016 = arith.mulf %500, %566 : vector<16x32xf32>
    %1017 = arith.mulf %500, %1015 : vector<16x32xf32>
    %1018 = arith.subf %500, %566 : vector<16x32xf32>
    %1019 = math.absf %1018 : vector<16x32xf32>
    %1020 = arith.subf %500, %1015 : vector<16x32xf32>
    %1021 = math.absf %1020 : vector<16x32xf32>
    %1022 = tpu.concatenate %1016, %1017, %1019, %1021 in 1 : vector<16x32xf32>, vector<16x32xf32>, vector<16x32xf32>, vector<16x32xf32> -> vector<16x128xf32>
    %cst_175 = arith.constant dense<0.000000e+00> : vector<16x32xf32>
    %1023 = tpu.matmul %1022, %567, %cst_175 {dimension_numbers = #tpu.dot_dimension_numbers<[1], [0], [0], [1], [0, 0, 1, 1], [], []>} : vector<16x128xf32>, vector<128x32xf32>, vector<16x32xf32> -> vector<16x32xf32>
    %1024 = vector.broadcast %568 : vector<1x32xf32> to vector<16x32xf32>
    %1025 = arith.addf %1023, %1024 : vector<16x32xf32>
    %1026 = math.tanh %1025 : vector<16x32xf32>
    %cst_176 = arith.constant dense<0.000000e+00> : vector<16x1xf32>
    %1027 = tpu.matmul %1026, %569, %cst_176 {dimension_numbers = #tpu.dot_dimension_numbers<[1], [0], [0], [1], [0, 0, 1, 1], [], []>} : vector<16x32xf32>, vector<32x1xf32>, vector<16x1xf32> -> vector<16x1xf32>
    %1028 = vector.broadcast %570 : vector<1x1xf32> to vector<16x1xf32>
    %1029 = arith.addf %1027, %1028 : vector<16x1xf32>
    %1030 = vector.broadcast %1029 : vector<16x1xf32> to vector<16x8xf32>
    %1031 = arith.mulf %1030, %565 : vector<16x8xf32>
    %cst_177 = arith.constant dense<0.000000e+00> : vector<2x8xf32>
    %1032 = tpu.matmul %552, %1031, %cst_177 {dimension_numbers = #tpu.dot_dimension_numbers<[1], [0], [0], [1], [0, 0, 1, 1], [], []>} : vector<2x16xf32>, vector<16x8xf32>, vector<2x8xf32> -> vector<2x8xf32>
    %cst_178 = arith.constant dense<0xFF800000> : vector<2xf32>
    %1033 = vector.multi_reduction <maximumf>, %1032, %cst_178 [1] : vector<2x8xf32> to vector<2xf32>
    %1034 = vector.shape_cast %1033 : vector<2xf32> to vector<2x1xf32>
    %1035 = vector.broadcast %1034 : vector<2x1xf32> to vector<2x8xf32>
    %1036 = arith.subf %1032, %1035 : vector<2x8xf32>
    %1037 = math.exp %1036 : vector<2x8xf32>
    %cst_179 = arith.constant dense<0.000000e+00> : vector<2xf32>
    %1038 = vector.multi_reduction <add>, %1037, %cst_179 [1] : vector<2x8xf32> to vector<2xf32>
    %1039 = vector.shape_cast %1038 : vector<2xf32> to vector<2x1xf32>
    %1040 = tpu.reciprocal %1039 {approx = true} : vector<2x1xf32> -> vector<2x1xf32>
    %1041 = vector.broadcast %1040 : vector<2x1xf32> to vector<2x8xf32>
    %1042 = arith.mulf %1037, %1041 : vector<2x8xf32>
    %cst_180 = arith.constant 0.000000e+00 : f32
    %1043 = vector.broadcast %cst_180 : f32 to vector<2x32xf32>
    %cst_181 = arith.constant dense<0.000000e+00> : vector<2x64xf32>
    %1044 = tpu.matmul %1043, %571, %cst_181 {dimension_numbers = #tpu.dot_dimension_numbers<[1], [0], [0], [1], [0, 0, 1, 1], [], []>} : vector<2x32xf32>, vector<32x64xf32>, vector<2x64xf32> -> vector<2x64xf32>
    %1045 = arith.addf %1044, %574 : vector<2x64xf32>
    %1046 = vector.extract_strided_slice %505 {offsets = [0, 0], sizes = [2, 32], strides = [1, 1]} : vector<16x32xf32> to vector<2x32xf32>
    %1047 = vector.extract_strided_slice %1045 {offsets = [0, 0], sizes = [2, 32], strides = [1, 1]} : vector<2x64xf32> to vector<2x32xf32>
    %1048 = arith.addf %1046, %1047 : vector<2x32xf32>
    %1049 = arith.negf %1048 : vector<2x32xf32>
    %1050 = math.exp %1049 : vector<2x32xf32>
    %cst_182 = arith.constant 1.000000e+00 : f32
    %1051 = vector.broadcast %cst_182 : f32 to vector<2x32xf32>
    %1052 = arith.addf %1051, %1050 : vector<2x32xf32>
    %1053 = arith.divf %1051, %1052 : vector<2x32xf32>
    %1054 = vector.extract_strided_slice %510 {offsets = [0, 0], sizes = [2, 32], strides = [1, 1]} : vector<16x32xf32> to vector<2x32xf32>
    %1055 = vector.extract_strided_slice %1045 {offsets = [0, 32], sizes = [2, 32], strides = [1, 1]} : vector<2x64xf32> to vector<2x32xf32>
    %1056 = arith.mulf %1053, %1055 : vector<2x32xf32>
    %1057 = arith.addf %1054, %1056 : vector<2x32xf32>
    %1058 = math.tanh %1057 : vector<2x32xf32>
    %1059 = vector.extract_strided_slice %1042 {offsets = [0, 0], sizes = [2, 1], strides = [1, 1]} : vector<2x8xf32> to vector<2x1xf32>
    %1060 = vector.broadcast %1059 : vector<2x1xf32> to vector<2x32xf32>
    %1061 = arith.mulf %1060, %1058 : vector<2x32xf32>
    %cst_183 = arith.constant 1.000000e+00 : f32
    %1062 = vector.broadcast %cst_183 : f32 to vector<2x1xf32>
    %1063 = arith.subf %1062, %1059 : vector<2x1xf32>
    %1064 = vector.broadcast %1063 : vector<2x1xf32> to vector<2x32xf32>
    %1065 = arith.mulf %1064, %1043 : vector<2x32xf32>
    %1066 = arith.addf %1061, %1065 : vector<2x32xf32>
    %cst_184 = arith.constant dense<0.000000e+00> : vector<2x64xf32>
    %1067 = tpu.matmul %1066, %571, %cst_184 {dimension_numbers = #tpu.dot_dimension_numbers<[1], [0], [0], [1], [0, 0, 1, 1], [], []>} : vector<2x32xf32>, vector<32x64xf32>, vector<2x64xf32> -> vector<2x64xf32>
    %1068 = arith.addf %1067, %574 : vector<2x64xf32>
    %1069 = vector.extract_strided_slice %505 {offsets = [2, 0], sizes = [2, 32], strides = [1, 1]} : vector<16x32xf32> to vector<2x32xf32>
    %1070 = vector.extract_strided_slice %1068 {offsets = [0, 0], sizes = [2, 32], strides = [1, 1]} : vector<2x64xf32> to vector<2x32xf32>
    %1071 = arith.addf %1069, %1070 : vector<2x32xf32>
    %1072 = arith.negf %1071 : vector<2x32xf32>
    %1073 = math.exp %1072 : vector<2x32xf32>
    %cst_185 = arith.constant 1.000000e+00 : f32
    %1074 = vector.broadcast %cst_185 : f32 to vector<2x32xf32>
    %1075 = arith.addf %1074, %1073 : vector<2x32xf32>
    %1076 = arith.divf %1074, %1075 : vector<2x32xf32>
    %1077 = vector.extract_strided_slice %510 {offsets = [2, 0], sizes = [2, 32], strides = [1, 1]} : vector<16x32xf32> to vector<2x32xf32>
    %1078 = vector.extract_strided_slice %1068 {offsets = [0, 32], sizes = [2, 32], strides = [1, 1]} : vector<2x64xf32> to vector<2x32xf32>
    %1079 = arith.mulf %1076, %1078 : vector<2x32xf32>
    %1080 = arith.addf %1077, %1079 : vector<2x32xf32>
    %1081 = math.tanh %1080 : vector<2x32xf32>
    %1082 = vector.extract_strided_slice %1042 {offsets = [0, 1], sizes = [2, 1], strides = [1, 1]} : vector<2x8xf32> to vector<2x1xf32>
    %1083 = vector.broadcast %1082 : vector<2x1xf32> to vector<2x32xf32>
    %1084 = arith.mulf %1083, %1081 : vector<2x32xf32>
    %cst_186 = arith.constant 1.000000e+00 : f32
    %1085 = vector.broadcast %cst_186 : f32 to vector<2x1xf32>
    %1086 = arith.subf %1085, %1082 : vector<2x1xf32>
    %1087 = vector.broadcast %1086 : vector<2x1xf32> to vector<2x32xf32>
    %1088 = arith.mulf %1087, %1066 : vector<2x32xf32>
    %1089 = arith.addf %1084, %1088 : vector<2x32xf32>
    %cst_187 = arith.constant dense<0.000000e+00> : vector<2x64xf32>
    %1090 = tpu.matmul %1089, %571, %cst_187 {dimension_numbers = #tpu.dot_dimension_numbers<[1], [0], [0], [1], [0, 0, 1, 1], [], []>} : vector<2x32xf32>, vector<32x64xf32>, vector<2x64xf32> -> vector<2x64xf32>
    %1091 = arith.addf %1090, %574 : vector<2x64xf32>
    %1092 = vector.extract_strided_slice %505 {offsets = [4, 0], sizes = [2, 32], strides = [1, 1]} : vector<16x32xf32> to vector<2x32xf32>
    %1093 = vector.extract_strided_slice %1091 {offsets = [0, 0], sizes = [2, 32], strides = [1, 1]} : vector<2x64xf32> to vector<2x32xf32>
    %1094 = arith.addf %1092, %1093 : vector<2x32xf32>
    %1095 = arith.negf %1094 : vector<2x32xf32>
    %1096 = math.exp %1095 : vector<2x32xf32>
    %cst_188 = arith.constant 1.000000e+00 : f32
    %1097 = vector.broadcast %cst_188 : f32 to vector<2x32xf32>
    %1098 = arith.addf %1097, %1096 : vector<2x32xf32>
    %1099 = arith.divf %1097, %1098 : vector<2x32xf32>
    %1100 = vector.extract_strided_slice %510 {offsets = [4, 0], sizes = [2, 32], strides = [1, 1]} : vector<16x32xf32> to vector<2x32xf32>
    %1101 = vector.extract_strided_slice %1091 {offsets = [0, 32], sizes = [2, 32], strides = [1, 1]} : vector<2x64xf32> to vector<2x32xf32>
    %1102 = arith.mulf %1099, %1101 : vector<2x32xf32>
    %1103 = arith.addf %1100, %1102 : vector<2x32xf32>
    %1104 = math.tanh %1103 : vector<2x32xf32>
    %1105 = vector.extract_strided_slice %1042 {offsets = [0, 2], sizes = [2, 1], strides = [1, 1]} : vector<2x8xf32> to vector<2x1xf32>
    %1106 = vector.broadcast %1105 : vector<2x1xf32> to vector<2x32xf32>
    %1107 = arith.mulf %1106, %1104 : vector<2x32xf32>
    %cst_189 = arith.constant 1.000000e+00 : f32
    %1108 = vector.broadcast %cst_189 : f32 to vector<2x1xf32>
    %1109 = arith.subf %1108, %1105 : vector<2x1xf32>
    %1110 = vector.broadcast %1109 : vector<2x1xf32> to vector<2x32xf32>
    %1111 = arith.mulf %1110, %1089 : vector<2x32xf32>
    %1112 = arith.addf %1107, %1111 : vector<2x32xf32>
    %cst_190 = arith.constant dense<0.000000e+00> : vector<2x64xf32>
    %1113 = tpu.matmul %1112, %571, %cst_190 {dimension_numbers = #tpu.dot_dimension_numbers<[1], [0], [0], [1], [0, 0, 1, 1], [], []>} : vector<2x32xf32>, vector<32x64xf32>, vector<2x64xf32> -> vector<2x64xf32>
    %1114 = arith.addf %1113, %574 : vector<2x64xf32>
    %1115 = vector.extract_strided_slice %505 {offsets = [6, 0], sizes = [2, 32], strides = [1, 1]} : vector<16x32xf32> to vector<2x32xf32>
    %1116 = vector.extract_strided_slice %1114 {offsets = [0, 0], sizes = [2, 32], strides = [1, 1]} : vector<2x64xf32> to vector<2x32xf32>
    %1117 = arith.addf %1115, %1116 : vector<2x32xf32>
    %1118 = arith.negf %1117 : vector<2x32xf32>
    %1119 = math.exp %1118 : vector<2x32xf32>
    %cst_191 = arith.constant 1.000000e+00 : f32
    %1120 = vector.broadcast %cst_191 : f32 to vector<2x32xf32>
    %1121 = arith.addf %1120, %1119 : vector<2x32xf32>
    %1122 = arith.divf %1120, %1121 : vector<2x32xf32>
    %1123 = vector.extract_strided_slice %510 {offsets = [6, 0], sizes = [2, 32], strides = [1, 1]} : vector<16x32xf32> to vector<2x32xf32>
    %1124 = vector.extract_strided_slice %1114 {offsets = [0, 32], sizes = [2, 32], strides = [1, 1]} : vector<2x64xf32> to vector<2x32xf32>
    %1125 = arith.mulf %1122, %1124 : vector<2x32xf32>
    %1126 = arith.addf %1123, %1125 : vector<2x32xf32>
    %1127 = math.tanh %1126 : vector<2x32xf32>
    %1128 = vector.extract_strided_slice %1042 {offsets = [0, 3], sizes = [2, 1], strides = [1, 1]} : vector<2x8xf32> to vector<2x1xf32>
    %1129 = vector.broadcast %1128 : vector<2x1xf32> to vector<2x32xf32>
    %1130 = arith.mulf %1129, %1127 : vector<2x32xf32>
    %cst_192 = arith.constant 1.000000e+00 : f32
    %1131 = vector.broadcast %cst_192 : f32 to vector<2x1xf32>
    %1132 = arith.subf %1131, %1128 : vector<2x1xf32>
    %1133 = vector.broadcast %1132 : vector<2x1xf32> to vector<2x32xf32>
    %1134 = arith.mulf %1133, %1112 : vector<2x32xf32>
    %1135 = arith.addf %1130, %1134 : vector<2x32xf32>
    %cst_193 = arith.constant dense<0.000000e+00> : vector<2x64xf32>
    %1136 = tpu.matmul %1135, %571, %cst_193 {dimension_numbers = #tpu.dot_dimension_numbers<[1], [0], [0], [1], [0, 0, 1, 1], [], []>} : vector<2x32xf32>, vector<32x64xf32>, vector<2x64xf32> -> vector<2x64xf32>
    %1137 = arith.addf %1136, %574 : vector<2x64xf32>
    %1138 = vector.extract_strided_slice %505 {offsets = [8, 0], sizes = [2, 32], strides = [1, 1]} : vector<16x32xf32> to vector<2x32xf32>
    %1139 = vector.extract_strided_slice %1137 {offsets = [0, 0], sizes = [2, 32], strides = [1, 1]} : vector<2x64xf32> to vector<2x32xf32>
    %1140 = arith.addf %1138, %1139 : vector<2x32xf32>
    %1141 = arith.negf %1140 : vector<2x32xf32>
    %1142 = math.exp %1141 : vector<2x32xf32>
    %cst_194 = arith.constant 1.000000e+00 : f32
    %1143 = vector.broadcast %cst_194 : f32 to vector<2x32xf32>
    %1144 = arith.addf %1143, %1142 : vector<2x32xf32>
    %1145 = arith.divf %1143, %1144 : vector<2x32xf32>
    %1146 = vector.extract_strided_slice %510 {offsets = [8, 0], sizes = [2, 32], strides = [1, 1]} : vector<16x32xf32> to vector<2x32xf32>
    %1147 = vector.extract_strided_slice %1137 {offsets = [0, 32], sizes = [2, 32], strides = [1, 1]} : vector<2x64xf32> to vector<2x32xf32>
    %1148 = arith.mulf %1145, %1147 : vector<2x32xf32>
    %1149 = arith.addf %1146, %1148 : vector<2x32xf32>
    %1150 = math.tanh %1149 : vector<2x32xf32>
    %1151 = vector.extract_strided_slice %1042 {offsets = [0, 4], sizes = [2, 1], strides = [1, 1]} : vector<2x8xf32> to vector<2x1xf32>
    %1152 = vector.broadcast %1151 : vector<2x1xf32> to vector<2x32xf32>
    %1153 = arith.mulf %1152, %1150 : vector<2x32xf32>
    %cst_195 = arith.constant 1.000000e+00 : f32
    %1154 = vector.broadcast %cst_195 : f32 to vector<2x1xf32>
    %1155 = arith.subf %1154, %1151 : vector<2x1xf32>
    %1156 = vector.broadcast %1155 : vector<2x1xf32> to vector<2x32xf32>
    %1157 = arith.mulf %1156, %1135 : vector<2x32xf32>
    %1158 = arith.addf %1153, %1157 : vector<2x32xf32>
    %cst_196 = arith.constant dense<0.000000e+00> : vector<2x64xf32>
    %1159 = tpu.matmul %1158, %571, %cst_196 {dimension_numbers = #tpu.dot_dimension_numbers<[1], [0], [0], [1], [0, 0, 1, 1], [], []>} : vector<2x32xf32>, vector<32x64xf32>, vector<2x64xf32> -> vector<2x64xf32>
    %1160 = arith.addf %1159, %574 : vector<2x64xf32>
    %1161 = vector.extract_strided_slice %505 {offsets = [10, 0], sizes = [2, 32], strides = [1, 1]} : vector<16x32xf32> to vector<2x32xf32>
    %1162 = vector.extract_strided_slice %1160 {offsets = [0, 0], sizes = [2, 32], strides = [1, 1]} : vector<2x64xf32> to vector<2x32xf32>
    %1163 = arith.addf %1161, %1162 : vector<2x32xf32>
    %1164 = arith.negf %1163 : vector<2x32xf32>
    %1165 = math.exp %1164 : vector<2x32xf32>
    %cst_197 = arith.constant 1.000000e+00 : f32
    %1166 = vector.broadcast %cst_197 : f32 to vector<2x32xf32>
    %1167 = arith.addf %1166, %1165 : vector<2x32xf32>
    %1168 = arith.divf %1166, %1167 : vector<2x32xf32>
    %1169 = vector.extract_strided_slice %510 {offsets = [10, 0], sizes = [2, 32], strides = [1, 1]} : vector<16x32xf32> to vector<2x32xf32>
    %1170 = vector.extract_strided_slice %1160 {offsets = [0, 32], sizes = [2, 32], strides = [1, 1]} : vector<2x64xf32> to vector<2x32xf32>
    %1171 = arith.mulf %1168, %1170 : vector<2x32xf32>
    %1172 = arith.addf %1169, %1171 : vector<2x32xf32>
    %1173 = math.tanh %1172 : vector<2x32xf32>
    %1174 = vector.extract_strided_slice %1042 {offsets = [0, 5], sizes = [2, 1], strides = [1, 1]} : vector<2x8xf32> to vector<2x1xf32>
    %1175 = vector.broadcast %1174 : vector<2x1xf32> to vector<2x32xf32>
    %1176 = arith.mulf %1175, %1173 : vector<2x32xf32>
    %cst_198 = arith.constant 1.000000e+00 : f32
    %1177 = vector.broadcast %cst_198 : f32 to vector<2x1xf32>
    %1178 = arith.subf %1177, %1174 : vector<2x1xf32>
    %1179 = vector.broadcast %1178 : vector<2x1xf32> to vector<2x32xf32>
    %1180 = arith.mulf %1179, %1158 : vector<2x32xf32>
    %1181 = arith.addf %1176, %1180 : vector<2x32xf32>
    %cst_199 = arith.constant dense<0.000000e+00> : vector<2x64xf32>
    %1182 = tpu.matmul %1181, %571, %cst_199 {dimension_numbers = #tpu.dot_dimension_numbers<[1], [0], [0], [1], [0, 0, 1, 1], [], []>} : vector<2x32xf32>, vector<32x64xf32>, vector<2x64xf32> -> vector<2x64xf32>
    %1183 = arith.addf %1182, %574 : vector<2x64xf32>
    %1184 = vector.extract_strided_slice %505 {offsets = [12, 0], sizes = [2, 32], strides = [1, 1]} : vector<16x32xf32> to vector<2x32xf32>
    %1185 = vector.extract_strided_slice %1183 {offsets = [0, 0], sizes = [2, 32], strides = [1, 1]} : vector<2x64xf32> to vector<2x32xf32>
    %1186 = arith.addf %1184, %1185 : vector<2x32xf32>
    %1187 = arith.negf %1186 : vector<2x32xf32>
    %1188 = math.exp %1187 : vector<2x32xf32>
    %cst_200 = arith.constant 1.000000e+00 : f32
    %1189 = vector.broadcast %cst_200 : f32 to vector<2x32xf32>
    %1190 = arith.addf %1189, %1188 : vector<2x32xf32>
    %1191 = arith.divf %1189, %1190 : vector<2x32xf32>
    %1192 = vector.extract_strided_slice %510 {offsets = [12, 0], sizes = [2, 32], strides = [1, 1]} : vector<16x32xf32> to vector<2x32xf32>
    %1193 = vector.extract_strided_slice %1183 {offsets = [0, 32], sizes = [2, 32], strides = [1, 1]} : vector<2x64xf32> to vector<2x32xf32>
    %1194 = arith.mulf %1191, %1193 : vector<2x32xf32>
    %1195 = arith.addf %1192, %1194 : vector<2x32xf32>
    %1196 = math.tanh %1195 : vector<2x32xf32>
    %1197 = vector.extract_strided_slice %1042 {offsets = [0, 6], sizes = [2, 1], strides = [1, 1]} : vector<2x8xf32> to vector<2x1xf32>
    %1198 = vector.broadcast %1197 : vector<2x1xf32> to vector<2x32xf32>
    %1199 = arith.mulf %1198, %1196 : vector<2x32xf32>
    %cst_201 = arith.constant 1.000000e+00 : f32
    %1200 = vector.broadcast %cst_201 : f32 to vector<2x1xf32>
    %1201 = arith.subf %1200, %1197 : vector<2x1xf32>
    %1202 = vector.broadcast %1201 : vector<2x1xf32> to vector<2x32xf32>
    %1203 = arith.mulf %1202, %1181 : vector<2x32xf32>
    %1204 = arith.addf %1199, %1203 : vector<2x32xf32>
    %cst_202 = arith.constant dense<0.000000e+00> : vector<2x64xf32>
    %1205 = tpu.matmul %1204, %571, %cst_202 {dimension_numbers = #tpu.dot_dimension_numbers<[1], [0], [0], [1], [0, 0, 1, 1], [], []>} : vector<2x32xf32>, vector<32x64xf32>, vector<2x64xf32> -> vector<2x64xf32>
    %1206 = arith.addf %1205, %574 : vector<2x64xf32>
    %1207 = vector.extract_strided_slice %505 {offsets = [14, 0], sizes = [2, 32], strides = [1, 1]} : vector<16x32xf32> to vector<2x32xf32>
    %1208 = vector.extract_strided_slice %1206 {offsets = [0, 0], sizes = [2, 32], strides = [1, 1]} : vector<2x64xf32> to vector<2x32xf32>
    %1209 = arith.addf %1207, %1208 : vector<2x32xf32>
    %1210 = arith.negf %1209 : vector<2x32xf32>
    %1211 = math.exp %1210 : vector<2x32xf32>
    %cst_203 = arith.constant 1.000000e+00 : f32
    %1212 = vector.broadcast %cst_203 : f32 to vector<2x32xf32>
    %1213 = arith.addf %1212, %1211 : vector<2x32xf32>
    %1214 = arith.divf %1212, %1213 : vector<2x32xf32>
    %1215 = vector.extract_strided_slice %510 {offsets = [14, 0], sizes = [2, 32], strides = [1, 1]} : vector<16x32xf32> to vector<2x32xf32>
    %1216 = vector.extract_strided_slice %1206 {offsets = [0, 32], sizes = [2, 32], strides = [1, 1]} : vector<2x64xf32> to vector<2x32xf32>
    %1217 = arith.mulf %1214, %1216 : vector<2x32xf32>
    %1218 = arith.addf %1215, %1217 : vector<2x32xf32>
    %1219 = math.tanh %1218 : vector<2x32xf32>
    %1220 = vector.extract_strided_slice %1042 {offsets = [0, 7], sizes = [2, 1], strides = [1, 1]} : vector<2x8xf32> to vector<2x1xf32>
    %1221 = vector.broadcast %1220 : vector<2x1xf32> to vector<2x32xf32>
    %1222 = arith.mulf %1221, %1219 : vector<2x32xf32>
    %cst_204 = arith.constant 1.000000e+00 : f32
    %1223 = vector.broadcast %cst_204 : f32 to vector<2x1xf32>
    %1224 = arith.subf %1223, %1220 : vector<2x1xf32>
    %1225 = vector.broadcast %1224 : vector<2x1xf32> to vector<2x32xf32>
    %1226 = arith.mulf %1225, %1204 : vector<2x32xf32>
    %1227 = arith.addf %1222, %1226 : vector<2x32xf32>
    %1228 = tpu.concatenate %1014, %1227, %307 in 1 : vector<2x32xf32>, vector<2x32xf32>, vector<2x32xf32> -> vector<2x96xf32>
    %cst_205 = arith.constant dense<0.000000e+00> : vector<2x32xf32>
    %1229 = tpu.matmul %1228, %575, %cst_205 {dimension_numbers = #tpu.dot_dimension_numbers<[1], [0], [0], [1], [0, 0, 1, 1], [], []>} : vector<2x96xf32>, vector<96x32xf32>, vector<2x32xf32> -> vector<2x32xf32>
    %1230 = vector.broadcast %576 : vector<1x32xf32> to vector<2x32xf32>
    %1231 = arith.addf %1229, %1230 : vector<2x32xf32>
    %cst_206 = arith.constant 0.000000e+00 : f32
    %1232 = vector.broadcast %cst_206 : f32 to vector<2x32xf32>
    %1233 = arith.maximumf %1231, %1232 : vector<2x32xf32>
    %1234 = tpu.concatenate %1233, %307 in 1 : vector<2x32xf32>, vector<2x32xf32> -> vector<2x64xf32>
    %c640 = arith.constant 640 : index
    %c0_207 = arith.constant 0 : index
    %1235 = vector.load %arg2[%c640, %c0_207] : memref<712x128xf32, #tpu.memory_space<vmem>>, vector<64x2xf32>
    %cst_208 = arith.constant dense<0.000000e+00> : vector<2x2xf32>
    %1236 = tpu.matmul %1234, %1235, %cst_208 {dimension_numbers = #tpu.dot_dimension_numbers<[1], [0], [0], [1], [0, 0, 1, 1], [], []>} : vector<2x64xf32>, vector<64x2xf32>, vector<2x2xf32> -> vector<2x2xf32>
    %c704 = arith.constant 704 : index
    %c0_209 = arith.constant 0 : index
    %1237 = vector.load %arg2[%c704, %c0_209] : memref<712x128xf32, #tpu.memory_space<vmem>>, vector<1x2xf32>
    %1238 = vector.broadcast %1237 : vector<1x2xf32> to vector<2x2xf32>
    %1239 = arith.addf %1236, %1238 : vector<2x2xf32>
    %c0_210 = arith.constant 0 : index
    %c0_211 = arith.constant 0 : index
    %1240 = vector.load %arg3[%c0_210, %c0_211] : memref<2x2xf32, #tpu.memory_space<vmem>>, vector<2x2xf32>
    tpu.vector_store %arg3[%c0_210, %c0_211], %1239 {strides = array<i32>} : memref<2x2xf32, #tpu.memory_space<vmem>>, vector<2x2xf32>,
    return
  }
}

</mosaic_0001>

<bundles_post_ra>
// kernel: tpu_custom_call.1
= control target key start
LH: loop header
LB: loop body
LE: loop exit
PB: predicated region body
PF: predicated region fallthrough
CT: control target
= control target key end

     0   :  { %8 = vsyncpa [#allocation3], 0  ;;  %s9952_s0 = inlined_call_operand.hbm [shape: f32[16,32], index: 0, kind: input, shape index: {}]   ;;  %s9953_s1 = inlined_call_operand.hbm [shape: f32[8,32], index: 1, kind: input, shape index: {}]   ;;  %s9954_s2 = inlined_call_operand.hbm [shape: f32[712,128], index: 2, kind: input, shape index: {}]   ;;  %s9955_s3 = inlined_call_operand.hbm [shape: f32[2,2], index: 3, kind: output, shape index: {}]  }
   0x1   :  { %9 = vsyncpa [#allocation6], 0 }
   0x2   :  { %10 = vsyncpa [#allocation4], 0  ;;  %s8721_s12 = smov [#allocation5]   ;;  %s8722_s14 = smov [#allocation2]  }
   0x3   :  { %s29_s13 = sshll.u32 %s8721_s12, 4  ;;  %s16_s15 = sshll.u32 %s8722_s14, 4  ;;  %s30_s13 = int_to_ptr.vmem [resolvable:$true] %s29_s13  ;;  %s8761_s15 = int_to_ptr.vmem [resolvable:$true] %s16_s15 }
   0x4   :  { %s8627_s18 = scalar_lea.hbm %s9953_s1, 128 }
   0x5   :  { %p8628_p0 = scmp.ne.s32.totalorder %s9953_s1, %s8627_s18  ;;  %p8631_p1 = scmp.lt.u32.totalorder %s8627_s18, %s9953_s1 }
   0x7   :  { %p8633_p2 = pnand %p8631_p1, %p8628_p0 }
   0x9   :  { %8636 = shalt.err (!%p8633_p2)
}
   0xa   :  { %s8637_s23 = scalar_lea.vmem %s30_s13, 128  ;;  %p8642_p4 = scmp.lt.s32.totalorder %s30_s13, %s30_s13 }
   0xb   :  { %p8638_p3 = scmp.ne.s32.totalorder %s30_s13, %s8637_s23  ;;  %p8643_p5 = scmp.lt.s32.totalorder %s8637_s23, %s8637_s23 }
   0xd   :  { %p8644_p6 = por %p8643_p5, %p8642_p4 }
   0xf   :  { %p8645_p7 = pnand %p8644_p6, %p8638_p3 }
  0x11   :  { %8648 = shalt.err (!%p8645_p7)
}
  0x12   :  { %32 = dma.hbm_to_vmem [thread:$0]  %s9953_s1, 128, %s30_s13, [#allocation6]  }
  0x13   :  { %s8649_s28 = scalar_lea.hbm %s9952_s0, 256 }
  0x14   :  { %p8650_p8 = scmp.ne.s32.totalorder %s9952_s0, %s8649_s28  ;;  %p8653_p9 = scmp.lt.u32.totalorder %s8649_s28, %s9952_s0 }
  0x16   :  { %p8655_p10 = pnand %p8653_p9, %p8650_p8 }
  0x18   :  { %8658 = shalt.err (!%p8655_p10)
}
  0x19   :  { %s8659_s6 = scalar_lea.vmem %s8761_s15, 256  ;;  %p8664_p12 = scmp.lt.s32.totalorder %s8761_s15, %s8761_s15 }
  0x1a   :  { %p8660_p11 = scmp.ne.s32.totalorder %s8761_s15, %s8659_s6  ;;  %p8665_p13 = scmp.lt.s32.totalorder %s8659_s6, %s8659_s6 }
  0x1c   :  { %p8666_p0 = por %p8665_p13, %p8664_p12 }
  0x1e   :  { %p8667_p1 = pnand %p8666_p0, %p8660_p11 }
  0x20   :  { %8670 = shalt.err (!%p8667_p1)
}
  0x21   :  { %s8723_s1 = smov 128   ;;  %s8724_s7 = smov 8  }
  0x22   :  { %22 = dma.hbm_to_vmem [thread:$0]  %s9952_s0, 256, %s8761_s15, [#allocation3], %s8723_s1, %s8723_s1, %s8724_s7  }
  0x23   :  { %s8725_s10 = smov [#allocation7]   ;;  %s8671_s14 = scalar_lea.hbm %s9954_s2, 11392 }
  0x24   :  { %s38_s11 = sshll.u32 %s8725_s10, 4  ;;  %p8672_p2 = scmp.ne.s32.totalorder %s9954_s2, %s8671_s14  ;;  %s39_s11 = int_to_ptr.vmem [resolvable:$true] %s38_s11 }
  0x25   :  { %p8675_p3 = scmp.lt.u32.totalorder %s8671_s14, %s9954_s2 }
  0x27   :  { %p8677_p4 = pnand %p8675_p3, %p8672_p2 }
  0x29   :  { %8680 = shalt.err (!%p8677_p4)
}
  0x2a   :  { %s8681_s20 = scalar_lea.vmem %s39_s11, 11392  ;;  %p8686_p6 = scmp.lt.s32.totalorder %s39_s11, %s39_s11 }
  0x2b   :  { %p8682_p5 = scmp.ne.s32.totalorder %s39_s11, %s8681_s20  ;;  %p8687_p7 = scmp.lt.s32.totalorder %s8681_s20, %s8681_s20 }
  0x2d   :  { %p8688_p8 = por %p8687_p7, %p8686_p6 }
  0x2f   :  { %p8689_p9 = pnand %p8688_p8, %p8682_p5 }
  0x31   :  { %8692 = shalt.err (!%p8689_p9)
}
  0x32   :  { %44 = dma.hbm_to_vmem [thread:$0]  %s9954_s2, 11392, %s39_s11, [#allocation6], %s8723_s1, %s8723_s1, %s8724_s7  }
  0x33   :  { %8715 = dma.done.wait [#allocation3], 256  }
  0x34   :  { %8716 = vsyncadd [#allocation3], 4294967040 }
  0x35   :  { %8717 = dma.done.wait [#allocation6], 11520  }
  0x36   :  { %8718 = vsyncadd [#allocation6], 4294955776  ;;  %v57_v0 = vld [vmem:[#allocation7] sm:$0xff]  ;;  %v58_v1 = vld [vmem:[#allocation7 + $0x8] sm:$0xff]  ;;  %vm66_vm0 = vcmask 261120   ;;  %v8726_v19 = vmov 0.0|0.0  }
  0x37   :  { %v148_v2 = vld [vmem:[#allocation7 + $0x50] sm:$0xff]  ;;  %v7766_v3 = vpack.c.bf16 %v58_v1, %v57_v0  ;;  %v149_v4 = vld [vmem:[#allocation7 + $0x58] sm:$0xff]  ;;  %v150_v9 = vld [vmem:[#allocation7 + $0x60] sm:$0xff]  ;;  %vm8727_vm1 = vmmov 0   ;;  %v8728_v29 = vmov 0.0   ;;  %s8729_s2 = smov 64  }
  0x38   :  { %v59_v5 = vld [vmem:[#allocation7 + $0x10] sm:$0xff]  ;;  %v60_v6 = vld [vmem:[#allocation7 + $0x18] sm:$0xff]  ;;  %v7774_v7 = vpack.c.bf16 %v149_v4, %v148_v2  ;;  %v151_v10 = vld [vmem:[#allocation7 + $0x68] sm:$0xff]  ;;  %s8730_s21 = smov 96   ;;  %vm2431_vm2 = vcmask 1041408   ;;  %vm2433_vm3 = vcmask 1043456  }
  0x39   :  { %v7770_v8 = vpack.c.bf16 %v60_v6, %v59_v5  ;;  %v54_v11 = vld [vmem:[#allocation2] sm:$0xff]  ;;  %7767 = vmatprep.subr.bf16.mxu0 %v7766_v3  ;;  %v7778_v12 = vpack.c.bf16 %v151_v10, %v150_v9  ;;  %v232_v13 = vld [vmem:[#allocation7 + $0xa0] sm:$0xff]  ;;  %v315_v16 = vld [vmem:[#allocation7 + $0x30] sm:$0xff]  ;;  %vm2435_vm4 = vcmask 1045504   ;;  %vm2684_vm6 = vcmask 15360   ;;  %s8731_s22 = smov 32  }
  0x3a   :  { %6983 = vmatprep.mubr.msk.f32.mxu0 %vm66_vm0, %v54_v11  ;;  %7775 = vmatprep.subr.bf16.mxu1 %v7774_v7  ;;  %v233_v14 = vld [vmem:[#allocation7 + $0xa8] sm:$0xff]  ;;  %v55_v17 = vld [vmem:[#allocation2 + $0x8] sm:$0xff]  ;;  %v235_v22 = vld [vmem:[#allocation7 + $0xb8] sm:$0xff]  ;;  %vm2850_vm8 = vcmask 523264   ;;  %vm2853_vm9 = vcmask 785408   ;;  %s8740_s23 = smov [#allocation8]  }
  0x3b   :  { %7769 = vmatpush3.bf16.msra.mxu0 %v7766_v3  ;;  %7777 = vmatpush3.bf16.msra.mxu1 %v7774_v7  ;;  %v314_v15 = vld [vmem:[#allocation7 + $0x28] sm:$0xff]  ;;  %v7783_v18 = vpack.c.bf16 %v233_v14, %v232_v13  ;;  %v234_v21 = vld [vmem:[#allocation7 + $0xb0] sm:$0xff]  ;;  %v316_v23 = vld [vmem:[#allocation7 + $0x38] sm:$0xff]  ;;  %s6459_s24 = sshll.u32 %s8740_s23, 4  ;;  %s6460_s24 = int_to_ptr.vmem [resolvable:$true] %s6459_s24 }
  0x3c   :  { %7771 = vmatprep.subr.bf16.mxu0 %v7770_v8  ;;  %7779 = vmatprep.subr.bf16.mxu1 %v7778_v12  ;;  %v8807_v20 = vpack.c.bf16 %v315_v16, %v314_v15  ;;  %v317_v24 = vld [vmem:[#allocation7 + $0x40] sm:$0xff]  ;;  %v7786_v25 = vpack.c.bf16 %v235_v22, %v234_v21  ;;  %v323_v27 = vld [vmem:[#allocation7 + $0x78] sm:$0xff]  ;;  %v332_v30 = vld [vmem:[#allocation7 + $0xc8] sm:$0xff]  ;;  %s8693_s25 = scalar_lea.vmem %s6460_s24, 32  ;;  %p8698_p11 = scmp.lt.s32.totalorder %s6460_s24, %s6460_s24 }
  0x3d   :  { %6994 = vmatprep.mubr.msk.f32.mxu1 %vm66_vm0, %v54_v11  ;;  %v8814_v26 = vpack.c.bf16 %v317_v24, %v316_v23  ;;  %v324_v28 = vld [vmem:[#allocation7 + $0x80] sm:$0xff]  ;;  %v333_v31 = vld [vmem:[#allocation7 + $0xd0] sm:$0xff]  ;;  %v56_v32 = vld [vmem:[#allocation5] sm:$0xff]  ;;  %p8694_p10 = scmp.ne.s32.totalorder %s6460_s24, %s8693_s25  ;;  %p8699_p12 = scmp.lt.s32.totalorder %s8693_s25, %s8693_s25 }
  0x3e   :  { %v8821_v33 = vpack.c.bf16 %v324_v28, %v323_v27  ;;  %v8825_v34 = vpack.c.bf16 %v333_v31, %v332_v30  ;;  %v325_v35 = vld [vmem:[#allocation7 + $0x88] sm:$0xff]  ;;  %v326_v36 = vld [vmem:[#allocation7 + $0x90] sm:$0xff]  ;;  %v334_v37 = vld [vmem:[#allocation7 + $0xd8] sm:$0xff] }
  0x3f   :  { %7773 = vmatpush3.bf16.msra.mxu0 %v7770_v8  ;;  %7781 = vmatpush3.bf16.msra.mxu1 %v7778_v12  ;;  %v335_v38 = vld [vmem:[#allocation7 + $0xe0] sm:$0xff]  ;;  %v8831_v39 = vpack.c.bf16 %v326_v36, %v325_v35  ;;  %v6472_v43 = vld [vmem:[#allocation7 + $0x70] ss:$0 sm:$0xff]  ;;  %v8866_v53 = vld [vmem:[#allocation7 + $0x98] ss:$0 sm:$0xff]  ;;  %p8700_p13 = por %p8699_p12, %p8698_p11 }
  0x40   :  { %7782 = vmatprep.subr.bf16.mxu0 %v8726_v19  ;;  %7788 = vmatprep.subr.bf16.mxu1 %v8726_v19  ;;  %v8835_v40 = vpack.c.bf16 %v335_v38, %v334_v37  ;;  %v6469_v41 = vld [vmem:[#allocation7 + $0x20] ss:$0 sm:$0xff]  ;;  %v8869_v60 = vld [vmem:[#allocation7 + $0x48] ss:$0 sm:$0xff] }
  0x41   :  { %v8889_v36 = vld [vmem:[#allocation7 + $0xe8] ss:$0 sm:$0xff]  ;;  %p8701_p0 = pnand %p8700_p13, %p8694_p10 }
  0x42   :  { %6984 = vmatmul.mubr.msk.f32.vlgmr.msra.gmra.mrb[0].mxu0 %vm66_vm0, %v55_v17  ;;  %6995 = vmatmul.mubr.msk.f32.vlgmr.msra.gmra.mrb[0].mxu1 %vm66_vm0, %v55_v17 }
  0x43   :  { %7784 = vmatpush3.bf16.msra.mxu0 %v7783_v18  ;;  %7790 = vmatpush3.bf16.msra.mxu1 %v8807_v20 }
  0x44   :  { %7785 = vmatprep.subr.bf16.mxu0 %v8726_v19  ;;  %7791 = vmatprep.subr.bf16.mxu1 %v8726_v19 }
  0x45   :  { %7005 = vmatprep.mubr.msk.f32.mxu0 %vm8727_vm1, %v8728_v29  ;;  %7016 = vmatprep.mubr.msk.f32.mxu1 %vm8727_vm1, %v8728_v29 }
  0x47   :  { %7787 = vmatpush3.bf16.msra.mxu0 %v7786_v25  ;;  %7793 = vmatpush3.bf16.msra.mxu1 %v8814_v26 }
  0x48   :  { %7794 = vmatprep.subr.bf16.mxu0 %v8726_v19  ;;  %7800 = vmatprep.subr.bf16.mxu1 %v8726_v19 }
  0x4a   :  { %7006 = vmatmul.mubr.msk.f32.vlgmr.msra.gmra.mrb[2].mxu0 %vm66_vm0, %v56_v32  ;;  %7017 = vmatmul.mubr.f32.vlgmr.msra.gmra.mrb[2].mxu1 %v8728_v29 }
  0x4b   :  { %7796 = vmatpush3.bf16.msra.mxu0 %v8821_v33  ;;  %7802 = vmatpush3.bf16.msra.mxu1 %v8825_v34 }
  0x4c   :  { %7797 = vmatprep.subr.bf16.mxu0 %v8726_v19  ;;  %7803 = vmatprep.subr.bf16.mxu1 %v8726_v19 }
  0x4d   :  { %7027 = vmatprep.mubr.msk.f32.mxu0 %vm8727_vm1, %v8728_v29  ;;  %7038 = vmatprep.mubr.msk.f32.mxu1 %vm8727_vm1, %v8728_v29 }
  0x4f   :  { %7799 = vmatpush3.bf16.msra.mxu0 %v8831_v39  ;;  %7805 = vmatpush3.bf16.msra.mxu1 %v8835_v40 }
  0x50   :  { %7806 = vmatprep.subr.bf16.mxu0 %v8726_v19  ;;  %7812 = vmatprep.subr.bf16.mxu1 %v8726_v19 }
  0x52   :  { %7028 = vmatmul.mubr.f32.vlgmr.msra.gmra.mrb[4].mxu0 %v8728_v29  ;;  %7039 = vmatmul.mubr.f32.vlgmr.msra.gmra.mrb[4].mxu1 %v8728_v29 }
  0x53   :  { %7808 = vmatpush3.bf16.msra.mxu0 %v8807_v20  ;;  %7814 = vmatpush3.bf16.msra.mxu1 %v8821_v33 }
  0x54   :  { %7809 = vmatprep.subr.bf16.mxu0 %v8726_v19  ;;  %7815 = vmatprep.subr.bf16.mxu1 %v8726_v19 }
  0x55   :  { %7060 = vmatprep.mubr.msk.f32.mxu1 %vm8727_vm1, %v8728_v29  ;;  %7049 = vmatprep.mubr.msk.f32.mxu0 %vm8727_vm1, %v8728_v29 }
  0x57   :  { %7811 = vmatpush3.bf16.msra.mxu0 %v8814_v26  ;;  %7817 = vmatpush3.bf16.msra.mxu1 %v8831_v39 }
  0x58   :  { %7818 = vmatprep.subr.bf16.mxu0 %v8726_v19  ;;  %7824 = vmatprep.subr.bf16.mxu1 %v8726_v19 }
 0x115   :  { %v6985_v42 = vpop.f32.mrb[0].mxu0  ;;  %v6996_v46 = vpop.f32.mrb[0].mxu1 }
 0x116   :  { %v8860_v44 = vadd.f32 %v6985_v42, %v6469_v41  ;;  %v139_v45 = vpop.f32.mrb[1].mxu0  ;;  %v223_v47 = vpop.f32.mrb[1].mxu1  ;;  %v8874_v62 = vadd.f32 %v6996_v46, %v6472_v43 }
 0x117   :  { %v8862_v48 = vadd.f32 %v6472_v43, %v223_v47  ;;  %v8877_v0 = vadd.f32 %v6469_v41, %v139_v45  ;;  %v6475_v43 = vld [vmem:[#allocation7 + $0xc0] ss:$0 sm:$0xff] }
 0x11d   :  { %v8864_v49 = vpop.f32.mrb[2].mxu0  ;;  %v410_v50 = vpop.f32.mrb[2].mxu1 }
 0x11e   :  { %v7007_v51 = vpop.f32.mrb[3].mxu0  ;;  %v7018_v52 = vpop.f32.mrb[3].mxu1  ;;  %v411_v61 = vadd.f32 %v8869_v60, %v410_v50  ;;  %v8913_v45 = vadd.f32 %v6475_v43, %v8864_v49 }
 0x120   :  { %v414_v1 = vadd.f32 %v411_v61, %v8877_v0 }
 0x122   :  { %v6480_v3 = vmul.f32 -1.442695, %v414_v1 }
 0x125   :  { %v506_v54 = vpop.f32.mrb[4].mxu0  ;;  %v604_v56 = vpop.f32.mrb[4].mxu1 }
 0x126   :  { %v507_v55 = vadd.f32 %v8866_v53, %v506_v54  ;;  %v7029_v57 = vpop.f32.mrb[5].mxu0  ;;  %v7040_v58 = vpop.f32.mrb[5].mxu1  ;;  %v605_v38 = vadd.f32 %v8889_v36, %v604_v56 }
 0x128   :  { %v511_v59 = vrot.slane %v507_v55, 2  ;;  %v608_v46 = vadd.f32 %v605_v38, %v8913_v45 }
 0x12a   :  { %520 = vrot.lane.b32.xlu0 %v511_v59, %s8729_s2  ;;  %v513_v63 = vadd.f32 %v511_v59, %v8874_v62  ;;  %v6482_v47 = vmul.f32 -1.442695, %v608_v46 }
 0x12c   :  { %v6481_v2 = vmul.f32 -1.442695, %v513_v63 }
 0x12e   :  { %422 = vrot.lane.b32.xlu0 %v411_v61, %s8729_s2  ;;  %8344 = vpow2.f32 %v6481_v2 }
 0x12f   :  { %8346 = vpow2.f32 %v6480_v3 }
 0x138   :  { %v8345_v4 = vpop.eup %8344 }
 0x139   :  { %v517_v5 = vadd.f32 1.0, %v8345_v4  ;;  %v8347_v6 = vpop.eup %8346 }
 0x13a   :  { %v418_v7 = vadd.f32 1.0, %v8347_v6 }
 0x13b   :  { %8348 = vrcp.f32 %v517_v5 }
 0x13c   :  { %8350 = vrcp.f32 %v418_v7 }
 0x145   :  { %v8349_v8 = vpop.eup %8348 }
 0x146   :  { %v8351_v11 = vpop.eup %8350  ;;  %v530_v22 = vsub.f32 1.0, %v8349_v8  ;;  %v536_v24 = vmul.f32 0.0, %v8349_v8 }
 0x147   :  { %v432_v28 = vsub.f32 1.0, %v8351_v11  ;;  %v438_v31 = vmul.f32 0.0, %v8351_v11 }
 0x19c   :  { %v521_v9 = vpop.permute.xlu0 %520 }
 0x19d   :  { %v523_v10 = vmul.f32 %v8349_v8, %v521_v9 }
 0x19f   :  { %525 = vrot.lane.b32.xlu1 %v523_v10, %s8729_s2 }
 0x1a0   :  { %v423_v12 = vpop.permute.xlu0 %422 }
 0x1a1   :  { %v425_v13 = vmul.f32 %v8351_v11, %v423_v12 }
 0x1a3   :  { %427 = vrot.lane.b32.xlu1 %v425_v13, %s8729_s2 }
 0x211   :  { %v526_v14 = vpop.permute.xlu1 %525 }
 0x212   :  { %v528_v15 = vadd.f32 %v526_v14, %v8874_v62 }
 0x214   :  { %8352 = vtanh.f32 %v528_v15 }
 0x215   :  { %v428_v16 = vpop.permute.xlu1 %427 }
 0x216   :  { %v430_v17 = vadd.f32 %v428_v16, %v8877_v0 }
 0x218   :  { %8354 = vtanh.f32 %v430_v17 }
 0x219   :  { %8356 = vpow2.f32 %v6482_v47 }
 0x21e   :  { %v8353_v18 = vpop.eup %8352 }
 0x21f   :  { %532 = vrot.lane.b32.xlu0 %v8353_v18, %s8730_s21 }
 0x222   :  { %v8355_v21 = vpop.eup %8354 }
 0x223   :  { %434 = vrot.lane.b32.xlu1 %v8355_v21, %s8730_s21  ;;  %v8357_v50 = vpop.eup %8356 }
 0x224   :  { %v612_v51 = vadd.f32 1.0, %v8357_v50 }
 0x226   :  { %8358 = vrcp.f32 %v612_v51 }
 0x230   :  { %v8359_v49 = vpop.eup %8358 }
 0x291   :  { %v533_v23 = vpop.permute.xlu0 %532 }
 0x292   :  { %v535_v25 = vmul.f32 %v533_v23, %v530_v22 }
 0x294   :  { %v8886_v27 = vadd.f32 %v536_v24, %v535_v25 }
 0x295   :  { %v435_v30 = vpop.permute.xlu1 %434 }
 0x296   :  { %v437_v32 = vmul.f32 %v435_v30, %v432_v28  ;;  %v740_v35 = vrot.slane %v8886_v27, 6  ;;  %v626_v28 = vsub.f32 1.0, %v8359_v49 }
 0x298   :  { %v8891_v37 = vadd.f32 %v438_v31, %v437_v32  ;;  %741 = vrot.lane.b32.xlu0 %v740_v35, %s8730_s21  ;;  %v632_v32 = vmul.f32 0.0, %v8359_v49 }
 0x29a   :  { %635 = vrot.lane.b32.xlu1 %v8891_v37, %s8730_s21  ;;  %v735_v51 = vrot.slane %v8891_v37, 6 }
 0x29c   :  { %616 = vrot.lane.b32.xlu0 %v605_v38, %s8729_s2 }
 0x30a   :  { %v742_v41 = vpop.permute.xlu0 %741 }
 0x30b   :  { %7061 = vmatmul.mubr.msk.f32.vlgmr.msra.gmra.mrb[6].mxu1 %vm66_vm0, %v742_v41 }
 0x30c   :  { %v636_v42 = vpop.permute.xlu1 %635  ;;  %7826 = vmatpush3.bf16.msra.mxu1 %v8807_v20  ;;  %7082 = vmatprep.mubr.msk.f32.mxu1 %vm8727_vm1, %v8728_v29 }
 0x30d   :  { %7050 = vmatmul.mubr.msk.f32.vlgmr.msra.gmra.mrb[6].mxu0 %vm66_vm0, %v636_v42  ;;  %7827 = vmatprep.subr.bf16.mxu1 %v8726_v19  ;;  %v841_v42 = vrot.slane %v8886_v27, 2 }
 0x30e   :  { %7820 = vmatpush3.bf16.msra.mxu0 %v8825_v34  ;;  %7071 = vmatprep.mubr.msk.f32.mxu0 %vm8727_vm1, %v8728_v29  ;;  %v617_v61 = vpop.permute.xlu0 %616 }
 0x30f   :  { %7821 = vmatprep.subr.bf16.mxu0 %v8726_v19  ;;  %v619_v1 = vmul.f32 %v8359_v49, %v617_v61 }
 0x310   :  { %7829 = vmatpush3.bf16.msra.mxu1 %v8814_v26 }
 0x311   :  { %7836 = vmatprep.subr.bf16.mxu1 %v8726_v19 }
 0x312   :  { %7823 = vmatpush3.bf16.msra.mxu0 %v8835_v40 }
 0x313   :  { %7830 = vmatprep.subr.bf16.mxu0 %v8726_v19 }
 0x3de   :  { %v811_v52 = vpop.f32.mrb[6].mxu1 }
 0x3df   :  { %v812_v54 = vadd.f32 %v8866_v53, %v811_v52  ;;  %v7062_v55 = vpop.f32.mrb[7].mxu1 }
 0x3e0   :  { %v705_v56 = vpop.f32.mrb[6].mxu0 }
 0x3e1   :  { %v816_v57 = vrot.slane %v812_v54, 4  ;;  %v706_v58 = vadd.f32 %v8869_v60, %v705_v56  ;;  %v7051_v59 = vpop.f32.mrb[7].mxu0 }
 0x3e3   :  { %v710_v63 = vrot.slane %v706_v58, 6  ;;  %825 = vrot.lane.b32.xlu1 %v816_v57, %s8729_s2  ;;  %v818_v2 = vadd.f32 %v816_v57, %v8874_v62 }
 0x3e5   :  { %719 = vrot.lane.b32.xlu0 %v710_v63, %s8729_s2  ;;  %v712_v3 = vadd.f32 %v710_v63, %v8877_v0  ;;  %v6486_v4 = vmul.f32 -1.442695, %v818_v2 }
 0x3e7   :  { %621 = vrot.lane.b32.xlu1 %v619_v1, %s8729_s2  ;;  %v6484_v5 = vmul.f32 -1.442695, %v712_v3  ;;  %8360 = vpow2.f32 %v6486_v4 }
 0x3e9   :  { %8362 = vpow2.f32 %v6484_v5 }
 0x3f1   :  { %v8361_v6 = vpop.eup %8360 }
 0x3f2   :  { %v822_v8 = vadd.f32 1.0, %v8361_v6 }
 0x3f3   :  { %v8363_v7 = vpop.eup %8362 }
 0x3f4   :  { %v716_v9 = vadd.f32 1.0, %v8363_v7  ;;  %8364 = vrcp.f32 %v822_v8 }
 0x3f6   :  { %8366 = vrcp.f32 %v716_v9 }
 0x3fe   :  { %v8365_v10 = vpop.eup %8364 }
 0x3ff   :  { %v835_v41 = vsub.f32 1.0, %v8365_v10  ;;  %v843_v46 = vmul.f32 %v8365_v10, %v841_v42 }
 0x400   :  { %v8367_v13 = vpop.eup %8366 }
 0x401   :  { %v729_v50 = vsub.f32 1.0, %v8367_v13  ;;  %v737_v56 = vmul.f32 %v8367_v13, %v735_v51 }
 0x455   :  { %v826_v11 = vpop.permute.xlu1 %825 }
 0x456   :  { %v828_v12 = vmul.f32 %v8365_v10, %v826_v11 }
 0x457   :  { %v720_v14 = vpop.permute.xlu0 %719 }
 0x458   :  { %v722_v15 = vmul.f32 %v8367_v13, %v720_v14  ;;  %830 = vrot.lane.b32.xlu0 %v828_v12, %s8729_s2 }
 0x459   :  { %v622_v16 = vpop.permute.xlu1 %621 }
 0x45a   :  { %v624_v17 = vadd.f32 %v622_v16, %v8913_v45  ;;  %724 = vrot.lane.b32.xlu1 %v722_v15, %s8729_s2 }
 0x45c   :  { %8368 = vtanh.f32 %v624_v17 }
 0x466   :  { %v8369_v18 = vpop.eup %8368 }
 0x467   :  { %628 = vrot.lane.b32.xlu0 %v8369_v18, %s8730_s21 }
 0x4ca   :  { %v831_v21 = vpop.permute.xlu0 %830 }
 0x4cb   :  { %v833_v22 = vadd.f32 %v831_v21, %v8874_v62 }
 0x4cc   :  { %v725_v23 = vpop.permute.xlu1 %724 }
 0x4cd   :  { %8370 = vtanh.f32 %v833_v22  ;;  %v727_v24 = vadd.f32 %v725_v23, %v8877_v0 }
 0x4cf   :  { %8372 = vtanh.f32 %v727_v24 }
 0x4d7   :  { %v8371_v25 = vpop.eup %8370 }
 0x4d8   :  { %837 = vrot.lane.b32.xlu1 %v8371_v25, %s8730_s21 }
 0x4d9   :  { %v8373_v30 = vpop.eup %8372  ;;  %v629_v31 = vpop.permute.xlu0 %628 }
 0x4da   :  { %v631_v35 = vmul.f32 %v629_v31, %v626_v28  ;;  %731 = vrot.lane.b32.xlu0 %v8373_v30, %s8730_s21 }
 0x4dc   :  { %v8931_v38 = vadd.f32 %v632_v32, %v631_v35 }
 0x4de   :  { %846 = vrot.lane.b32.xlu1 %v8931_v38, %s8730_s21 }
 0x54a   :  { %v838_v43 = vpop.permute.xlu1 %837 }
 0x54b   :  { %v840_v47 = vmul.f32 %v838_v43, %v835_v41 }
 0x54c   :  { %v732_v52 = vpop.permute.xlu0 %731 }
 0x54d   :  { %v8937_v54 = vadd.f32 %v843_v46, %v840_v47  ;;  %v734_v55 = vmul.f32 %v732_v52, %v729_v50 }
 0x54f   :  { %v8939_v57 = vadd.f32 %v737_v56, %v734_v55  ;;  %v1057_v58 = vrot.slane %v8937_v54, 4 }
 0x550   :  { %v847_v59 = vpop.permute.xlu1 %846 }
 0x551   :  { %1058 = vrot.lane.b32.xlu0 %v1057_v58, %s8730_s21  ;;  %7072 = vmatmul.mubr.msk.f32.vlgmr.msra.gmra.mrb[8].mxu0 %vm66_vm0, %v847_v59  ;;  %v951_v61 = vrot.slane %v8939_v57, 2 }
 0x552   :  { %7832 = vmatpush3.bf16.msra.mxu0 %v8821_v33  ;;  %7093 = vmatprep.mubr.msk.f32.mxu0 %vm8727_vm1, %v8728_v29 }
 0x553   :  { %952 = vrot.lane.b32.xlu1 %v951_v61, %s8730_s21  ;;  %7833 = vmatprep.subr.bf16.mxu0 %v8726_v19 }
 0x556   :  { %7835 = vmatpush3.bf16.msra.mxu0 %v8831_v39 }
 0x557   :  { %7842 = vmatprep.subr.bf16.mxu0 %v8726_v19 }
 0x5c3   :  { %v1059_v63 = vpop.permute.xlu0 %1058 }
 0x5c4   :  { %7094 = vmatmul.mubr.msk.f32.vlgmr.msra.gmra.mrb[10].mxu0 %vm66_vm0, %v1059_v63  ;;  %v946_v63 = vrot.slane %v8931_v38, 6 }
 0x5c5   :  { %v953_v49 = vpop.permute.xlu1 %952  ;;  %7844 = vmatpush3.bf16.msra.mxu0 %v8807_v20  ;;  %7115 = vmatprep.mubr.msk.f32.mxu0 %vm8727_vm1, %v8728_v29 }
 0x5c6   :  { %7083 = vmatmul.mubr.msk.f32.vlgmr.msra.gmra.mrb[8].mxu1 %vm66_vm0, %v953_v49  ;;  %7845 = vmatprep.subr.bf16.mxu0 %v8726_v19 }
 0x5c7   :  { %7838 = vmatpush3.bf16.msra.mxu1 %v8825_v34  ;;  %7104 = vmatprep.mubr.msk.f32.mxu1 %vm8727_vm1, %v8728_v29 }
 0x5c8   :  { %7839 = vmatprep.subr.bf16.mxu1 %v8726_v19 }
 0x5c9   :  { %7847 = vmatpush3.bf16.msra.mxu0 %v8814_v26 }
 0x5ca   :  { %7854 = vmatprep.subr.bf16.mxu0 %v8726_v19 }
 0x5cb   :  { %7841 = vmatpush3.bf16.msra.mxu1 %v8835_v40 }
 0x5cc   :  { %7848 = vmatprep.subr.bf16.mxu1 %v8726_v19 }
 0x624   :  { %v916_v1 = vpop.f32.mrb[8].mxu0 }
 0x625   :  { %v917_v2 = vadd.f32 %v8889_v36, %v916_v1  ;;  %v7073_v3 = vpop.f32.mrb[9].mxu0 }
 0x627   :  { %v921_v4 = vrot.slane %v917_v2, 6 }
 0x629   :  { %930 = vrot.lane.b32.xlu0 %v921_v4, %s8729_s2  ;;  %v923_v5 = vadd.f32 %v921_v4, %v8913_v45 }
 0x62b   :  { %v6488_v6 = vmul.f32 -1.442695, %v923_v5 }
 0x62d   :  { %8374 = vpow2.f32 %v6488_v6 }
 0x637   :  { %v8375_v7 = vpop.eup %8374 }
 0x638   :  { %v927_v8 = vadd.f32 1.0, %v8375_v7 }
 0x63a   :  { %8376 = vrcp.f32 %v927_v8  ;;  %v1158_v8 = vrot.slane %v8937_v54, 2 }
 0x644   :  { %v8377_v18 = vpop.eup %8376 }
 0x645   :  { %v940_v49 = vsub.f32 1.0, %v8377_v18  ;;  %v948_v3 = vmul.f32 %v8377_v18, %v946_v63 }
 0x697   :  { %v1128_v9 = vpop.f32.mrb[10].mxu0 }
 0x698   :  { %v1129_v10 = vadd.f32 %v8866_v53, %v1128_v9  ;;  %v7095_v11 = vpop.f32.mrb[11].mxu0 }
 0x699   :  { %v1022_v12 = vpop.f32.mrb[8].mxu1 }
 0x69a   :  { %v1133_v13 = vrot.slane %v1129_v10, 6  ;;  %v1023_v14 = vadd.f32 %v8869_v60, %v1022_v12  ;;  %v7084_v15 = vpop.f32.mrb[9].mxu1  ;;  %v1052_v12 = vrot.slane %v8939_v57, 6 }
 0x69b   :  { %v931_v16 = vpop.permute.xlu0 %930 }
 0x69c   :  { %v1027_v17 = vrot.slane %v1023_v14, 4  ;;  %1142 = vrot.lane.b32.xlu1 %v1133_v13, %s8729_s2  ;;  %v933_v21 = vmul.f32 %v8377_v18, %v931_v16  ;;  %v1135_v22 = vadd.f32 %v1133_v13, %v8874_v62 }
 0x69e   :  { %1036 = vrot.lane.b32.xlu0 %v1027_v17, %s8729_s2  ;;  %v1029_v23 = vadd.f32 %v1027_v17, %v8877_v0  ;;  %v6492_v24 = vmul.f32 -1.442695, %v1135_v22 }
 0x6a0   :  { %935 = vrot.lane.b32.xlu1 %v933_v21, %s8729_s2  ;;  %v6490_v25 = vmul.f32 -1.442695, %v1029_v23  ;;  %8378 = vpow2.f32 %v6492_v24 }
 0x6a2   :  { %8380 = vpow2.f32 %v6490_v25 }
 0x6aa   :  { %v8379_v28 = vpop.eup %8378 }
 0x6ab   :  { %v1139_v31 = vadd.f32 1.0, %v8379_v28 }
 0x6ac   :  { %v8381_v30 = vpop.eup %8380 }
 0x6ad   :  { %v1033_v32 = vadd.f32 1.0, %v8381_v30  ;;  %8382 = vrcp.f32 %v1139_v31 }
 0x6af   :  { %8384 = vrcp.f32 %v1033_v32 }
 0x6b7   :  { %v8383_v35 = vpop.eup %8382 }
 0x6b8   :  { %v1152_v7 = vsub.f32 1.0, %v8383_v35  ;;  %v1160_v38 = vmul.f32 %v8383_v35, %v1158_v8 }
 0x6b9   :  { %v8385_v43 = vpop.eup %8384 }
 0x6ba   :  { %v1046_v11 = vsub.f32 1.0, %v8385_v43  ;;  %v1054_v15 = vmul.f32 %v8385_v43, %v1052_v12 }
 0x70e   :  { %v1143_v41 = vpop.permute.xlu1 %1142 }
 0x70f   :  { %v1145_v42 = vmul.f32 %v8383_v35, %v1143_v41 }
 0x710   :  { %v1037_v46 = vpop.permute.xlu0 %1036 }
 0x711   :  { %v1039_v47 = vmul.f32 %v8385_v43, %v1037_v46  ;;  %1147 = vrot.lane.b32.xlu0 %v1145_v42, %s8729_s2 }
 0x712   :  { %v936_v50 = vpop.permute.xlu1 %935 }
 0x713   :  { %v938_v51 = vadd.f32 %v936_v50, %v8913_v45  ;;  %1041 = vrot.lane.b32.xlu1 %v1039_v47, %s8729_s2 }
 0x715   :  { %8386 = vtanh.f32 %v938_v51 }
 0x71f   :  { %v8387_v52 = vpop.eup %8386 }
 0x720   :  { %942 = vrot.lane.b32.xlu0 %v8387_v52, %s8730_s21 }
 0x783   :  { %v1148_v55 = vpop.permute.xlu0 %1147 }
 0x784   :  { %v1150_v56 = vadd.f32 %v1148_v55, %v8874_v62 }
 0x785   :  { %v1042_v58 = vpop.permute.xlu1 %1041 }
 0x786   :  { %8388 = vtanh.f32 %v1150_v56  ;;  %v1044_v59 = vadd.f32 %v1042_v58, %v8877_v0 }
 0x788   :  { %8390 = vtanh.f32 %v1044_v59 }
 0x790   :  { %v8389_v61 = vpop.eup %8388 }
 0x791   :  { %1154 = vrot.lane.b32.xlu1 %v8389_v61, %s8730_s21 }
 0x792   :  { %v8391_v1 = vpop.eup %8390  ;;  %v943_v2 = vpop.permute.xlu0 %942 }
 0x793   :  { %v945_v4 = vmul.f32 %v943_v2, %v940_v49  ;;  %1048 = vrot.lane.b32.xlu0 %v8391_v1, %s8730_s21 }
 0x795   :  { %v8985_v5 = vadd.f32 %v948_v3, %v945_v4 }
 0x797   :  { %v1163_v6 = vrot.slane %v8985_v5, 2 }
 0x799   :  { %1164 = vrot.lane.b32.xlu1 %v1163_v6, %s8730_s21 }
 0x803   :  { %v1155_v9 = vpop.permute.xlu1 %1154 }
 0x804   :  { %v1157_v10 = vmul.f32 %v1155_v9, %v1152_v7 }
 0x805   :  { %v1049_v13 = vpop.permute.xlu0 %1048 }
 0x806   :  { %v8991_v14 = vadd.f32 %v1160_v38, %v1157_v10  ;;  %v1051_v16 = vmul.f32 %v1049_v13, %v1046_v11 }
 0x808   :  { %v8993_v17 = vadd.f32 %v1054_v15, %v1051_v16  ;;  %v1375_v18 = vrot.slane %v8991_v14, 2 }
 0x80a   :  { %1376 = vrot.lane.b32.xlu0 %v1375_v18, %s8730_s21  ;;  %v1269_v21 = vrot.slane %v8993_v17, 4 }
 0x80b   :  { %v1165_v22 = vpop.permute.xlu1 %1164 }
 0x80c   :  { %1270 = vrot.lane.b32.xlu1 %v1269_v21, %s8730_s21  ;;  %7105 = vmatmul.mubr.msk.f32.vlgmr.msra.gmra.mrb[10].mxu1 %vm66_vm0, %v1165_v22  ;;  %v1264_v22 = vrot.slane %v8985_v5, 6 }
 0x80d   :  { %7850 = vmatpush3.bf16.msra.mxu1 %v8821_v33  ;;  %7126 = vmatprep.mubr.msk.f32.mxu1 %vm8727_vm1, %v8728_v29 }
 0x80e   :  { %7851 = vmatprep.subr.bf16.mxu1 %v8726_v19 }
 0x811   :  { %7853 = vmatpush3.bf16.msra.mxu1 %v8831_v39 }
 0x812   :  { %7860 = vmatprep.subr.bf16.mxu1 %v8726_v19 }
 0x87c   :  { %v1377_v23 = vpop.permute.xlu0 %1376 }
 0x87d   :  { %7127 = vmatmul.mubr.msk.f32.vlgmr.msra.gmra.mrb[12].mxu1 %vm66_vm0, %v1377_v23 }
 0x87e   :  { %v1271_v24 = vpop.permute.xlu1 %1270  ;;  %7862 = vmatpush3.bf16.msra.mxu1 %v8807_v20  ;;  %7148 = vmatprep.mubr.msk.f32.mxu1 %vm8727_vm1, %v8728_v29 }
 0x87f   :  { %7116 = vmatmul.mubr.msk.f32.vlgmr.msra.gmra.mrb[12].mxu0 %vm66_vm0, %v1271_v24  ;;  %7863 = vmatprep.subr.bf16.mxu1 %v8726_v19 }
 0x880   :  { %7856 = vmatpush3.bf16.msra.mxu0 %v8825_v34  ;;  %7137 = vmatprep.mubr.msk.f32.mxu0 %vm8727_vm1, %v8728_v29 }
 0x881   :  { %7857 = vmatprep.subr.bf16.mxu0 %v8726_v19 }
 0x882   :  { %7865 = vmatpush3.bf16.msra.mxu1 %v8814_v26 }
 0x883   :  { %7872 = vmatprep.subr.bf16.mxu1 %v8726_v19 }
 0x884   :  { %7859 = vmatpush3.bf16.msra.mxu0 %v8835_v40 }
 0x885   :  { %7866 = vmatprep.subr.bf16.mxu0 %v8726_v19 }
 0x8df   :  { %v1234_v25 = vpop.f32.mrb[10].mxu1 }
 0x8e0   :  { %v1235_v28 = vadd.f32 %v8889_v36, %v1234_v25  ;;  %v7106_v30 = vpop.f32.mrb[11].mxu1 }
 0x8e2   :  { %v1239_v31 = vrot.slane %v1235_v28, 4 }
 0x8e4   :  { %1248 = vrot.lane.b32.xlu0 %v1239_v31, %s8729_s2  ;;  %v1241_v34 = vadd.f32 %v1239_v31, %v8913_v45 }
 0x8e6   :  { %v6494_v32 = vmul.f32 -1.442695, %v1241_v34 }
 0x8e8   :  { %8392 = vpow2.f32 %v6494_v32 }
 0x8f2   :  { %v8393_v35 = vpop.eup %8392 }
 0x8f3   :  { %v1245_v41 = vadd.f32 1.0, %v8393_v35 }
 0x8f5   :  { %8394 = vrcp.f32 %v1245_v41 }
 0x8ff   :  { %v8395_v51 = vpop.eup %8394 }
 0x900   :  { %v1258_v23 = vsub.f32 1.0, %v8395_v51  ;;  %v1266_v28 = vmul.f32 %v8395_v51, %v1264_v22 }
 0x950   :  { %v1446_v42 = vpop.f32.mrb[12].mxu1 }
 0x951   :  { %v1447_v43 = vadd.f32 %v8866_v53, %v1446_v42  ;;  %v7128_v40 = vpop.f32.mrb[13].mxu1  ;;  %v1370_v42 = vrot.slane %v8993_v17, 6 }
 0x952   :  { %v1340_v46 = vpop.f32.mrb[12].mxu0 }
 0x953   :  { %v1341_v47 = vadd.f32 %v8869_v60, %v1340_v46  ;;  %1458 = vrot.lane.b32.xlu1 %v1447_v43, %s8729_s2  ;;  %v7117_v36 = vpop.f32.mrb[13].mxu0  ;;  %v1450_v56 = vadd.f32 %v1447_v43, %v8874_v62 }
 0x955   :  { %v1345_v50 = vrot.slane %v1341_v47, 2  ;;  %v6498_v58 = vmul.f32 -1.442695, %v1450_v56 }
 0x956   :  { %v1249_v52 = vpop.permute.xlu0 %1248 }
 0x957   :  { %v1251_v55 = vmul.f32 %v8395_v51, %v1249_v52  ;;  %1354 = vrot.lane.b32.xlu0 %v1345_v50, %s8729_s2  ;;  %v1347_v59 = vadd.f32 %v1345_v50, %v8877_v0  ;;  %8396 = vpow2.f32 %v6498_v58 }
 0x959   :  { %1253 = vrot.lane.b32.xlu1 %v1251_v55, %s8729_s2  ;;  %v6496_v61 = vmul.f32 -1.442695, %v1347_v59 }
 0x95b   :  { %8398 = vpow2.f32 %v6496_v61 }
 0x961   :  { %v8397_v63 = vpop.eup %8396 }
 0x962   :  { %v1454_v49 = vadd.f32 1.0, %v8397_v63 }
 0x964   :  { %8400 = vrcp.f32 %v1454_v49 }
 0x965   :  { %v8399_v1 = vpop.eup %8398 }
 0x966   :  { %v1351_v2 = vadd.f32 1.0, %v8399_v1 }
 0x968   :  { %8402 = vrcp.f32 %v1351_v2 }
 0x96e   :  { %v8401_v3 = vpop.eup %8400 }
 0x96f   :  { %v1475_v32 = vmul.f32 %v8401_v3, %v1375_v18 }
 0x972   :  { %v8403_v7 = vpop.eup %8402 }
 0x973   :  { %v1364_v41 = vsub.f32 1.0, %v8403_v7  ;;  %v1372_v40 = vmul.f32 %v8403_v7, %v1370_v42 }
 0x9c5   :  { %v1459_v4 = vpop.permute.xlu1 %1458 }
 0x9c6   :  { %v1461_v6 = vmul.f32 %v8401_v3, %v1459_v4 }
 0x9c8   :  { %1463 = vrot.lane.b32.xlu0 %v1461_v6, %s8729_s2 }
 0x9c9   :  { %v1355_v8 = vpop.permute.xlu0 %1354 }
 0x9ca   :  { %v1357_v9 = vmul.f32 %v8403_v7, %v1355_v8 }
 0x9cb   :  { %v1254_v38 = vpop.permute.xlu1 %1253 }
 0x9cc   :  { %v1256_v10 = vadd.f32 %v1254_v38, %v8913_v45  ;;  %1359 = vrot.lane.b32.xlu1 %v1357_v9, %s8729_s2 }
 0x9ce   :  { %8404 = vtanh.f32 %v1256_v10 }
 0x9d8   :  { %v8405_v11 = vpop.eup %8404 }
 0x9d9   :  { %1260 = vrot.lane.b32.xlu0 %v8405_v11, %s8730_s21 }
 0xa3a   :  { %v1464_v12 = vpop.permute.xlu0 %1463 }
 0xa3b   :  { %v1466_v13 = vadd.f32 %v1464_v12, %v8874_v62 }
 0xa3d   :  { %8406 = vtanh.f32 %v1466_v13 }
 0xa3e   :  { %v1360_v15 = vpop.permute.xlu1 %1359 }
 0xa3f   :  { %v1362_v16 = vadd.f32 %v1360_v15, %v8877_v0  ;;  %v1468_v0 = vsub.f32 1.0, %v8401_v3 }
 0xa41   :  { %8408 = vtanh.f32 %v1362_v16 }
 0xa47   :  { %v8407_v21 = vpop.eup %8406 }
 0xa48   :  { %1470 = vrot.lane.b32.xlu1 %v8407_v21, %s8730_s21 }
 0xa4b   :  { %v8409_v24 = vpop.eup %8408  ;;  %v1261_v25 = vpop.permute.xlu0 %1260 }
 0xa4c   :  { %v1263_v30 = vmul.f32 %v1261_v25, %v1258_v23  ;;  %1366 = vrot.lane.b32.xlu0 %v8409_v24, %s8730_s21 }
 0xa4e   :  { %v9041_v31 = vadd.f32 %v1266_v28, %v1263_v30 }
 0xa50   :  { %v1478_v62 = vrot.slane %v9041_v31, 4 }
 0xa52   :  { %1479 = vrot.lane.b32.xlu1 %v1478_v62, %s8730_s21 }
 0xaba   :  { %v1471_v34 = vpop.permute.xlu1 %1470 }
 0xabb   :  { %v1473_v35 = vmul.f32 %v1471_v34, %v1468_v0 }
 0xabd   :  { %v9047_v5 = vadd.f32 %v1475_v32, %v1473_v35 }
 0xabe   :  { %v1367_v43 = vpop.permute.xlu0 %1366 }
 0xabf   :  { %v1369_v46 = vmul.f32 %v1367_v43, %v1364_v41  ;;  %1687 = vrot.lane.b32.xlu0 %v9047_v5, %s8730_s21  ;;  %v1787_v62 = vrot.slane %v9047_v5, 2 }
 0xac1   :  { %v9052_v47 = vadd.f32 %v1372_v40, %v1369_v46 }
 0xac3   :  { %v1584_v36 = vrot.slane %v9052_v47, 6 }
 0xac4   :  { %v1480_v50 = vpop.permute.xlu1 %1479 }
 0xac5   :  { %1585 = vrot.lane.b32.xlu1 %v1584_v36, %s8730_s21  ;;  %7138 = vmatmul.mubr.msk.f32.vlgmr.msra.gmra.mrb[14].mxu0 %vm66_vm0, %v1480_v50 }
 0xac6   :  { %7868 = vmatpush3.bf16.msra.mxu0 %v8821_v33  ;;  %7159 = vmatprep.mubr.msk.f32.mxu0 %vm8727_vm1, %v8728_v29 }
 0xac7   :  { %7869 = vmatprep.subr.bf16.mxu0 %v8726_v19 }
 0xaca   :  { %7871 = vmatpush3.bf16.msra.mxu0 %v8831_v39 }
 0xacb   :  { %7878 = vmatprep.subr.bf16.mxu0 %v8726_v19 }
 0xb31   :  { %v1688_v18 = vpop.permute.xlu0 %1687 }
 0xb32   :  { %7160 = vmatmul.mubr.msk.f32.vlgmr.msra.gmra.mrb[16].mxu0 %vm66_vm0, %v1688_v18 }
 0xb33   :  { %7880 = vmatpush3.bf16.msra.mxu0 %v8821_v33  ;;  %7181 = vmatprep.mubr.msk.f32.mxu0 %vm8727_vm1, %v8728_v29 }
 0xb34   :  { %7881 = vmatprep.subr.bf16.mxu0 %v8726_v19 }
 0xb37   :  { %v1586_v51 = vpop.permute.xlu1 %1585  ;;  %7883 = vmatpush3.bf16.msra.mxu0 %v8831_v39 }
 0xb38   :  { %7149 = vmatmul.mubr.msk.f32.vlgmr.msra.gmra.mrb[14].mxu1 %vm66_vm0, %v1586_v51  ;;  %7890 = vmatprep.subr.bf16.mxu0 %v8726_v19 }
 0xb39   :  { %7874 = vmatpush3.bf16.msra.mxu1 %v8807_v20  ;;  %7170 = vmatprep.mubr.msk.f32.mxu1 %vm8727_vm1, %v8728_v29 }
 0xb3a   :  { %7875 = vmatprep.subr.bf16.mxu1 %v8726_v19 }
 0xb3d   :  { %7877 = vmatpush3.bf16.msra.mxu1 %v8814_v26 }
 0xb3e   :  { %7884 = vmatprep.subr.bf16.mxu1 %v8726_v19 }
 0xb98   :  { %v9079_v52 = vpop.f32.mrb[14].mxu0 }
 0xb99   :  { %v7139_v55 = vpop.f32.mrb[15].mxu0 }
 0xc05   :  { %v1757_v56 = vpop.f32.mrb[16].mxu0 }
 0xc06   :  { %v1758_v58 = vadd.f32 %v8866_v53, %v1757_v56  ;;  %v7161_v59 = vpop.f32.mrb[17].mxu0 }
 0xc08   :  { %v1762_v61 = vrot.slane %v1758_v58, 2 }
 0xc0a   :  { %1771 = vrot.lane.b32.xlu0 %v1762_v61, %s8729_s2  ;;  %v1764_v2 = vadd.f32 %v1762_v61, %v8862_v48 }
 0xc0b   :  { %v1655_v63 = vpop.f32.mrb[14].mxu1 }
 0xc0c   :  { %v1656_v49 = vadd.f32 %v8869_v60, %v1655_v63  ;;  %v7150_v1 = vpop.f32.mrb[15].mxu1  ;;  %v6504_v3 = vmul.f32 -1.442695, %v1764_v2 }
 0xc0e   :  { %1667 = vrot.lane.b32.xlu1 %v1656_v49, %s8729_s2  ;;  %v1659_v4 = vadd.f32 %v1656_v49, %v8860_v44  ;;  %8410 = vpow2.f32 %v6504_v3 }
 0xc10   :  { %v6502_v6 = vmul.f32 -1.442695, %v1659_v4 }
 0xc12   :  { %8412 = vpow2.f32 %v6502_v6 }
 0xc18   :  { %v8411_v7 = vpop.eup %8410 }
 0xc19   :  { %v1768_v8 = vadd.f32 1.0, %v8411_v7 }
 0xc1b   :  { %8414 = vrcp.f32 %v1768_v8 }
 0xc1c   :  { %v8413_v9 = vpop.eup %8412 }
 0xc1d   :  { %v1663_v38 = vadd.f32 1.0, %v8413_v9 }
 0xc1f   :  { %8416 = vrcp.f32 %v1663_v38 }
 0xc25   :  { %v8415_v10 = vpop.eup %8414 }
 0xc26   :  { %v1781_v30 = vsub.f32 1.0, %v8415_v10  ;;  %v1789_v34 = vmul.f32 %v8415_v10, %v1787_v62 }
 0xc29   :  { %v8417_v13 = vpop.eup %8416 }
 0xc2a   :  { %v1677_v41 = vsub.f32 1.0, %v8417_v13  ;;  %v1684_v43 = vmul.f32 %v8417_v13, %v1584_v36 }
 0xc7c   :  { %v1772_v11 = vpop.permute.xlu0 %1771 }
 0xc7d   :  { %v1774_v12 = vmul.f32 %v8415_v10, %v1772_v11 }
 0xc7f   :  { %1776 = vrot.lane.b32.xlu0 %v1774_v12, %s8729_s2 }
 0xc80   :  { %v1668_v15 = vpop.permute.xlu1 %1667 }
 0xc81   :  { %v1670_v16 = vmul.f32 %v8417_v13, %v1668_v15 }
 0xc83   :  { %1672 = vrot.lane.b32.xlu1 %v1670_v16, %s8729_s2 }
 0xcf1   :  { %v1777_v21 = vpop.permute.xlu0 %1776 }
 0xcf2   :  { %v1779_v22 = vadd.f32 %v1777_v21, %v8862_v48 }
 0xcf4   :  { %8418 = vtanh.f32 %v1779_v22 }
 0xcf5   :  { %v1673_v23 = vpop.permute.xlu1 %1672 }
 0xcf6   :  { %v1675_v24 = vadd.f32 %v1673_v23, %v8860_v44 }
 0xcf8   :  { %8420 = vtanh.f32 %v1675_v24 }
 0xcfe   :  { %v8419_v25 = vpop.eup %8418 }
 0xcff   :  { %1783 = vrot.lane.b32.xlu0 %v8419_v25, %s8730_s21 }
 0xd02   :  { %v8421_v28 = vpop.eup %8420 }
 0xd03   :  { %1679 = vrot.lane.b32.xlu1 %v8421_v28, %s8730_s21 }
 0xd71   :  { %v1784_v0 = vpop.permute.xlu0 %1783 }
 0xd72   :  { %v1786_v32 = vmul.f32 %v1784_v0, %v1781_v30 }
 0xd74   :  { %v9094_v35 = vadd.f32 %v1789_v34, %v1786_v32 }
 0xd75   :  { %v1680_v42 = vpop.permute.xlu1 %1679 }
 0xd76   :  { %v1682_v40 = vmul.f32 %v1680_v42, %v1677_v41  ;;  %v1897_v46 = vrot.slane %v9094_v35, 6  ;;  %v1998_v25 = vrot.slane %v9094_v35, 2 }
 0xd78   :  { %v9099_v50 = vadd.f32 %v1684_v43, %v1682_v40  ;;  %1898 = vrot.lane.b32.xlu0 %v1897_v46, %s8730_s21 }
 0xd7a   :  { %1792 = vrot.lane.b32.xlu1 %v9099_v50, %s8730_s21  ;;  %v1892_v34 = vrot.slane %v9099_v50, 6 }
 0xdea   :  { %v1899_v18 = vpop.permute.xlu0 %1898 }
 0xdeb   :  { %7182 = vmatmul.mubr.msk.f32.vlgmr.msra.gmra.mrb[18].mxu0 %vm66_vm0, %v1899_v18  ;;  %v2427_v18 = vadd.f32 %v9099_v50, %v9047_v5 }
 0xdec   :  { %v1793_v51 = vpop.permute.xlu1 %1792  ;;  %7892 = vmatpush3.bf16.msra.mxu0 %v8821_v33  ;;  %7203 = vmatprep.mubr.msk.f32.mxu0 %vm8727_vm1, %v8728_v29 }
 0xded   :  { %7171 = vmatmul.mubr.msk.f32.vlgmr.msra.gmra.mrb[16].mxu1 %vm66_vm0, %v1793_v51  ;;  %7893 = vmatprep.subr.bf16.mxu0 %v8726_v19 }
 0xdee   :  { %7886 = vmatpush3.bf16.msra.mxu1 %v8807_v20  ;;  %7192 = vmatprep.mubr.msk.f32.mxu1 %vm8727_vm1, %v8728_v29 }
 0xdef   :  { %7887 = vmatprep.subr.bf16.mxu1 %v8726_v19 }
 0xdf0   :  { %7895 = vmatpush3.bf16.msra.mxu0 %v8831_v39 }
 0xdf1   :  { %7902 = vmatprep.subr.bf16.mxu0 %v8726_v19 }
 0xdf2   :  { %7889 = vmatpush3.bf16.msra.mxu1 %v8814_v26 }
 0xdf3   :  { %7896 = vmatprep.subr.bf16.mxu1 %v8726_v19 }
 0xebe   :  { %v1968_v36 = vpop.f32.mrb[18].mxu0 }
 0xebf   :  { %v1969_v55 = vadd.f32 %v8866_v53, %v1968_v36  ;;  %v7183_v56 = vpop.f32.mrb[19].mxu0 }
 0xec0   :  { %v1862_v58 = vpop.f32.mrb[16].mxu1 }
 0xec1   :  { %v1973_v59 = vrot.slane %v1969_v55, 4  ;;  %v1863_v61 = vadd.f32 %v8869_v60, %v1862_v58  ;;  %v7172_v63 = vpop.f32.mrb[17].mxu1 }
 0xec2   :  { %v9162_v63 = vld [vmem:[#allocation7 + $0x48] ss:$0 sm:$0xff] }
 0xec3   :  { %v1867_v49 = vrot.slane %v1863_v61, 6  ;;  %1982 = vrot.lane.b32.xlu0 %v1973_v59, %s8729_s2  ;;  %v1975_v1 = vadd.f32 %v1973_v59, %v8862_v48 }
 0xec5   :  { %1876 = vrot.lane.b32.xlu1 %v1867_v49, %s8729_s2  ;;  %v1869_v2 = vadd.f32 %v1867_v49, %v8860_v44  ;;  %v6508_v3 = vmul.f32 -1.442695, %v1975_v1 }
 0xec7   :  { %v6506_v4 = vmul.f32 -1.442695, %v1869_v2  ;;  %8422 = vpow2.f32 %v6508_v3 }
 0xec9   :  { %8424 = vpow2.f32 %v6506_v4 }
 0xed1   :  { %v8423_v53 = vpop.eup %8422 }
 0xed2   :  { %v1979_v7 = vadd.f32 1.0, %v8423_v53 }
 0xed3   :  { %v8425_v6 = vpop.eup %8424 }
 0xed4   :  { %v1873_v8 = vadd.f32 1.0, %v8425_v6  ;;  %8426 = vrcp.f32 %v1979_v7 }
 0xed6   :  { %8428 = vrcp.f32 %v1873_v8 }
 0xede   :  { %v8427_v60 = vpop.eup %8426 }
 0xedf   :  { %v1992_v24 = vsub.f32 1.0, %v8427_v60  ;;  %v2000_v30 = vmul.f32 %v8427_v60, %v1998_v25 }
 0xee0   :  { %v8429_v10 = vpop.eup %8428 }
 0xee1   :  { %v1886_v0 = vsub.f32 1.0, %v8429_v10  ;;  %v1894_v42 = vmul.f32 %v8429_v10, %v1892_v34 }
 0xf35   :  { %v1983_v9 = vpop.permute.xlu0 %1982 }
 0xf36   :  { %v1985_v38 = vmul.f32 %v8427_v60, %v1983_v9 }
 0xf37   :  { %v1877_v11 = vpop.permute.xlu1 %1876 }
 0xf38   :  { %v1879_v12 = vmul.f32 %v8429_v10, %v1877_v11  ;;  %1987 = vrot.lane.b32.xlu0 %v1985_v38, %s8729_s2 }
 0xf3a   :  { %1881 = vrot.lane.b32.xlu1 %v1879_v12, %s8729_s2 }
 0xfaa   :  { %v1988_v13 = vpop.permute.xlu0 %1987 }
 0xfab   :  { %v1990_v15 = vadd.f32 %v1988_v13, %v8862_v48 }
 0xfac   :  { %v1882_v16 = vpop.permute.xlu1 %1881 }
 0xfad   :  { %8430 = vtanh.f32 %v1990_v15  ;;  %v1884_v21 = vadd.f32 %v1882_v16, %v8860_v44 }
 0xfaf   :  { %8432 = vtanh.f32 %v1884_v21 }
 0xfb7   :  { %v8431_v22 = vpop.eup %8430 }
 0xfb8   :  { %1994 = vrot.lane.b32.xlu0 %v8431_v22, %s8730_s21 }
 0xfb9   :  { %v8433_v23 = vpop.eup %8432 }
 0xfba   :  { %1888 = vrot.lane.b32.xlu1 %v8433_v23, %s8730_s21 }
0x102a   :  { %v1995_v28 = vpop.permute.xlu0 %1994 }
0x102b   :  { %v1997_v62 = vmul.f32 %v1995_v28, %v1992_v24 }
0x102c   :  { %v1889_v32 = vpop.permute.xlu1 %1888 }
0x102d   :  { %v9132_v41 = vadd.f32 %v2000_v30, %v1997_v62  ;;  %v1891_v43 = vmul.f32 %v1889_v32, %v1886_v0 }
0x102f   :  { %v9134_v40 = vadd.f32 %v1894_v42, %v1891_v43  ;;  %v2109_v46 = vrot.slane %v9132_v41, 4  ;;  %v2210_v24 = vrot.slane %v9132_v41, 2 }
0x1031   :  { %v2428_v51 = vadd.f32 %v9134_v40, %v8991_v14  ;;  %2110 = vrot.lane.b32.xlu0 %v2109_v46, %s8730_s21  ;;  %v2003_v36 = vrot.slane %v9134_v40, 2  ;;  %v2104_v0 = vrot.slane %v9134_v40, 6 }
0x1033   :  { %v9144_v55 = vsel %vm2431_vm2, %v2427_v18, %v2428_v51  ;;  %2004 = vrot.lane.b32.xlu1 %v2003_v36, %s8730_s21 }
0x10a3   :  { %v2111_v56 = vpop.permute.xlu0 %2110 }
0x10a4   :  { %7204 = vmatmul.mubr.msk.f32.vlgmr.msra.gmra.mrb[20].mxu0 %vm66_vm0, %v2111_v56 }
0x10a5   :  { %v2005_v58 = vpop.permute.xlu1 %2004  ;;  %7904 = vmatpush3.bf16.msra.mxu0 %v8821_v33  ;;  %7225 = vmatprep.mubr.msk.f32.mxu0 %vm8727_vm1, %v8728_v29  ;;  %v9159_v33 = vld [vmem:[#allocation7 + $0x98] ss:$0 sm:$0xff] }
0x10a6   :  { %7193 = vmatmul.mubr.msk.f32.vlgmr.msra.gmra.mrb[18].mxu1 %vm66_vm0, %v2005_v58  ;;  %7905 = vmatprep.subr.bf16.mxu0 %v8726_v19 }
0x10a7   :  { %7898 = vmatpush3.bf16.msra.mxu1 %v8807_v20  ;;  %7214 = vmatprep.mubr.msk.f32.mxu1 %vm8727_vm1, %v8728_v29 }
0x10a8   :  { %7899 = vmatprep.subr.bf16.mxu1 %v8726_v19 }
0x10a9   :  { %7907 = vmatpush3.bf16.msra.mxu0 %v8831_v39 }
0x10ab   :  { %7901 = vmatpush3.bf16.msra.mxu1 %v8814_v26 }
0x1177   :  { %v2180_v14 = vpop.f32.mrb[20].mxu0 }
0x1178   :  { %v2181_v5 = vadd.f32 %v9159_v33, %v2180_v14  ;;  %v7205_v50 = vpop.f32.mrb[21].mxu0 }
0x1179   :  { %v2074_v59 = vpop.f32.mrb[18].mxu1 }
0x117a   :  { %v2185_v61 = vrot.slane %v2181_v5, 6  ;;  %v2075_v20 = vadd.f32 %v9162_v63, %v2074_v59  ;;  %v7194_v49 = vpop.f32.mrb[19].mxu1 }
0x117c   :  { %v2079_v1 = vrot.slane %v2075_v20, 4  ;;  %2194 = vrot.lane.b32.xlu0 %v2185_v61, %s8729_s2  ;;  %v2187_v26 = vadd.f32 %v2185_v61, %v8862_v48 }
0x117e   :  { %2088 = vrot.lane.b32.xlu1 %v2079_v1, %s8729_s2  ;;  %v2081_v39 = vadd.f32 %v2079_v1, %v8860_v44  ;;  %v6512_v2 = vmul.f32 -1.442695, %v2187_v26 }
0x1180   :  { %v6510_v3 = vmul.f32 -1.442695, %v2081_v39  ;;  %8434 = vpow2.f32 %v6512_v2 }
0x1182   :  { %8436 = vpow2.f32 %v6510_v3 }
0x118a   :  { %v8435_v4 = vpop.eup %8434 }
0x118b   :  { %v2191_v6 = vadd.f32 1.0, %v8435_v4 }
0x118c   :  { %v8437_v53 = vpop.eup %8436 }
0x118d   :  { %v2085_v7 = vadd.f32 1.0, %v8437_v53  ;;  %8438 = vrcp.f32 %v2191_v6 }
0x118f   :  { %8440 = vrcp.f32 %v2085_v7 }
0x1197   :  { %v8439_v8 = vpop.eup %8438 }
0x1198   :  { %v2204_v23 = vsub.f32 1.0, %v8439_v8  ;;  %v2212_v28 = vmul.f32 %v8439_v8, %v2210_v24 }
0x1199   :  { %v8441_v38 = vpop.eup %8440 }
0x119a   :  { %v2098_v62 = vsub.f32 1.0, %v8441_v38  ;;  %v2106_v42 = vmul.f32 %v8441_v38, %v2104_v0  ;;  %v2441_v0 = vld [vmem:[#allocation7 + $0xf8] sm:$0xff] }
0x11ee   :  { %v2195_v60 = vpop.permute.xlu0 %2194 }
0x11ef   :  { %v2197_v9 = vmul.f32 %v8439_v8, %v2195_v60 }
0x11f0   :  { %v2089_v10 = vpop.permute.xlu1 %2088 }
0x11f1   :  { %v2091_v11 = vmul.f32 %v8441_v38, %v2089_v10  ;;  %2199 = vrot.lane.b32.xlu0 %v2197_v9, %s8729_s2 }
0x11f3   :  { %2093 = vrot.lane.b32.xlu1 %v2091_v11, %s8729_s2 }
0x1263   :  { %v2200_v12 = vpop.permute.xlu0 %2199 }
0x1264   :  { %v2202_v13 = vadd.f32 %v2200_v12, %v8862_v48 }
0x1265   :  { %v2094_v15 = vpop.permute.xlu1 %2093 }
0x1266   :  { %8442 = vtanh.f32 %v2202_v13  ;;  %v2096_v16 = vadd.f32 %v2094_v15, %v8860_v44 }
0x1268   :  { %8444 = vtanh.f32 %v2096_v16 }
0x1270   :  { %v8443_v21 = vpop.eup %8442 }
0x1271   :  { %2206 = vrot.lane.b32.xlu0 %v8443_v21, %s8730_s21 }
0x1272   :  { %v8445_v22 = vpop.eup %8444 }
0x1273   :  { %2100 = vrot.lane.b32.xlu1 %v8445_v22, %s8730_s21 }
0x12e3   :  { %v2207_v25 = vpop.permute.xlu0 %2206 }
0x12e4   :  { %v2209_v30 = vmul.f32 %v2207_v25, %v2204_v23 }
0x12e5   :  { %v2101_v34 = vpop.permute.xlu1 %2100 }
0x12e6   :  { %v9177_v32 = vadd.f32 %v2212_v28, %v2209_v30  ;;  %v2103_v43 = vmul.f32 %v2101_v34, %v2098_v62  ;;  %v2440_v62 = vld [vmem:[#allocation7 + $0xf0] sm:$0xff]  ;;  %v2534_v34 = vld [vmem:[#allocation7 + $0x118] sm:$0xff] }
0x12e8   :  { %v9179_v46 = vadd.f32 %v2106_v42, %v2103_v43  ;;  %v2321_v18 = vrot.slane %v9177_v32, 2  ;;  %v7908_v42 = vpack.c.bf16 %v2441_v0, %v2440_v62  ;;  %v2535_v43 = vld [vmem:[#allocation7 + $0x120] sm:$0xff]  ;;  %v2770_v62 = vld [vmem:[#allocation7 + $0x178] sm:$0xff] }
0x12ea   :  { %v2429_v51 = vadd.f32 %v9179_v46, %v8937_v54  ;;  %2322 = vrot.lane.b32.xlu0 %v2321_v18, %s8730_s21  ;;  %v2215_v36 = vrot.slane %v9179_v46, 4  ;;  %v8622_v54 = vld [vmem:[#allocation7 + $0xe8] ss:$0 sm:$0xff]  ;;  %7909 = vmatprep.subr.bf16.mxu1 %v7908_v42 }
0x12eb   :  { %v1550_v5 = vadd.f32 %v8622_v54, %v9079_v52 }
0x12ec   :  { %2216 = vrot.lane.b32.xlu1 %v2215_v36, %s8730_s21  ;;  %v9191_v40 = vsel %vm2433_vm3, %v9144_v55, %v2429_v51  ;;  %v2442_v51 = vld [vmem:[#allocation7 + $0x100] sm:$0xff]  ;;  %v2443_v36 = vld [vmem:[#allocation7 + $0x108] sm:$0xff] }
0x12ed   :  { %v1554_v49 = vrot.slane %v1550_v5, 2 }
0x12ef   :  { %v1556_v39 = vadd.f32 %v1554_v49, %v8913_v45 }
0x12f1   :  { %v6500_v2 = vmul.f32 -1.442695, %v1556_v39 }
0x135c   :  { %v2323_v56 = vpop.permute.xlu0 %2322 }
0x135d   :  { %7226 = vmatmul.mubr.msk.f32.vlgmr.msra.gmra.mrb[22].mxu0 %vm66_vm0, %v2323_v56  ;;  %v7912_v56 = vpack.c.bf16 %v2443_v36, %v2442_v51  ;;  %v2773_v51 = vld [vmem:[#allocation7 + $0x190] sm:$0xff] }
0x135e   :  { %v2217_v58 = vpop.permute.xlu1 %2216 }
0x135f   :  { %7215 = vmatmul.mubr.msk.f32.vlgmr.msra.gmra.mrb[20].mxu1 %vm66_vm0, %v2217_v58  ;;  %v2536_v58 = vld [vmem:[#allocation7 + $0x128] sm:$0xff] }
0x1360   :  { %7911 = vmatpush3.bf16.msra.mxu1 %v7908_v42 }
0x1361   :  { %7913 = vmatprep.subr.bf16.mxu1 %v7912_v56 }
0x1364   :  { %7915 = vmatpush3.bf16.msra.mxu1 %v7912_v56 }
0x1430   :  { %v2392_v14 = vpop.f32.mrb[22].mxu0 }
0x1431   :  { %v2393_v50 = vadd.f32 %v9159_v33, %v2392_v14  ;;  %v7227_v59 = vpop.f32.mrb[23].mxu0  ;;  %v2537_v14 = vld [vmem:[#allocation7 + $0x130] sm:$0xff] }
0x1432   :  { %v2286_v61 = vpop.f32.mrb[20].mxu1 }
0x1433   :  { %v2287_v20 = vadd.f32 %v9162_v63, %v2286_v61  ;;  %2404 = vrot.lane.b32.xlu0 %v2393_v50, %s8729_s2  ;;  %v7216_v55 = vpop.f32.mrb[21].mxu1  ;;  %v2396_v26 = vadd.f32 %v2393_v50, %v8862_v48 }
0x1435   :  { %v2291_v1 = vrot.slane %v2287_v20, 2  ;;  %v6516_v52 = vmul.f32 -1.442695, %v2396_v26  ;;  %v1579_v20 = vrot.slane %v9041_v31, 6  ;;  %v2316_v26 = vrot.slane %v9179_v46, 6 }
0x1437   :  { %1563 = vrot.lane.b32.xlu0 %v1554_v49, %s8729_s2  ;;  %2300 = vrot.lane.b32.xlu1 %v2291_v1, %s8729_s2  ;;  %v2293_v33 = vadd.f32 %v2291_v1, %v8860_v44  ;;  %8446 = vpow2.f32 %v6516_v52  ;;  %v2424_v52 = vadd.f32 %v9177_v32, %v8939_v57 }
0x1438   :  { %8448 = vpow2.f32 %v6500_v2 }
0x1439   :  { %v6514_v3 = vmul.f32 -1.442695, %v2293_v33 }
0x143b   :  { %8450 = vpow2.f32 %v6514_v3 }
0x1441   :  { %v8447_v63 = vpop.eup %8446 }
0x1442   :  { %v8449_v4 = vpop.eup %8448  ;;  %v2400_v53 = vadd.f32 1.0, %v8447_v63 }
0x1443   :  { %v1560_v7 = vadd.f32 1.0, %v8449_v4 }
0x1444   :  { %8452 = vrcp.f32 %v2400_v53  ;;  %v2426_v53 = vadd.f32 %v9094_v35, %v9052_v47  ;;  %v2618_v47 = vlaneseq }
0x1445   :  { %v8451_v6 = vpop.eup %8450  ;;  %8454 = vrcp.f32 %v1560_v7 }
0x1446   :  { %v2297_v8 = vadd.f32 1.0, %v8451_v6  ;;  %v9243_v35 = vshrl.u32 %v2618_v47, 7 }
0x1448   :  { %8456 = vrcp.f32 %v2297_v8  ;;  %v9248_v8 = vand.u32 127, %v2618_v47 }
0x144e   :  { %v8453_v60 = vpop.eup %8452 }
0x144f   :  { %v8455_v10 = vpop.eup %8454  ;;  %v2414_v5 = vsub.f32 1.0, %v8453_v60  ;;  %v2421_v59 = vmul.f32 %v8453_v60, %v2321_v18  ;;  %v2425_v18 = vadd.f32 %v9132_v41, %v8993_v17 }
0x1450   :  { %v1573_v49 = vsub.f32 1.0, %v8455_v10  ;;  %v1581_v3 = vmul.f32 %v8455_v10, %v1579_v20  ;;  %v2780_v20 = vld [vmem:[#allocation7 + $0x1c8] sm:$0xff] }
0x1452   :  { %v8457_v11 = vpop.eup %8456 }
0x1453   :  { %v2310_v1 = vsub.f32 1.0, %v8457_v11  ;;  %v2318_v4 = vmul.f32 %v8457_v11, %v2316_v26  ;;  %v2783_v26 = vld [vmem:[#allocation7 + $0x1e0] sm:$0xff] }
0x14a5   :  { %v2405_v9 = vpop.permute.xlu0 %2404 }
0x14a6   :  { %v2407_v38 = vmul.f32 %v8453_v60, %v2405_v9 }
0x14a8   :  { %2409 = vrot.lane.b32.xlu1 %v2407_v38, %s8729_s2 }
0x14a9   :  { %v1564_v12 = vpop.permute.xlu0 %1563  ;;  %v2301_v13 = vpop.permute.xlu1 %2300 }
0x14aa   :  { %v1566_v15 = vmul.f32 %v8455_v10, %v1564_v12  ;;  %v2303_v16 = vmul.f32 %v8457_v11, %v2301_v13  ;;  %v9270_v13 = vld [vmem:[#allocation7 + $0x110] ss:$0 sm:$0xff] }
0x14ac   :  { %1568 = vrot.lane.b32.xlu1 %v1566_v15, %s8729_s2  ;;  %2305 = vrot.lane.b32.xlu0 %v2303_v16, %s8729_s2  ;;  %v9272_v15 = vld [vmem:[#allocation7 + $0x138] ss:$0 sm:$0xff] }
0x151a   :  { %v2410_v21 = vpop.permute.xlu1 %2409 }
0x151b   :  { %v2412_v22 = vadd.f32 %v2410_v21, %v8862_v48  ;;  %v7916_v48 = vpack.c.bf16 %v2535_v43, %v2534_v34  ;;  %v2771_v34 = vld [vmem:[#allocation7 + $0x180] sm:$0xff]  ;;  %v2772_v43 = vld [vmem:[#allocation7 + $0x188] sm:$0xff] }
0x151c   :  { %v9286_v42 = vpack.c.bf16 %v2771_v34, %v2770_v62  ;;  %v9293_v56 = vpack.c.bf16 %v2773_v51, %v2772_v43  ;;  %v2785_v43 = vld [vmem:[#allocation7 + $0x1f0] sm:$0xff]  ;;  %v2786_v51 = vld [vmem:[#allocation7 + $0x1f8] sm:$0xff] }
0x151d   :  { %8458 = vtanh.f32 %v2412_v22  ;;  %7917 = vmatprep.subr.bf16.mxu0 %v7916_v48 }
0x151e   :  { %v1569_v23 = vpop.permute.xlu1 %1568  ;;  %v2306_v24 = vpop.permute.xlu0 %2305  ;;  %7919 = vmatpush3.bf16.msra.mxu0 %v7916_v48 }
0x151f   :  { %v1571_v25 = vadd.f32 %v1569_v23, %v8913_v45  ;;  %v2308_v28 = vadd.f32 %v2306_v24, %v8860_v44  ;;  %v7920_v45 = vpack.c.bf16 %v2537_v14, %v2536_v58  ;;  %v2774_v58 = vld [vmem:[#allocation7 + $0x198] sm:$0xff]  ;;  %v2775_v14 = vld [vmem:[#allocation7 + $0x1a0] sm:$0xff] }
0x1521   :  { %8460 = vtanh.f32 %v1571_v25  ;;  %7921 = vmatprep.subr.bf16.mxu0 %v7920_v45 }
0x1522   :  { %8462 = vtanh.f32 %v2308_v28  ;;  %7923 = vmatpush3.bf16.msra.mxu0 %v7920_v45  ;;  %v2768_v28 = vld [vmem:[#allocation7 + $0x168] sm:$0xff] }
0x1523   :  { %v2776_v45 = vld [vmem:[#allocation7 + $0x1a8] sm:$0xff] }
0x1527   :  { %v8459_v30 = vpop.eup %8458 }
0x1528   :  { %2416 = vrot.lane.b32.xlu0 %v8459_v30, %s8730_s21  ;;  %v2769_v30 = vld [vmem:[#allocation7 + $0x170] sm:$0xff] }
0x1529   :  { %v9284_v0 = vpack.c.bf16 %v2769_v30, %v2768_v28 }
0x152b   :  { %v8461_v54 = vpop.eup %8460 }
0x152c   :  { %v8463_v44 = vpop.eup %8462  ;;  %1575 = vrot.lane.b32.xlu0 %v8461_v54, %s8730_s21  ;;  %v9297_v54 = vpack.c.bf16 %v2775_v14, %v2774_v58  ;;  %v2788_v58 = vld [vmem:[#allocation7 + $0x208] sm:$0xff] }
0x152d   :  { %2312 = vrot.lane.b32.xlu1 %v8463_v44, %s8730_s21  ;;  %v2777_v44 = vld [vmem:[#allocation7 + $0x1b0] sm:$0xff] }
0x159a   :  { %v2417_v50 = vpop.permute.xlu0 %2416 }
0x159b   :  { %v2419_v61 = vmul.f32 %v2417_v50, %v2414_v5  ;;  %v9301_v5 = vpack.c.bf16 %v2777_v44, %v2776_v45  ;;  %v2778_v50 = vld [vmem:[#allocation7 + $0x1b8] sm:$0xff]  ;;  %v9355_v45 = vld [vmem:[#allocation7 + $0x1e8] ss:$0 sm:$0xff] }
0x159d   :  { %v2422_v55 = vadd.f32 %v2421_v59, %v2419_v61  ;;  %v2779_v59 = vld [vmem:[#allocation7 + $0x1c0] sm:$0xff] }
0x159e   :  { %v1576_v39 = vpop.permute.xlu0 %1575  ;;  %v9305_v61 = vpack.c.bf16 %v2779_v59, %v2778_v50 }
0x159f   :  { %v2423_v33 = vadd.f32 %v2422_v55, %v8891_v37  ;;  %v2313_v2 = vpop.permute.xlu1 %2312  ;;  %v1578_v63 = vmul.f32 %v1576_v39, %v1573_v49  ;;  %v2781_v55 = vld [vmem:[#allocation7 + $0x1d0] sm:$0xff] }
0x15a0   :  { %v2315_v31 = vmul.f32 %v2313_v2, %v2310_v1  ;;  %v9310_v49 = vpack.c.bf16 %v2781_v55, %v2780_v20  ;;  %v2782_v1 = vld [vmem:[#allocation7 + $0x1d8] sm:$0xff]  ;;  %v2790_v55 = vld [vmem:[#allocation7 + $0x140] sm:$0xff] }
0x15a1   :  { %v2432_v46 = vsel %vm2431_vm2, %v2423_v33, %v2424_v52  ;;  %v9226_v57 = vadd.f32 %v1581_v3, %v1578_v63  ;;  %v9314_v39 = vpack.c.bf16 %v2783_v26, %v2782_v1  ;;  %v2791_v1 = vld [vmem:[#allocation7 + $0x148] sm:$0xff] }
0x15a2   :  { %v2434_v6 = vsel %vm2433_vm3, %v2432_v46, %v2425_v18  ;;  %v2319_v7 = vadd.f32 %v2318_v4, %v2315_v31  ;;  %v9359_v26 = vpack.c.bf16 %v2791_v1, %v2790_v55 }
0x15a3   :  { %v9228_v37 = vsel %vm2435_vm4, %v2434_v6, %v2426_v53  ;;  %v9237_v41 = vrot.slane %v9226_v57, 6 }
0x15a4   :  { %v2430_v32 = vadd.f32 %v2319_v7, %v8886_v27  ;;  %2451 = vrot.lane.b32.xlu1 %v9228_v37, %s8730_s21  ;;  %v9246_v27 = vadd.s32 8, %v9243_v35 }
0x15a6   :  { %v9234_v17 = vsel %vm2435_vm4, %v9191_v40, %v2430_v32  ;;  %v2627_v40 = vand.u32 1, %v9243_v35  ;;  %v2634_v60 = vand.u32 1, %v9246_v27  ;;  %vm3034_vm4 = vcmask 130048  }
0x15a7   :  { %2453 = vrot.lane.b32.xlu0 %v9234_v17, %s8730_s21 }
0x15a8   :  { %2682 = vrot.lane.b32.xlu1 %v9237_v41, %s8730_s21  ;;  %vm2647_vm5 = vcmp.eq.s32.totalorder %v2627_v40, %v9248_v8  ;;  %vm2648_vm7 = vcmp.eq.s32.totalorder %v2634_v60, %v9248_v8 }
0x15a9   :  { %v9256_v38 = vsel %vm2647_vm5, 1.0, %v8728_v29  ;;  %v9265_v12 = vsel %vm2648_vm7, 1.0, %v8728_v29  ;;  %vm3108_vm5 = vcmask 58368  }
0x1616   :  { %v2452_v9 = vpop.permute.xlu1 %2451 }
0x1617   :  { %7236 = vmatprep.mubr.msk.f32.mxu1 %vm66_vm0, %v2452_v9  ;;  %7247 = vmatprep.mubr.msk.f32.mxu0 %vm66_vm0, %v2452_v9 }
0x1619   :  { %v2454_v10 = vpop.permute.xlu0 %2453 }
0x161a   :  { %7237 = vmatmul.mubr.msk.f32.vlgmr.msra.gmra.mrb[22].mxu1 %vm66_vm0, %v2454_v10  ;;  %7248 = vmatmul.mubr.msk.f32.vlgmr.msra.gmra.mrb[24].mxu0 %vm66_vm0, %v2454_v10  ;;  %v2683_v11 = vpop.permute.xlu1 %2682 }
0x161b   :  { %7250 = vmatprep.subr.msk.mxu1 %vm2431_vm2, %v2683_v11  ;;  %7252 = vmatprep.mubr.msk.f32.mxu1 %vm2684_vm6, %v9256_v38 }
0x161c   :  { %7251 = vmatpush3.msk.msra.mxu1 %vm2431_vm2, %v2683_v11 }
0x161d   :  { %7925 = vmatprep.subr.bf16.mxu1 %v9284_v0 }
0x161e   :  { %7253 = vmatmul.mubr.msk.f32.vlgmr.msra.gmra.mrb[24].mxu1 %vm2684_vm6, %v9265_v12 }
0x161f   :  { %7927 = vmatpush3.bf16.msra.mxu1 %v9284_v0 }
0x1620   :  { %7929 = vmatprep.subr.bf16.mxu1 %v9286_v42 }
0x1623   :  { %7931 = vmatpush3.bf16.msra.mxu1 %v9286_v42 }
0x1624   :  { %7933 = vmatprep.subr.bf16.mxu1 %v9293_v56 }
0x1627   :  { %7935 = vmatpush3.bf16.msra.mxu1 %v9293_v56 }
0x1628   :  { %7937 = vmatprep.subr.bf16.mxu1 %v9297_v54 }
0x162b   :  { %7939 = vmatpush3.bf16.msra.mxu1 %v9297_v54 }
0x162c   :  { %7941 = vmatprep.subr.bf16.mxu1 %v9301_v5 }
0x162f   :  { %7943 = vmatpush3.bf16.msra.mxu1 %v9301_v5 }
0x1630   :  { %7945 = vmatprep.subr.bf16.mxu1 %v9305_v61 }
0x1633   :  { %7947 = vmatpush3.bf16.msra.mxu1 %v9305_v61 }
0x1634   :  { %7949 = vmatprep.subr.bf16.mxu1 %v9310_v49 }
0x1637   :  { %7951 = vmatpush3.bf16.msra.mxu1 %v9310_v49 }
0x1638   :  { %7953 = vmatprep.subr.bf16.mxu1 %v9314_v39 }
0x163b   :  { %7955 = vmatpush3.bf16.msra.mxu1 %v9314_v39 }
0x163c   :  { %7964 = vmatprep.subr.bf16.mxu1 %v8726_v19 }
0x16ed   :  { %v7238_v16 = vpop.f32.mrb[22].mxu1  ;;  %v7249_v21 = vpop.f32.mrb[24].mxu0 }
0x16ee   :  { %v9275_v22 = vadd.f32 %v7238_v16, %v9270_v13  ;;  %v9278_v23 = vadd.f32 %v7249_v21, %v9272_v15  ;;  %v9280_v24 = vpop.f32.mrb[23].mxu1  ;;  %v9282_v25 = vpop.f32.mrb[25].mxu0 }
0x16f1   :  { %v7254_v36 = vpop.f32.mrb[24].mxu1 }
0x16f2   :  { %2816 = vrot.lane.b32.xlu1 %v7254_v36, %s8731_s22  ;;  %v2759_v48 = vpop.f32.mrb[25].mxu1  ;;  %v2787_v36 = vld [vmem:[#allocation7 + $0x200] sm:$0xff] }
0x16f3   :  { %2814 = vrot.lane.b32.xlu0 %v2759_v48, %s8731_s22  ;;  %v9346_v48 = vpack.c.bf16 %v2786_v51, %v2785_v43  ;;  %v9348_v14 = vpack.c.bf16 %v2788_v58, %v2787_v36  ;;  %v9412_v58 = vld [vmem:[#allocation7 + $0x160] ss:$0 sm:$0xff] }
0x16f5   :  { %7957 = vmatprep.subr.bf16.mxu0 %v9346_v48 }
0x16f6   :  { %7959 = vmatpush3.bf16.msra.mxu0 %v9346_v48 }
0x16f7   :  { %7961 = vmatprep.subr.bf16.mxu0 %v9348_v14 }
0x16fa   :  { %7963 = vmatpush3.bf16.msra.mxu0 %v9348_v14 }
0x16fb   :  { %7967 = vmatprep.subr.bf16.mxu0 %v8726_v19 }
0x1764   :  { %v2817_v52 = vpop.permute.xlu1 %2816 }
0x1765   :  { %v2821_v33 = vmul.f32 %v2817_v52, %v9234_v17  ;;  %v2823_v2 = vsub.f32 %v9234_v17, %v2817_v52  ;;  %v2815_v3 = vpop.permute.xlu0 %2814 }
0x1766   :  { %v2820_v63 = vmul.f32 %v2815_v3, %v9228_v37  ;;  %v2822_v18 = vsub.f32 %v9228_v37, %v2815_v3 }
0x1767   :  { %v2825_v4 = vand.u32 2147483647, %v2823_v2  ;;  %v2793_v2 = vld [vmem:[#allocation7 + $0x158] sm:$0xff] }
0x1768   :  { %v8271_v31 = vpack.i.bf16 %v2821_v33, %v2820_v63  ;;  %v2824_v53 = vand.u32 2147483647, %v2822_v18  ;;  %v8732_v18 = vmov 0  }
0x1769   :  { %8287 = vset.pattern.permute.xlu0 %v8732_v18  ;;  %8286 = vset.pattern.permute.xlu1 %v8732_v18 }
0x176a   :  { %8272 = vrot.lane.b32.xlu0 %v8271_v31, %s8730_s21  ;;  %v8276_v46 = vpack.i.bf16 %v2825_v4, %v2824_v53  ;;  %v9380_v4 = vld [vmem:[#allocation7 + $0x210] ss:$0 sm:$0xff] }
0x176c   :  { %8277 = vrot.lane.b32.xlu1 %v8276_v46, %s8731_s22 }
0x176e   :  { %8282 = vrot.lane.b32.xlu0 %v8276_v46, %s8729_s2 }
0x17dc   :  { %v8273_v6 = vpop.permute.xlu0 %8272 }
0x17dd   :  { %v9326_v7 = vunpack.i.h.bf16 %v8273_v6  ;;  %v9328_v32 = vunpack.i.l.bf16 %v8273_v6 }
0x17de   :  { %v8278_v47 = vpop.permute.xlu1 %8277 }
0x17df   :  { %v2849_v40 = vsel %vm66_vm0, %v9326_v7, %v2821_v33  ;;  %v9332_v60 = vunpack.i.h.bf16 %v8278_v47  ;;  %v9334_v9 = vunpack.i.l.bf16 %v8278_v47  ;;  %v2848_v10 = vsel %vm66_vm0, %v9328_v32, %v2820_v63  ;;  %v2792_v33 = vld [vmem:[#allocation7 + $0x150] sm:$0xff] }
0x17e0   :  { %v8283_v11 = vpop.permute.xlu0 %8282  ;;  %v9364_v63 = vpack.c.bf16 %v2793_v2, %v2792_v33 }
0x17e1   :  { %v8285_v16 = vunpack.i.h.bf16 %v8283_v11  ;;  %v8284_v21 = vunpack.i.l.bf16 %v8283_v11  ;;  %v2851_v28 = vsel %vm2850_vm8, %v2848_v10, %v9334_v9  ;;  %v2852_v30 = vsel %vm2850_vm8, %v2849_v40, %v9332_v60 }
0x17e2   :  { %v2668_v10 = vmul.u32 2, %v9248_v8 }
0x17e3   :  { %v2854_v62 = vsel %vm2853_vm9, %v2851_v28, %v8284_v21  ;;  %v2855_v34 = vsel %vm2853_vm9, %v2852_v30, %v8285_v16  ;;  %v2657_v28 = vand.u32 1, %v9248_v8 }
0x17e4   :  { %7287 = vmatprep.mubr.f32.mxu1 %v2854_v62  ;;  %v2671_v11 = vadd.s32 2, %v2668_v10  ;;  %vm2670_vm10 = vcmp.ge.s32.totalorder %v9246_v27, %v2668_v10  ;;  %vm2669_vm12 = vcmp.ge.s32.totalorder %v9243_v35, %v2668_v10  ;;  %v8739_v10 = vmov 7  }
0x17e5   :  { %7288 = vmatmul.mubr.f32.vlgmr.msra.gmra.mrb[26].mxu1 %v2855_v34  ;;  %vm2665_vm3 = vcmp.eq.s32.totalorder %v2657_v28, %v9243_v35 }
0x17e6   :  { %7305 = vmatprep.mubr.msk.f32.mxu1 %vm8727_vm1, %v8728_v29  ;;  %vm2673_vm11 = vcmp.lt.s32.totalorder %v9246_v27, %v2671_v11  ;;  %vm2672_vm13 = vcmp.lt.s32.totalorder %v9243_v35, %v2671_v11  ;;  %v9400_v51 = vsel %vm2665_vm3, 1.0, %v8728_v29  ;;  %v9431_v11 = vadd.f32 %v9270_v13, %v9280_v24 }
0x17e7   :  { %vm2675_vm14 = vmand %vm2670_vm10, %vm2673_vm11 }
0x17e8   :  { %vm2674_vm15 = vmand %vm2669_vm12, %vm2672_vm13  ;;  %v9390_v16 = vsel %vm2675_vm14, 1.0, %v8728_v29 }
0x17e9   :  { %v9393_v21 = vsel %vm2674_vm15, 1.0, %v8728_v29 }
0x18b8   :  { %v7289_v44 = vpop.f32.mrb[26].mxu1 }
0x18b9   :  { %v2932_v50 = vadd.f32 %v7289_v44, %v9355_v45  ;;  %v2926_v59 = vpop.f32.mrb[27].mxu1 }
0x18ba   :  { %v2927_v20 = vadd.f32 %v9355_v45, %v2926_v59 }
0x18bc   :  { %8464 = vtanh.f32 %v2927_v20 }
0x18bd   :  { %8466 = vtanh.f32 %v2932_v50 }
0x18c6   :  { %v8465_v52 = vpop.eup %8464 }
0x18c7   :  { %v8467_v3 = vpop.eup %8466  ;;  %7298 = vmatprep.mubr.msk.f32.mxu0 %vm66_vm0, %v8465_v52 }
0x18c8   :  { %7299 = vmatmul.mubr.msk.f32.vlgmr.msra.gmra.mrb[26].mxu0 %vm66_vm0, %v8467_v3 }
0x18c9   :  { %7969 = vmatpush3.bf16.msra.mxu0 %v9359_v26  ;;  %7316 = vmatprep.mubr.msk.f32.mxu0 %vm8727_vm1, %v8728_v29 }
0x18ca   :  { %7970 = vmatprep.subr.bf16.mxu0 %v8726_v19 }
0x18cd   :  { %7972 = vmatpush3.bf16.msra.mxu0 %v9364_v63 }
0x18ce   :  { %7973 = vmatprep.subr.bf16.mxu0 %v8726_v19 }
0x18d0   :  { %7317 = vmatmul.mubr.f32.vlgmr.msra.gmra.mrb[28].mxu0 %v8728_v29 }
0x18d1   :  { %7975 = vmatpush3.bf16.msra.mxu0 %v9359_v26  ;;  %7327 = vmatprep.mubr.msk.f32.mxu0 %vm8727_vm1, %v8728_v29 }
0x18d2   :  { %7976 = vmatprep.subr.bf16.mxu0 %v8726_v19 }
0x18d5   :  { %7978 = vmatpush3.bf16.msra.mxu0 %v9364_v63 }
0x18d6   :  { %7979 = vmatprep.subr.bf16.mxu0 %v8726_v19 }
0x199b   :  { %v7300_v31 = vpop.f32.mrb[26].mxu0 }
0x199c   :  { %v3019_v53 = vadd.f32 %v7300_v31, %v9380_v4  ;;  %v3013_v46 = vpop.f32.mrb[27].mxu0  ;;  %v9956_v31 = vmov 1  }
0x199d   :  { %v3014_v6 = vadd.f32 %v9380_v4, %v3013_v46  ;;  %v8735_v46 = vmov 3  }
0x199e   :  { %3029 = vperm.xlu0 %8287, %v3019_v53   ;;  %v9958_v53 = vmov 2  }
0x199f   :  { %3024 = vperm.xlu1 %8286, %v3014_v6   ;;  %v8736_v6 = vmov 4  }
0x19a3   :  { %v3186_v47 = vpop.f32.mrb[28].mxu0 }
0x19a4   :  { %v7318_v40 = vpop.f32.mrb[29].mxu0  ;;  %v3187_v44 = vadd.f32 %v9412_v58, %v3186_v47  ;;  %v8737_v47 = vmov 5  }
0x19a5   :  { %v8738_v40 = vmov 6  }
0x19a6   :  { %v3190_v28 = vadd.f32 %v3187_v44, %v9431_v11 }
0x1a1d   :  { %v3030_v30 = vpop.permute.xlu0 %3029 }
0x1a1e   :  { %v3033_v62 = vmul.f32 %v9390_v16, %v3030_v30  ;;  %v3025_v34 = vpop.permute.xlu1 %3024  ;;  %v6537_v30 = vmul.f32 -1.442695, %v3190_v28 }
0x1a1f   :  { %v3032_v27 = vmul.f32 %v9393_v21, %v3025_v34 }
0x1a21   :  { %v7965_v43 = vpack.c.bf16 %v3033_v62, %v3032_v27 }
0x1a23   :  { %7966 = vmatpush3.bf16.msra.mxu1 %v7965_v43 }
0x1a24   :  { %7985 = vmatprep.subr.bf16.mxu1 %v8726_v19 }
0x1a26   :  { %7306 = vmatmul.mubr.msk.f32.vlgmr.msra.gmra.mrb[28].mxu1 %vm3034_vm4, %v9400_v51 }
0x1a27   :  { %7987 = vmatpush3.bf16.msra.mxu1 %v9359_v26  ;;  %7349 = vmatprep.mubr.msk.f32.mxu1 %vm8727_vm1, %v8728_v29 }
0x1a28   :  { %7988 = vmatprep.subr.bf16.mxu1 %v8726_v19 }
0x1a2b   :  { %7990 = vmatpush3.bf16.msra.mxu1 %v9364_v63 }
0x1a2c   :  { %7997 = vmatprep.subr.bf16.mxu1 %v8726_v19 }
0x1af9   :  { %v3104_v35 = vpop.f32.mrb[28].mxu1 }
0x1afa   :  { %v7307_v8 = vpop.f32.mrb[29].mxu1  ;;  %v3109_v36 = vsel %vm3108_vm5, %v3104_v35, -inf }
0x1afb   :  { %3110 = vmax.xlane.f32.xlu1 %v3109_v36  ;;  %v9436_v8 = vadd.f32 %v9272_v15, %v9282_v25 }
0x1b0c   :  { %3198 = vrot.lane.b32.xlu1 %v3187_v44, %s8730_s21 }
0x1b88   :  { %v3111_v50 = vpop.xlane.xlu1 %3110 }
0x1b89   :  { %v3112_v59 = vsub.f32 %v3104_v35, %v3111_v50 }
0x1b8b   :  { %v3113_v20 = vmul.f32 1.442695, %v3112_v59 }
0x1b8c   :  { %v3199_v27 = vpop.permute.xlu1 %3198 }
0x1b8d   :  { %8468 = vpow2.f32 %v3113_v20 }
0x1b97   :  { %v8469_v55 = vpop.eup %8468 }
0x1b98   :  { %v3115_v1 = vsel %vm3108_vm5, %v8469_v55, 0.0 }
0x1b99   :  { %3116 = vadd.xlane.f32.xlu0 %v3115_v1 }
0x1c26   :  { %v3117_v52 = vpop.xlane.xlu0 %3116 }
0x1c27   :  { %8470 = vrcp.f32 %v3117_v52 }
0x1c28   :  { %8472 = vpow2.f32 %v6537_v30 }
0x1c31   :  { %v8471_v33 = vpop.eup %8470 }
0x1c32   :  { %v3119_v2 = vmul.f32 %v8471_v33, %v8469_v55  ;;  %v8473_v62 = vpop.eup %8472 }
0x1c33   :  { %v3194_v34 = vadd.f32 1.0, %v8473_v62 }
0x1c34   :  { %3206 = vperm.xlu0 %8287, %v3119_v2   ;;  %v9417_v3 = vsub.f32 1.0, %v3119_v2 }
0x1c35   :  { %8474 = vrcp.f32 %v3194_v34 }
0x1c36   :  { %3213 = vperm.xlu1 %8286, %v9417_v3  }
0x1c38   :  { %8288 = vset.pattern.permute.xlu0 %v9956_v31 }
0x1c39   :  { %3308 = vperm.xlu0 %8288, %v3119_v2  }
0x1c3a   :  { %8289 = vset.pattern.permute.xlu1 %v9956_v31 }
0x1c3d   :  { %8290 = vset.pattern.permute.xlu0 %v9958_v53 }
0x1c3e   :  { %3411 = vperm.xlu0 %8290, %v3119_v2  }
0x1c3f   :  { %v8475_v43 = vpop.eup %8474 }
0x1c40   :  { %v3201_v35 = vmul.f32 %v8475_v43, %v3199_v27 }
0x1c42   :  { %8292 = vset.pattern.permute.xlu0 %v8735_v46  ;;  %v3202_v36 = vadd.f32 %v3201_v35, %v9436_v8 }
0x1c43   :  { %3514 = vperm.xlu0 %8292, %v3119_v2  }
0x1c44   :  { %8476 = vtanh.f32 %v3202_v36 }
0x1c47   :  { %8294 = vset.pattern.permute.xlu0 %v8736_v6 }
0x1c48   :  { %3615 = vperm.xlu0 %8294, %v3119_v2  }
0x1c4c   :  { %8296 = vset.pattern.permute.xlu0 %v8737_v47 }
0x1c4d   :  { %3715 = vperm.xlu0 %8296, %v3119_v2  }
0x1c4e   :  { %v9439_v13 = vpop.eup %8476 }
0x1c51   :  { %8298 = vset.pattern.permute.xlu0 %v8738_v40 }
0x1c52   :  { %3818 = vperm.xlu0 %8298, %v3119_v2  }
0x1c56   :  { %8300 = vset.pattern.permute.xlu0 %v8739_v10 }
0x1c57   :  { %3921 = vperm.xlu0 %8300, %v3119_v2  }
0x1c5b   :  { %8308 = vset.pattern.permute.xlu0 %v8732_v18 }
0x1cb3   :  { %v3207_v50 = vpop.permute.xlu0 %3206 }
0x1cb4   :  { %v3209_v44 = vmul.f32 %v9439_v13, %v3207_v50 }
0x1cb5   :  { %v3214_v24 = vpop.permute.xlu1 %3213 }
0x1cb6   :  { %v3216_v59 = vmul.f32 0.0, %v3214_v24 }
0x1cb8   :  { %v3217_v20 = vadd.f32 %v3216_v59, %v3209_v44  ;;  %v3309_v36 = vpop.permute.xlu0 %3308 }
0x1cba   :  { %7328 = vmatmul.mubr.msk.f32.vlgmr.msra.gmra.mrb[30].mxu0 %vm66_vm0, %v3217_v20 }
0x1cbb   :  { %7981 = vmatpush3.bf16.msra.mxu0 %v9359_v26  ;;  %7338 = vmatprep.mubr.msk.f32.mxu0 %vm8727_vm1, %v8728_v29 }
0x1cbc   :  { %7982 = vmatprep.subr.bf16.mxu0 %v8726_v19 }
0x1cbf   :  { %7984 = vmatpush3.bf16.msra.mxu0 %v9364_v63 }
0x1cc0   :  { %7991 = vmatprep.subr.bf16.mxu0 %v8726_v19 }
0x1d8d   :  { %v3287_v15 = vpop.f32.mrb[30].mxu0 }
0x1d8e   :  { %v3288_v25 = vadd.f32 %v9412_v58, %v3287_v15  ;;  %v7329_v55 = vpop.f32.mrb[31].mxu0 }
0x1d90   :  { %v3292_v1 = vrot.slane %v3288_v25, 6 }
0x1d92   :  { %3301 = vrot.lane.b32.xlu1 %v3292_v1, %s8730_s21  ;;  %v3294_v52 = vadd.f32 %v3292_v1, %v9431_v11 }
0x1d94   :  { %v6539_v33 = vmul.f32 -1.442695, %v3294_v52 }
0x1d96   :  { %3316 = vperm.xlu1 %8289, %v9417_v3   ;;  %8478 = vpow2.f32 %v6539_v33 }
0x1d9a   :  { %8291 = vset.pattern.permute.xlu1 %v9958_v53 }
0x1da0   :  { %v8479_v2 = vpop.eup %8478 }
0x1da1   :  { %v3298_v28 = vadd.f32 1.0, %v8479_v2 }
0x1da3   :  { %8480 = vrcp.f32 %v3298_v28 }
0x1dad   :  { %v8481_v30 = vpop.eup %8480 }
0x1e04   :  { %v3302_v62 = vpop.permute.xlu1 %3301 }
0x1e05   :  { %v3304_v34 = vmul.f32 %v8481_v30, %v3302_v62 }
0x1e07   :  { %v3305_v27 = vadd.f32 %v3304_v34, %v9436_v8 }
0x1e09   :  { %8482 = vtanh.f32 %v3305_v27 }
0x1e13   :  { %v8483_v43 = vpop.eup %8482 }
0x1e14   :  { %v3312_v35 = vrot.slane %v8483_v43, 2 }
0x1e15   :  { %v3317_v50 = vpop.permute.xlu1 %3316 }
0x1e16   :  { %v3314_v24 = vmul.f32 %v3312_v35, %v3309_v36  ;;  %v3319_v44 = vmul.f32 %v3317_v50, %v3217_v20  ;;  %v3412_v35 = vpop.permute.xlu0 %3411 }
0x1e18   :  { %v3320_v59 = vadd.f32 %v3319_v44, %v3314_v24 }
0x1e1a   :  { %7339 = vmatmul.mubr.msk.f32.vlgmr.msra.gmra.mrb[32].mxu0 %vm66_vm0, %v3320_v59 }
0x1e1b   :  { %7993 = vmatpush3.bf16.msra.mxu0 %v9359_v26  ;;  %7360 = vmatprep.mubr.msk.f32.mxu0 %vm8727_vm1, %v8728_v29 }
0x1e1c   :  { %7994 = vmatprep.subr.bf16.mxu0 %v8726_v19 }
0x1e1f   :  { %7996 = vmatpush3.bf16.msra.mxu0 %v9364_v63 }
0x1e20   :  { %8003 = vmatprep.subr.bf16.mxu0 %v8726_v19 }
0x1eed   :  { %v3390_v15 = vpop.f32.mrb[32].mxu0 }
0x1eee   :  { %v3391_v25 = vadd.f32 %v9412_v58, %v3390_v15  ;;  %v7340_v55 = vpop.f32.mrb[33].mxu0 }
0x1ef0   :  { %v3395_v1 = vrot.slane %v3391_v25, 4 }
0x1ef2   :  { %3404 = vrot.lane.b32.xlu1 %v3395_v1, %s8730_s21  ;;  %v3397_v20 = vadd.f32 %v3395_v1, %v9431_v11 }
0x1ef4   :  { %v6541_v52 = vmul.f32 -1.442695, %v3397_v20 }
0x1ef6   :  { %3419 = vperm.xlu1 %8291, %v9417_v3   ;;  %8484 = vpow2.f32 %v6541_v52 }
0x1efa   :  { %8293 = vset.pattern.permute.xlu1 %v8735_v46 }
0x1f00   :  { %v8485_v33 = vpop.eup %8484 }
0x1f01   :  { %v3401_v2 = vadd.f32 1.0, %v8485_v33 }
0x1f03   :  { %8486 = vrcp.f32 %v3401_v2 }
0x1f0d   :  { %v8487_v28 = vpop.eup %8486 }
0x1f64   :  { %v3405_v30 = vpop.permute.xlu1 %3404 }
0x1f65   :  { %v3407_v62 = vmul.f32 %v8487_v28, %v3405_v30 }
0x1f67   :  { %v3408_v34 = vadd.f32 %v3407_v62, %v9436_v8 }
0x1f69   :  { %8488 = vtanh.f32 %v3408_v34 }
0x1f73   :  { %v8489_v27 = vpop.eup %8488 }
0x1f74   :  { %v3415_v43 = vrot.slane %v8489_v27, 4 }
0x1f75   :  { %v3420_v36 = vpop.permute.xlu1 %3419 }
0x1f76   :  { %v3417_v50 = vmul.f32 %v3415_v43, %v3412_v35  ;;  %v3422_v24 = vmul.f32 %v3420_v36, %v3320_v59  ;;  %v3515_v43 = vpop.permute.xlu0 %3514 }
0x1f78   :  { %v3423_v44 = vadd.f32 %v3422_v24, %v3417_v50 }
0x1f7a   :  { %7350 = vmatmul.mubr.msk.f32.vlgmr.msra.gmra.mrb[30].mxu1 %vm66_vm0, %v3423_v44 }
0x1f7b   :  { %7999 = vmatpush3.bf16.msra.mxu1 %v9359_v26  ;;  %7371 = vmatprep.mubr.msk.f32.mxu1 %vm8727_vm1, %v8728_v29 }
0x1f7c   :  { %8000 = vmatprep.subr.bf16.mxu1 %v8726_v19 }
0x1f7f   :  { %8002 = vmatpush3.bf16.msra.mxu1 %v9364_v63 }
0x1f80   :  { %8009 = vmatprep.subr.bf16.mxu1 %v8726_v19 }
0x204d   :  { %v3493_v15 = vpop.f32.mrb[30].mxu1 }
0x204e   :  { %v3494_v25 = vadd.f32 %v9412_v58, %v3493_v15  ;;  %v7351_v55 = vpop.f32.mrb[31].mxu1 }
0x2050   :  { %v3498_v1 = vrot.slane %v3494_v25, 2 }
0x2052   :  { %3507 = vrot.lane.b32.xlu1 %v3498_v1, %s8730_s21  ;;  %v3500_v59 = vadd.f32 %v3498_v1, %v9431_v11 }
0x2054   :  { %v6543_v20 = vmul.f32 -1.442695, %v3500_v59 }
0x2056   :  { %3522 = vperm.xlu1 %8293, %v9417_v3   ;;  %8490 = vpow2.f32 %v6543_v20 }
0x205a   :  { %8295 = vset.pattern.permute.xlu1 %v8736_v6 }
0x2060   :  { %v8491_v52 = vpop.eup %8490 }
0x2061   :  { %v3504_v33 = vadd.f32 1.0, %v8491_v52 }
0x2063   :  { %8492 = vrcp.f32 %v3504_v33 }
0x206d   :  { %v8493_v2 = vpop.eup %8492 }
0x20c4   :  { %v3508_v28 = vpop.permute.xlu1 %3507 }
0x20c5   :  { %v3510_v30 = vmul.f32 %v8493_v2, %v3508_v28 }
0x20c7   :  { %v3511_v62 = vadd.f32 %v3510_v30, %v9436_v8 }
0x20c9   :  { %8494 = vtanh.f32 %v3511_v62  ;;  %v3616_v62 = vpop.permute.xlu0 %3615 }
0x20d3   :  { %v8495_v34 = vpop.eup %8494 }
0x20d4   :  { %v3518_v27 = vrot.slane %v8495_v34, 6 }
0x20d5   :  { %v3523_v35 = vpop.permute.xlu1 %3522 }
0x20d6   :  { %v3520_v36 = vmul.f32 %v3518_v27, %v3515_v43  ;;  %v3525_v50 = vmul.f32 %v3523_v35, %v3423_v44 }
0x20d8   :  { %v3526_v24 = vadd.f32 %v3525_v50, %v3520_v36 }
0x20da   :  { %7361 = vmatmul.mubr.msk.f32.vlgmr.msra.gmra.mrb[34].mxu0 %vm66_vm0, %v3526_v24 }
0x20db   :  { %8005 = vmatpush3.bf16.msra.mxu0 %v9359_v26  ;;  %7382 = vmatprep.mubr.msk.f32.mxu0 %vm8727_vm1, %v8728_v29 }
0x20dc   :  { %8006 = vmatprep.subr.bf16.mxu0 %v8726_v19 }
0x20df   :  { %8008 = vmatpush3.bf16.msra.mxu0 %v9364_v63 }
0x20e0   :  { %8015 = vmatprep.subr.bf16.mxu0 %v8726_v19 }
0x21ad   :  { %v3596_v15 = vpop.f32.mrb[34].mxu0 }
0x21ae   :  { %v3597_v25 = vadd.f32 %v9412_v58, %v3596_v15  ;;  %v7362_v55 = vpop.f32.mrb[35].mxu0 }
0x21b0   :  { %3608 = vrot.lane.b32.xlu1 %v3597_v25, %s8730_s21  ;;  %v3600_v44 = vadd.f32 %v3597_v25, %v9275_v22 }
0x21b2   :  { %v6545_v1 = vmul.f32 -1.442695, %v3600_v44 }
0x21b4   :  { %3620 = vperm.xlu1 %8295, %v9417_v3   ;;  %8496 = vpow2.f32 %v6545_v1 }
0x21b8   :  { %8297 = vset.pattern.permute.xlu1 %v8737_v47 }
0x21be   :  { %v8497_v59 = vpop.eup %8496 }
0x21bf   :  { %v3604_v20 = vadd.f32 1.0, %v8497_v59 }
0x21c1   :  { %8498 = vrcp.f32 %v3604_v20 }
0x21cb   :  { %v8499_v52 = vpop.eup %8498 }
0x2222   :  { %v3609_v33 = vpop.permute.xlu1 %3608 }
0x2223   :  { %v3611_v2 = vmul.f32 %v8499_v52, %v3609_v33 }
0x2225   :  { %v3612_v28 = vadd.f32 %v3611_v2, %v9278_v23 }
0x2227   :  { %8500 = vtanh.f32 %v3612_v28 }
0x2231   :  { %v8501_v30 = vpop.eup %8500 }
0x2232   :  { %v3618_v27 = vmul.f32 %v8501_v30, %v3616_v62  ;;  %v3716_v30 = vpop.permute.xlu0 %3715 }
0x2233   :  { %v3621_v34 = vpop.permute.xlu1 %3620 }
0x2234   :  { %v3623_v43 = vmul.f32 %v3621_v34, %v3526_v24 }
0x2236   :  { %v3624_v35 = vadd.f32 %v3623_v43, %v3618_v27 }
0x2238   :  { %7372 = vmatmul.mubr.msk.f32.vlgmr.msra.gmra.mrb[32].mxu1 %vm66_vm0, %v3624_v35 }
0x2239   :  { %8011 = vmatpush3.bf16.msra.mxu1 %v9359_v26  ;;  %7393 = vmatprep.mubr.msk.f32.mxu1 %vm8727_vm1, %v8728_v29 }
0x223a   :  { %8012 = vmatprep.subr.bf16.mxu1 %v8726_v19 }
0x223d   :  { %8014 = vmatpush3.bf16.msra.mxu1 %v9364_v63 }
0x230b   :  { %v3694_v36 = vpop.f32.mrb[32].mxu1 }
0x230c   :  { %v3695_v50 = vadd.f32 %v9412_v58, %v3694_v36  ;;  %v7373_v15 = vpop.f32.mrb[33].mxu1 }
0x230e   :  { %v3699_v25 = vrot.slane %v3695_v50, 6 }
0x2310   :  { %3708 = vrot.lane.b32.xlu1 %v3699_v25, %s8730_s21  ;;  %v3701_v24 = vadd.f32 %v3699_v25, %v9275_v22 }
0x2312   :  { %v6547_v55 = vmul.f32 -1.442695, %v3701_v24 }
0x2314   :  { %3723 = vperm.xlu1 %8297, %v9417_v3   ;;  %8502 = vpow2.f32 %v6547_v55 }
0x2318   :  { %8299 = vset.pattern.permute.xlu1 %v8738_v40 }
0x231e   :  { %v8503_v44 = vpop.eup %8502 }
0x231f   :  { %v3705_v1 = vadd.f32 1.0, %v8503_v44 }
0x2321   :  { %8504 = vrcp.f32 %v3705_v1 }
0x232b   :  { %v8505_v59 = vpop.eup %8504 }
0x2382   :  { %v3709_v20 = vpop.permute.xlu1 %3708 }
0x2383   :  { %v3711_v52 = vmul.f32 %v8505_v59, %v3709_v20 }
0x2385   :  { %v3712_v33 = vadd.f32 %v3711_v52, %v9278_v23 }
0x2387   :  { %8506 = vtanh.f32 %v3712_v33 }
0x2391   :  { %v8507_v2 = vpop.eup %8506 }
0x2392   :  { %v3719_v28 = vrot.slane %v8507_v2, 2 }
0x2393   :  { %v3724_v62 = vpop.permute.xlu1 %3723 }
0x2394   :  { %v3721_v34 = vmul.f32 %v3719_v28, %v3716_v30  ;;  %v3726_v27 = vmul.f32 %v3724_v62, %v3624_v35  ;;  %v3819_v28 = vpop.permute.xlu0 %3818 }
0x2396   :  { %v3727_v43 = vadd.f32 %v3726_v27, %v3721_v34 }
0x2398   :  { %7383 = vmatmul.mubr.msk.f32.vlgmr.msra.gmra.mrb[36].mxu0 %vm66_vm0, %v3727_v43 }
0x2399   :  { %7420 = vmatprep.mubr.msk.f32.mxu0 %vm8727_vm1, %v8728_v29 }
0x246b   :  { %v3797_v36 = vpop.f32.mrb[36].mxu0 }
0x246c   :  { %v3798_v50 = vadd.f32 %v9412_v58, %v3797_v36  ;;  %v7384_v15 = vpop.f32.mrb[37].mxu0 }
0x246e   :  { %v3802_v25 = vrot.slane %v3798_v50, 4 }
0x2470   :  { %3811 = vrot.lane.b32.xlu1 %v3802_v25, %s8730_s21  ;;  %v3804_v24 = vadd.f32 %v3802_v25, %v9275_v22 }
0x2472   :  { %v6549_v35 = vmul.f32 -1.442695, %v3804_v24  ;;  %v2800_v24 = vld [vmem:[#allocation7 + $0x220] sm:$0xff] }
0x2474   :  { %3826 = vperm.xlu1 %8299, %v9417_v3   ;;  %8508 = vpow2.f32 %v6549_v35  ;;  %v2801_v35 = vld [vmem:[#allocation7 + $0x228] sm:$0xff] }
0x2478   :  { %8301 = vset.pattern.permute.xlu1 %v8739_v10 }
0x247e   :  { %v8509_v55 = vpop.eup %8508 }
0x247f   :  { %v3808_v44 = vadd.f32 1.0, %v8509_v55 }
0x2481   :  { %8510 = vrcp.f32 %v3808_v44  ;;  %v2802_v44 = vld [vmem:[#allocation7 + $0x230] sm:$0xff] }
0x248b   :  { %v8511_v1 = vpop.eup %8510 }
0x24e2   :  { %v3812_v59 = vpop.permute.xlu1 %3811 }
0x24e3   :  { %v3814_v20 = vmul.f32 %v8511_v1, %v3812_v59  ;;  %v9529_v1 = vpack.c.bf16 %v2802_v44, %v2801_v35  ;;  %v2804_v59 = vld [vmem:[#allocation7 + $0x240] sm:$0xff]  ;;  %v2809_v44 = vld [vmem:[#allocation7 + $0x268] sm:$0xff] }
0x24e5   :  { %v3815_v52 = vadd.f32 %v3814_v20, %v9278_v23 }
0x24e7   :  { %8512 = vtanh.f32 %v3815_v52  ;;  %v2805_v52 = vld [vmem:[#allocation7 + $0x248] sm:$0xff] }
0x24f1   :  { %v8513_v33 = vpop.eup %8512 }
0x24f2   :  { %v3822_v2 = vrot.slane %v8513_v33, 4  ;;  %v2806_v33 = vld [vmem:[#allocation7 + $0x250] sm:$0xff] }
0x24f3   :  { %v3827_v30 = vpop.permute.xlu1 %3826 }
0x24f4   :  { %v3824_v62 = vmul.f32 %v3822_v2, %v3819_v28  ;;  %v3829_v34 = vmul.f32 %v3827_v30, %v3727_v43  ;;  %v2799_v43 = vld [vmem:[#allocation7 + $0x218] sm:$0xff]  ;;  %v2808_v28 = vld [vmem:[#allocation7 + $0x260] sm:$0xff] }
0x24f5   :  { %v9526_v55 = vpack.c.bf16 %v2800_v24, %v2799_v43  ;;  %v2807_v2 = vld [vmem:[#allocation7 + $0x258] sm:$0xff] }
0x24f6   :  { %v3830_v27 = vadd.f32 %v3829_v34, %v3824_v62  ;;  %v9541_v30 = vpack.c.bf16 %v2808_v28, %v2807_v2 }
0x24f7   :  { %8017 = vmatpush3.bf16.msra.mxu0 %v9526_v55 }
0x24f8   :  { %7394 = vmatmul.mubr.msk.f32.vlgmr.msra.gmra.mrb[34].mxu1 %vm66_vm0, %v3830_v27  ;;  %8018 = vmatprep.subr.bf16.mxu0 %v8726_v19 }
0x24f9   :  { %7425 = vmatprep.mubr.msk.f32.mxu1 %vm2684_vm6, %v9256_v38 }
0x24fb   :  { %8020 = vmatpush3.bf16.msra.mxu0 %v9529_v1 }
0x24fc   :  { %8021 = vmatprep.subr.bf16.mxu0 %v8726_v19 }
0x25cb   :  { %v3900_v36 = vpop.f32.mrb[34].mxu1 }
0x25cc   :  { %v3901_v50 = vadd.f32 %v9412_v58, %v3900_v36  ;;  %v7395_v15 = vpop.f32.mrb[35].mxu1 }
0x25ce   :  { %v3905_v25 = vrot.slane %v3901_v50, 2 }
0x25d0   :  { %3914 = vrot.lane.b32.xlu1 %v3905_v25, %s8730_s21  ;;  %v3907_v62 = vadd.f32 %v3905_v25, %v9275_v22 }
0x25d2   :  { %v6551_v34 = vmul.f32 -1.442695, %v3907_v62 }
0x25d4   :  { %3929 = vperm.xlu1 %8301, %v9417_v3   ;;  %v2803_v3 = vld [vmem:[#allocation7 + $0x238] sm:$0xff]  ;;  %8514 = vpow2.f32 %v6551_v34 }
0x25d5   :  { %v9533_v20 = vpack.c.bf16 %v2804_v59, %v2803_v3  ;;  %v2810_v3 = vld [vmem:[#allocation7 + $0x270] sm:$0xff] }
0x25d6   :  { %v9548_v59 = vpack.c.bf16 %v2810_v3, %v2809_v44 }
0x25d7   :  { %8023 = vmatpush3.bf16.msra.mxu0 %v9533_v20 }
0x25d8   :  { %3934 = vrot.lane.b32.xlu1 %v9226_v57, %s8730_s21  ;;  %8024 = vmatprep.subr.bf16.mxu0 %v8726_v19 }
0x25d9   :  { %8307 = vset.pattern.permute.xlu1 %v8732_v18 }
0x25dc   :  { %3942 = vrot.lane.b32.xlu1 %v9226_v57, %s8731_s22  ;;  %v9537_v57 = vpack.c.bf16 %v2806_v33, %v2805_v52  ;;  %v3922_v33 = vpop.permute.xlu0 %3921 }
0x25de   :  { %8026 = vmatpush3.bf16.msra.mxu0 %v9537_v57  ;;  %v8515_v36 = vpop.eup %8514 }
0x25df   :  { %8027 = vmatprep.subr.bf16.mxu0 %v8726_v19  ;;  %v3911_v50 = vadd.f32 1.0, %v8515_v36 }
0x25e1   :  { %8516 = vrcp.f32 %v3911_v50 }
0x25e2   :  { %8029 = vmatpush3.bf16.msra.mxu0 %v9541_v30 }
0x25e3   :  { %8030 = vmatprep.subr.bf16.mxu0 %v8726_v19 }
0x25e6   :  { %8032 = vmatpush3.bf16.msra.mxu0 %v9548_v59 }
0x25e7   :  { %8066 = vmatprep.subr.bf16.mxu0 %v9346_v48 }
0x25eb   :  { %v8517_v15 = vpop.eup %8516 }
0x2642   :  { %v3915_v43 = vpop.permute.xlu1 %3914 }
0x2643   :  { %v3917_v24 = vmul.f32 %v8517_v15, %v3915_v43 }
0x2645   :  { %v3918_v35 = vadd.f32 %v3917_v24, %v9278_v23 }
0x2647   :  { %8518 = vtanh.f32 %v3918_v35 }
0x2651   :  { %v8519_v25 = vpop.eup %8518 }
0x2652   :  { %v3925_v52 = vrot.slane %v8519_v25, 6 }
0x2653   :  { %v3930_v2 = vpop.permute.xlu1 %3929 }
0x2654   :  { %v3927_v28 = vmul.f32 %v3925_v52, %v3922_v33  ;;  %v3932_v62 = vmul.f32 %v3930_v2, %v3830_v27  ;;  %v9560_v27 = vld [vmem:[#allocation7 + $0x278] ss:$0 sm:$0xff] }
0x2656   :  { %v3933_v34 = vadd.f32 %v3932_v62, %v3927_v28 }
0x2657   :  { %v3935_v50 = vpop.permute.xlu1 %3934 }
0x2658   :  { %v3938_v36 = vrot.slane %v3933_v34, 2 }
0x265a   :  { %3939 = vrot.lane.b32.xlu0 %v3938_v36, %s8731_s22 }
0x265b   :  { %v3943_v43 = vpop.permute.xlu1 %3942 }
0x26cc   :  { %v3940_v15 = vpop.permute.xlu0 %3939 }
0x26cd   :  { %v3945_v24 = vsel %vm66_vm0, %v3935_v50, %v3940_v15 }
0x26ce   :  { %v3946_v35 = vsel %vm2850_vm8, %v3945_v24, %v3943_v43 }
0x26cf   :  { %v3952_v44 = vrot.slane %v3946_v35, 6 }
0x26d1   :  { %7421 = vmatmul.mubr.msk.f32.vlgmr.msra.gmra.mrb[38].mxu0 %vm2853_vm9, %v3952_v44 }
0x26d2   :  { %8068 = vmatpush3.bf16.msra.mxu0 %v9346_v48 }
0x26d3   :  { %8070 = vmatprep.subr.bf16.mxu0 %v9348_v14 }
0x26d6   :  { %8072 = vmatpush3.bf16.msra.mxu0 %v9348_v14 }
0x26d7   :  { %8073 = vmatprep.subr.bf16.mxu0 %v8726_v19 }
0x27a4   :  { %v4021_v3 = vpop.f32.mrb[38].mxu0 }
0x27a5   :  { %v4022_v25 = vadd.f32 %v9560_v27, %v4021_v3  ;;  %v7422_v52 = vpop.f32.mrb[39].mxu0 }
0x27a7   :  { %v9563_v33 = vmax.f32 %v4022_v25, 0.0 }
0x27a9   :  { %7423 = vmatprep.subr.msk.mxu1 %vm2431_vm2, %v9563_v33 }
0x27aa   :  { %7424 = vmatpush3.msk.msra.mxu1 %vm2431_vm2, %v9563_v33 }
0x27ab   :  { %7426 = vmatmul.mubr.msk.f32.vlgmr.msra.gmra.mrb[36].mxu1 %vm2684_vm6, %v9265_v12  ;;  %8034 = vmatprep.subr.bf16.mxu1 %v9284_v0 }
0x27ac   :  { %8036 = vmatpush3.bf16.msra.mxu1 %v9284_v0 }
0x27ad   :  { %8038 = vmatprep.subr.bf16.mxu1 %v9286_v42 }
0x27b0   :  { %8040 = vmatpush3.bf16.msra.mxu1 %v9286_v42 }
0x27b1   :  { %8042 = vmatprep.subr.bf16.mxu1 %v9293_v56 }
0x27b4   :  { %8044 = vmatpush3.bf16.msra.mxu1 %v9293_v56 }
0x27b5   :  { %8046 = vmatprep.subr.bf16.mxu1 %v9297_v54 }
0x27b8   :  { %8048 = vmatpush3.bf16.msra.mxu1 %v9297_v54 }
0x27b9   :  { %8050 = vmatprep.subr.bf16.mxu1 %v9301_v5 }
0x27bc   :  { %8052 = vmatpush3.bf16.msra.mxu1 %v9301_v5 }
0x27bd   :  { %8054 = vmatprep.subr.bf16.mxu1 %v9305_v61 }
0x27c0   :  { %8056 = vmatpush3.bf16.msra.mxu1 %v9305_v61 }
0x27c1   :  { %8058 = vmatprep.subr.bf16.mxu1 %v9310_v49 }
0x27c4   :  { %8060 = vmatpush3.bf16.msra.mxu1 %v9310_v49 }
0x27c5   :  { %8062 = vmatprep.subr.bf16.mxu1 %v9314_v39 }
0x27c8   :  { %8064 = vmatpush3.bf16.msra.mxu1 %v9314_v39 }
0x27c9   :  { %8082 = vmatprep.subr.bf16.mxu1 %v8726_v19 }
0x287e   :  { %v7427_v2 = vpop.f32.mrb[36].mxu1 }
0x287f   :  { %4108 = vrot.lane.b32.xlu1 %v7427_v2, %s8731_s22  ;;  %v4095_v28 = vpop.f32.mrb[37].mxu1 }
0x2880   :  { %4106 = vrot.lane.b32.xlu0 %v4095_v28, %s8731_s22 }
0x28f1   :  { %v4109_v62 = vpop.permute.xlu1 %4108 }
0x28f2   :  { %v4115_v34 = vsub.f32 %v9234_v17, %v4109_v62  ;;  %v4107_v36 = vpop.permute.xlu0 %4106  ;;  %v4113_v35 = vmul.f32 %v4109_v62, %v9234_v17 }
0x28f3   :  { %v4114_v50 = vsub.f32 %v9228_v37, %v4107_v36  ;;  %v4112_v44 = vmul.f32 %v4107_v36, %v9228_v37 }
0x28f4   :  { %v4117_v15 = vand.u32 2147483647, %v4115_v34  ;;  %v4127_v3 = vsel %vm66_vm0, %v9326_v7, %v4113_v35 }
0x28f5   :  { %v4116_v43 = vand.u32 2147483647, %v4114_v50  ;;  %v4126_v25 = vsel %vm66_vm0, %v9328_v32, %v4112_v44  ;;  %v4129_v50 = vsel %vm2850_vm8, %v4127_v3, %v9332_v60 }
0x28f6   :  { %v4128_v34 = vsel %vm2850_vm8, %v4126_v25, %v9334_v9 }
0x28f7   :  { %v8302_v24 = vpack.i.bf16 %v4117_v15, %v4116_v43 }
0x28f9   :  { %8303 = vrot.lane.b32.xlu0 %v8302_v24, %s8729_s2 }
0x296b   :  { %v8304_v52 = vpop.permute.xlu0 %8303 }
0x296c   :  { %v8306_v2 = vunpack.i.h.bf16 %v8304_v52  ;;  %v8305_v28 = vunpack.i.l.bf16 %v8304_v52 }
0x296e   :  { %v4130_v15 = vsel %vm2853_vm9, %v4128_v34, %v8305_v28  ;;  %v4131_v62 = vsel %vm2853_vm9, %v4129_v50, %v8306_v2 }
0x296f   :  { %7460 = vmatprep.mubr.f32.mxu1 %v4130_v15 }
0x2970   :  { %7461 = vmatmul.mubr.f32.vlgmr.msra.gmra.mrb[38].mxu1 %v4131_v62 }
0x2971   :  { %8084 = vmatpush3.bf16.msra.mxu1 %v9359_v26  ;;  %7500 = vmatprep.mubr.msk.f32.mxu1 %vm8727_vm1, %v8728_v29 }
0x2972   :  { %8085 = vmatprep.subr.bf16.mxu1 %v8726_v19 }
0x2975   :  { %8087 = vmatpush3.bf16.msra.mxu1 %v9364_v63 }
0x2976   :  { %8094 = vmatprep.subr.bf16.mxu1 %v8726_v19 }
0x2a43   :  { %v7462_v36 = vpop.f32.mrb[38].mxu1 }
0x2a44   :  { %v4204_v43 = vadd.f32 %v7462_v36, %v9355_v45  ;;  %v4198_v24 = vpop.f32.mrb[39].mxu1 }
0x2a45   :  { %v4199_v35 = vadd.f32 %v9355_v45, %v4198_v24 }
0x2a47   :  { %8520 = vtanh.f32 %v4199_v35 }
0x2a48   :  { %8522 = vtanh.f32 %v4204_v43 }
0x2a51   :  { %v8521_v44 = vpop.eup %8520 }
0x2a52   :  { %v8523_v3 = vpop.eup %8522  ;;  %7471 = vmatprep.mubr.msk.f32.mxu0 %vm66_vm0, %v8521_v44 }
0x2a53   :  { %7472 = vmatmul.mubr.msk.f32.vlgmr.msra.gmra.mrb[40].mxu0 %vm66_vm0, %v8523_v3 }
0x2a54   :  { %7478 = vmatprep.mubr.msk.f32.mxu0 %vm8727_vm1, %v8728_v29 }
0x2b26   :  { %v7473_v25 = vpop.f32.mrb[40].mxu0 }
0x2b27   :  { %v4287_v52 = vadd.f32 %v7473_v25, %v9380_v4  ;;  %v4281_v2 = vpop.f32.mrb[41].mxu0 }
0x2b28   :  { %v4282_v28 = vadd.f32 %v9380_v4, %v4281_v2 }
0x2b29   :  { %4297 = vperm.xlu0 %8308, %v4287_v52  }
0x2b2a   :  { %4292 = vperm.xlu1 %8307, %v4282_v28  }
0x2ba8   :  { %v4298_v45 = vpop.permute.xlu0 %4297 }
0x2ba9   :  { %v4301_v34 = vmul.f32 %v9390_v16, %v4298_v45  ;;  %v4293_v50 = vpop.permute.xlu1 %4292 }
0x2baa   :  { %v4300_v15 = vmul.f32 %v9393_v21, %v4293_v50 }
0x2bac   :  { %v8074_v62 = vpack.c.bf16 %v4301_v34, %v4300_v15 }
0x2bae   :  { %8075 = vmatpush3.bf16.msra.mxu0 %v8074_v62 }
0x2baf   :  { %8076 = vmatprep.subr.bf16.mxu0 %v8726_v19 }
0x2bb1   :  { %7479 = vmatmul.mubr.msk.f32.vlgmr.msra.gmra.mrb[42].mxu0 %vm3034_vm4, %v9400_v51 }
0x2bb2   :  { %8078 = vmatpush3.bf16.msra.mxu0 %v9359_v26  ;;  %7489 = vmatprep.mubr.msk.f32.mxu0 %vm8727_vm1, %v8728_v29 }
0x2bb3   :  { %8079 = vmatprep.subr.bf16.mxu0 %v8726_v19 }
0x2bb6   :  { %8081 = vmatpush3.bf16.msra.mxu0 %v9364_v63 }
0x2bb7   :  { %8088 = vmatprep.subr.bf16.mxu0 %v8726_v19 }
0x2c84   :  { %v4368_v4 = vpop.f32.mrb[42].mxu0 }
0x2c85   :  { %v7480_v36 = vpop.f32.mrb[43].mxu0  ;;  %v4372_v43 = vsel %vm3108_vm5, %v4368_v4, -inf }
0x2c86   :  { %4373 = vmax.xlane.f32.xlu1 %v4372_v43 }
0x2d13   :  { %v4374_v24 = vpop.xlane.xlu1 %4373 }
0x2d14   :  { %v4375_v35 = vsub.f32 %v4368_v4, %v4374_v24 }
0x2d16   :  { %v4376_v44 = vmul.f32 1.442695, %v4375_v35 }
0x2d18   :  { %8524 = vpow2.f32 %v4376_v44 }
0x2d22   :  { %v8525_v3 = vpop.eup %8524 }
0x2d23   :  { %v4378_v25 = vsel %vm3108_vm5, %v8525_v3, 0.0 }
0x2d24   :  { %4379 = vadd.xlane.f32.xlu0 %v4378_v25 }
0x2db1   :  { %v4380_v52 = vpop.xlane.xlu0 %4379 }
0x2db2   :  { %8526 = vrcp.f32 %v4380_v52 }
0x2dbc   :  { %v8527_v2 = vpop.eup %8526 }
0x2dbd   :  { %v9632_v28 = vmul.f32 %v8527_v2, %v8525_v3 }
0x2dbf   :  { %4385 = vperm.xlu1 %8307, %v9632_v28   ;;  %v4389_v45 = vsub.f32 1.0, %v9632_v28 }
0x2dc1   :  { %4392 = vperm.xlu0 %8308, %v4389_v45  }
0x2dc3   :  { %8309 = vset.pattern.permute.xlu1 %v9956_v31 }
0x2dc5   :  { %8310 = vset.pattern.permute.xlu0 %v9956_v31 }
0x2dc6   :  { %4495 = vperm.xlu0 %8310, %v4389_v45  }
0x2dca   :  { %8312 = vset.pattern.permute.xlu0 %v9958_v53 }
0x2dcb   :  { %4598 = vperm.xlu0 %8312, %v4389_v45  }
0x2dcf   :  { %8314 = vset.pattern.permute.xlu0 %v8735_v46 }
0x2dd0   :  { %4701 = vperm.xlu0 %8314, %v4389_v45  }
0x2dd4   :  { %8316 = vset.pattern.permute.xlu0 %v8736_v6 }
0x2dd5   :  { %4799 = vperm.xlu0 %8316, %v4389_v45  }
0x2dd9   :  { %8318 = vset.pattern.permute.xlu0 %v8737_v47 }
0x2dda   :  { %4902 = vperm.xlu0 %8318, %v4389_v45  }
0x2dde   :  { %8320 = vset.pattern.permute.xlu0 %v8738_v40 }
0x2ddf   :  { %5005 = vperm.xlu0 %8320, %v4389_v45  }
0x2de3   :  { %8322 = vset.pattern.permute.xlu0 %v8739_v10 }
0x2de4   :  { %5108 = vperm.xlu0 %8322, %v4389_v45  }
0x2de8   :  { %8329 = vset.pattern.permute.xlu0 %v8732_v18 }
0x2e3e   :  { %v4386_v34 = vpop.permute.xlu1 %4385 }
0x2e3f   :  { %v4388_v15 = vmul.f32 %v9439_v13, %v4386_v34 }
0x2e40   :  { %v4393_v50 = vpop.permute.xlu0 %4392 }
0x2e41   :  { %v4395_v62 = vmul.f32 0.0, %v4393_v50 }
0x2e43   :  { %v4396_v4 = vadd.f32 %v4395_v62, %v4388_v15 }
0x2e45   :  { %7490 = vmatmul.mubr.msk.f32.vlgmr.msra.gmra.mrb[44].mxu0 %vm66_vm0, %v4396_v4  ;;  %v4496_v62 = vpop.permute.xlu0 %4495 }
0x2e46   :  { %8090 = vmatpush3.bf16.msra.mxu0 %v9359_v26  ;;  %7511 = vmatprep.mubr.msk.f32.mxu0 %vm8727_vm1, %v8728_v29 }
0x2e47   :  { %8091 = vmatprep.subr.bf16.mxu0 %v8726_v19 }
0x2e4a   :  { %8093 = vmatpush3.bf16.msra.mxu0 %v9364_v63 }
0x2e4b   :  { %8100 = vmatprep.subr.bf16.mxu0 %v8726_v19 }
0x2f18   :  { %v4466_v36 = vpop.f32.mrb[44].mxu0 }
0x2f19   :  { %v4467_v43 = vadd.f32 %v9412_v58, %v4466_v36  ;;  %v7491_v24 = vpop.f32.mrb[45].mxu0 }
0x2f1a   :  { %v4498_v24 = vmul.f32 %v4496_v62, %v4396_v4 }
0x2f1b   :  { %v4471_v35 = vrot.slane %v4467_v43, 6 }
0x2f1d   :  { %4480 = vrot.lane.b32.xlu1 %v4471_v35, %s8730_s21  ;;  %v4473_v44 = vadd.f32 %v4471_v35, %v9431_v11 }
0x2f1f   :  { %v6561_v3 = vmul.f32 -1.442695, %v4473_v44 }
0x2f21   :  { %4487 = vperm.xlu1 %8309, %v9632_v28   ;;  %8528 = vpow2.f32 %v6561_v3 }
0x2f25   :  { %8311 = vset.pattern.permute.xlu1 %v9958_v53 }
0x2f2b   :  { %v8529_v25 = vpop.eup %8528 }
0x2f2c   :  { %v4477_v52 = vadd.f32 1.0, %v8529_v25 }
0x2f2e   :  { %8530 = vrcp.f32 %v4477_v52 }
0x2f38   :  { %v8531_v2 = vpop.eup %8530 }
0x2f8f   :  { %v4481_v45 = vpop.permute.xlu1 %4480 }
0x2f90   :  { %v4483_v34 = vmul.f32 %v8531_v2, %v4481_v45 }
0x2f92   :  { %v4484_v50 = vadd.f32 %v4483_v34, %v9436_v8 }
0x2f94   :  { %8532 = vtanh.f32 %v4484_v50 }
0x2f9e   :  { %v8533_v15 = vpop.eup %8532 }
0x2f9f   :  { %v4491_v36 = vrot.slane %v8533_v15, 2 }
0x2fa0   :  { %v4488_v43 = vpop.permute.xlu1 %4487 }
0x2fa1   :  { %v4493_v31 = vmul.f32 %v4491_v36, %v4488_v43  ;;  %v4599_v43 = vpop.permute.xlu0 %4598 }
0x2fa3   :  { %v4499_v53 = vadd.f32 %v4498_v24, %v4493_v31 }
0x2fa5   :  { %7501 = vmatmul.mubr.msk.f32.vlgmr.msra.gmra.mrb[40].mxu1 %vm66_vm0, %v4499_v53 }
0x2fa6   :  { %8096 = vmatpush3.bf16.msra.mxu1 %v9359_v26  ;;  %7522 = vmatprep.mubr.msk.f32.mxu1 %vm8727_vm1, %v8728_v29 }
0x2fa7   :  { %8097 = vmatprep.subr.bf16.mxu1 %v8726_v19 }
0x2faa   :  { %8099 = vmatpush3.bf16.msra.mxu1 %v9364_v63 }
0x2fab   :  { %8106 = vmatprep.subr.bf16.mxu1 %v8726_v19 }
0x3078   :  { %v4569_v35 = vpop.f32.mrb[40].mxu1 }
0x3079   :  { %v4570_v44 = vadd.f32 %v9412_v58, %v4569_v35  ;;  %v7502_v3 = vpop.f32.mrb[41].mxu1  ;;  %v4601_v35 = vmul.f32 %v4599_v43, %v4499_v53 }
0x307b   :  { %v4574_v4 = vrot.slane %v4570_v44, 4 }
0x307d   :  { %4583 = vrot.lane.b32.xlu1 %v4574_v4, %s8730_s21  ;;  %v4576_v31 = vadd.f32 %v4574_v4, %v9431_v11 }
0x307f   :  { %v6563_v25 = vmul.f32 -1.442695, %v4576_v31 }
0x3081   :  { %4590 = vperm.xlu1 %8311, %v9632_v28   ;;  %8534 = vpow2.f32 %v6563_v25 }
0x3085   :  { %8313 = vset.pattern.permute.xlu1 %v8735_v46 }
0x308b   :  { %v8535_v52 = vpop.eup %8534 }
0x308c   :  { %v4580_v2 = vadd.f32 1.0, %v8535_v52 }
0x308e   :  { %8536 = vrcp.f32 %v4580_v2 }
0x3098   :  { %v8537_v45 = vpop.eup %8536 }
0x30ef   :  { %v4584_v34 = vpop.permute.xlu1 %4583 }
0x30f0   :  { %v4586_v50 = vmul.f32 %v8537_v45, %v4584_v34 }
0x30f2   :  { %v4587_v15 = vadd.f32 %v4586_v50, %v9436_v8 }
0x30f4   :  { %8538 = vtanh.f32 %v4587_v15 }
0x30fe   :  { %v8539_v62 = vpop.eup %8538 }
0x30ff   :  { %v4594_v36 = vrot.slane %v8539_v62, 4 }
0x3100   :  { %v4591_v24 = vpop.permute.xlu1 %4590 }
0x3101   :  { %v4596_v44 = vmul.f32 %v4594_v36, %v4591_v24  ;;  %v4702_v24 = vpop.permute.xlu0 %4701 }
0x3103   :  { %v4602_v3 = vadd.f32 %v4601_v35, %v4596_v44 }
0x3105   :  { %7512 = vmatmul.mubr.msk.f32.vlgmr.msra.gmra.mrb[46].mxu0 %vm66_vm0, %v4602_v3  ;;  %v4704_v44 = vmul.f32 %v4702_v24, %v4602_v3  ;;  %v4800_v24 = vpop.permute.xlu0 %4799 }
0x3106   :  { %8102 = vmatpush3.bf16.msra.mxu0 %v9359_v26  ;;  %7533 = vmatprep.mubr.msk.f32.mxu0 %vm8727_vm1, %v8728_v29 }
0x3107   :  { %8103 = vmatprep.subr.bf16.mxu0 %v8726_v19 }
0x310a   :  { %8105 = vmatpush3.bf16.msra.mxu0 %v9364_v63 }
0x310b   :  { %8112 = vmatprep.subr.bf16.mxu0 %v8726_v19 }
0x31d8   :  { %v4672_v4 = vpop.f32.mrb[46].mxu0 }
0x31d9   :  { %v4673_v31 = vadd.f32 %v9412_v58, %v4672_v4  ;;  %v7513_v25 = vpop.f32.mrb[47].mxu0 }
0x31db   :  { %v4677_v53 = vrot.slane %v4673_v31, 2 }
0x31dd   :  { %4686 = vrot.lane.b32.xlu1 %v4677_v53, %s8730_s21  ;;  %v4679_v52 = vadd.f32 %v4677_v53, %v9431_v11  ;;  %v9692_v53 = vld [vmem:[#allocation7 + $0x160] ss:$0 sm:$0xff] }
0x31df   :  { %v6565_v2 = vmul.f32 -1.442695, %v4679_v52 }
0x31e1   :  { %4693 = vperm.xlu1 %8313, %v9632_v28   ;;  %8540 = vpow2.f32 %v6565_v2 }
0x31e5   :  { %8315 = vset.pattern.permute.xlu1 %v8736_v6 }
0x31eb   :  { %v8541_v45 = vpop.eup %8540 }
0x31ec   :  { %v4683_v34 = vadd.f32 1.0, %v8541_v45 }
0x31ee   :  { %8542 = vrcp.f32 %v4683_v34 }
0x31f8   :  { %v8543_v50 = vpop.eup %8542 }
0x324f   :  { %v4687_v15 = vpop.permute.xlu1 %4686 }
0x3250   :  { %v4689_v62 = vmul.f32 %v8543_v50, %v4687_v15 }
0x3252   :  { %v4690_v58 = vadd.f32 %v4689_v62, %v9436_v8 }
0x3254   :  { %8544 = vtanh.f32 %v4690_v58 }
0x325e   :  { %v8545_v36 = vpop.eup %8544 }
0x325f   :  { %v4697_v43 = vrot.slane %v8545_v36, 6 }
0x3260   :  { %v4694_v35 = vpop.permute.xlu1 %4693 }
0x3261   :  { %v4699_v4 = vmul.f32 %v4697_v43, %v4694_v35 }
0x3263   :  { %v4705_v31 = vadd.f32 %v4704_v44, %v4699_v4 }
0x3265   :  { %7523 = vmatmul.mubr.msk.f32.vlgmr.msra.gmra.mrb[42].mxu1 %vm66_vm0, %v4705_v31  ;;  %v4802_v44 = vmul.f32 %v4800_v24, %v4705_v31 }
0x3266   :  { %8108 = vmatpush3.bf16.msra.mxu1 %v9359_v26  ;;  %7544 = vmatprep.mubr.msk.f32.mxu1 %vm8727_vm1, %v8728_v29 }
0x3267   :  { %8109 = vmatprep.subr.bf16.mxu1 %v8726_v19 }
0x326a   :  { %8111 = vmatpush3.bf16.msra.mxu1 %v9364_v63 }
0x326b   :  { %8118 = vmatprep.subr.bf16.mxu1 %v8726_v19 }
0x3338   :  { %v4775_v25 = vpop.f32.mrb[42].mxu1 }
0x3339   :  { %v4776_v3 = vadd.f32 %v9692_v53, %v4775_v25  ;;  %v7524_v52 = vpop.f32.mrb[43].mxu1 }
0x333b   :  { %4787 = vrot.lane.b32.xlu1 %v4776_v3, %s8730_s21  ;;  %v4779_v2 = vadd.f32 %v4776_v3, %v9275_v22 }
0x333d   :  { %v6567_v45 = vmul.f32 -1.442695, %v4779_v2 }
0x333f   :  { %4794 = vperm.xlu1 %8315, %v9632_v28   ;;  %8546 = vpow2.f32 %v6567_v45 }
0x3343   :  { %8317 = vset.pattern.permute.xlu1 %v8737_v47 }
0x3349   :  { %v8547_v34 = vpop.eup %8546 }
0x334a   :  { %v4783_v50 = vadd.f32 1.0, %v8547_v34 }
0x334c   :  { %8548 = vrcp.f32 %v4783_v50 }
0x3356   :  { %v8549_v15 = vpop.eup %8548 }
0x33ad   :  { %v4788_v62 = vpop.permute.xlu1 %4787 }
0x33ae   :  { %v4790_v58 = vmul.f32 %v8549_v15, %v4788_v62 }
0x33b0   :  { %v4791_v36 = vadd.f32 %v4790_v58, %v9278_v23 }
0x33b2   :  { %8550 = vtanh.f32 %v4791_v36 }
0x33bc   :  { %v8551_v43 = vpop.eup %8550 }
0x33be   :  { %v4795_v35 = vpop.permute.xlu1 %4794 }
0x33bf   :  { %v4797_v4 = vmul.f32 %v8551_v43, %v4795_v35 }
0x33c1   :  { %v4803_v25 = vadd.f32 %v4802_v44, %v4797_v4  ;;  %v4903_v44 = vpop.permute.xlu0 %4902 }
0x33c3   :  { %7534 = vmatmul.mubr.msk.f32.vlgmr.msra.gmra.mrb[48].mxu0 %vm66_vm0, %v4803_v25 }
0x33c4   :  { %8114 = vmatpush3.bf16.msra.mxu0 %v9359_v26  ;;  %7555 = vmatprep.mubr.msk.f32.mxu0 %vm8727_vm1, %v8728_v29 }
0x33c5   :  { %8115 = vmatprep.subr.bf16.mxu0 %v8726_v19 }
0x33c8   :  { %8117 = vmatpush3.bf16.msra.mxu0 %v9364_v63 }
0x3496   :  { %v4873_v3 = vpop.f32.mrb[48].mxu0 }
0x3497   :  { %v4874_v52 = vadd.f32 %v9692_v53, %v4873_v3  ;;  %v7535_v2 = vpop.f32.mrb[49].mxu0  ;;  %v4905_v3 = vmul.f32 %v4903_v44, %v4803_v25 }
0x3499   :  { %v4878_v45 = vrot.slane %v4874_v52, 6 }
0x349b   :  { %4887 = vrot.lane.b32.xlu1 %v4878_v45, %s8730_s21  ;;  %v4880_v31 = vadd.f32 %v4878_v45, %v9275_v22 }
0x349d   :  { %v6569_v34 = vmul.f32 -1.442695, %v4880_v31 }
0x349f   :  { %4894 = vperm.xlu1 %8317, %v9632_v28   ;;  %8552 = vpow2.f32 %v6569_v34 }
0x34a3   :  { %8319 = vset.pattern.permute.xlu1 %v8738_v40 }
0x34a9   :  { %v8553_v50 = vpop.eup %8552 }
0x34aa   :  { %v4884_v15 = vadd.f32 1.0, %v8553_v50 }
0x34ac   :  { %8554 = vrcp.f32 %v4884_v15 }
0x34b6   :  { %v8555_v62 = vpop.eup %8554 }
0x350d   :  { %v4888_v58 = vpop.permute.xlu1 %4887 }
0x350e   :  { %v4890_v36 = vmul.f32 %v8555_v62, %v4888_v58 }
0x3510   :  { %v4891_v43 = vadd.f32 %v4890_v36, %v9278_v23 }
0x3512   :  { %8556 = vtanh.f32 %v4891_v43 }
0x351c   :  { %v8557_v24 = vpop.eup %8556 }
0x351d   :  { %v4898_v35 = vrot.slane %v8557_v24, 2 }
0x351e   :  { %v4895_v4 = vpop.permute.xlu1 %4894 }
0x351f   :  { %v4900_v52 = vmul.f32 %v4898_v35, %v4895_v4 }
0x3521   :  { %v4906_v2 = vadd.f32 %v4905_v3, %v4900_v52  ;;  %v5006_v3 = vpop.permute.xlu0 %5005 }
0x3523   :  { %7545 = vmatmul.mubr.msk.f32.vlgmr.msra.gmra.mrb[44].mxu1 %vm66_vm0, %v4906_v2 }
0x3524   :  { %8120 = vmatpush3.bf16.msra.mxu1 %v9526_v55  ;;  %7582 = vmatprep.mubr.msk.f32.mxu1 %vm8727_vm1, %v8728_v29 }
0x3525   :  { %8121 = vmatprep.subr.bf16.mxu1 %v8726_v19 }
0x3528   :  { %8123 = vmatpush3.bf16.msra.mxu1 %v9529_v1 }
0x3529   :  { %8124 = vmatprep.subr.bf16.mxu1 %v8726_v19 }
0x352c   :  { %8126 = vmatpush3.bf16.msra.mxu1 %v9533_v20 }
0x352d   :  { %8127 = vmatprep.subr.bf16.mxu1 %v8726_v19 }
0x3530   :  { %8129 = vmatpush3.bf16.msra.mxu1 %v9537_v57 }
0x3531   :  { %8130 = vmatprep.subr.bf16.mxu1 %v8726_v19 }
0x3534   :  { %8132 = vmatpush3.bf16.msra.mxu1 %v9541_v30 }
0x3535   :  { %8133 = vmatprep.subr.bf16.mxu1 %v8726_v19 }
0x3538   :  { %8135 = vmatpush3.bf16.msra.mxu1 %v9548_v59 }
0x3539   :  { %8169 = vmatprep.subr.bf16.mxu1 %v9346_v48 }
0x35f6   :  { %v4976_v25 = vpop.f32.mrb[44].mxu1 }
0x35f7   :  { %v4977_v45 = vadd.f32 %v9692_v53, %v4976_v25  ;;  %v7546_v31 = vpop.f32.mrb[45].mxu1  ;;  %v5008_v25 = vmul.f32 %v5006_v3, %v4906_v2 }
0x35f9   :  { %v4981_v34 = vrot.slane %v4977_v45, 4 }
0x35fb   :  { %4990 = vrot.lane.b32.xlu1 %v4981_v34, %s8730_s21  ;;  %v4983_v50 = vadd.f32 %v4981_v34, %v9275_v22 }
0x35fd   :  { %v6571_v15 = vmul.f32 -1.442695, %v4983_v50 }
0x35ff   :  { %4997 = vperm.xlu1 %8319, %v9632_v28   ;;  %8558 = vpow2.f32 %v6571_v15 }
0x3603   :  { %8321 = vset.pattern.permute.xlu1 %v8739_v10 }
0x3609   :  { %v8559_v62 = vpop.eup %8558 }
0x360a   :  { %v4987_v58 = vadd.f32 1.0, %v8559_v62 }
0x360c   :  { %8560 = vrcp.f32 %v4987_v58 }
0x3616   :  { %v8561_v36 = vpop.eup %8560 }
0x366d   :  { %v4991_v43 = vpop.permute.xlu1 %4990 }
0x366e   :  { %v4993_v24 = vmul.f32 %v8561_v36, %v4991_v43 }
0x3670   :  { %v4994_v35 = vadd.f32 %v4993_v24, %v9278_v23 }
0x3672   :  { %8562 = vtanh.f32 %v4994_v35 }
0x367c   :  { %v8563_v44 = vpop.eup %8562 }
0x367d   :  { %v5001_v4 = vrot.slane %v8563_v44, 4 }
0x367e   :  { %v4998_v52 = vpop.permute.xlu1 %4997 }
0x367f   :  { %v5003_v45 = vmul.f32 %v5001_v4, %v4998_v52  ;;  %v5109_v52 = vpop.permute.xlu0 %5108 }
0x3681   :  { %v5009_v31 = vadd.f32 %v5008_v25, %v5003_v45 }
0x3683   :  { %7556 = vmatmul.mubr.msk.f32.vlgmr.msra.gmra.mrb[50].mxu0 %vm66_vm0, %v5009_v31 }
0x3684   :  { %7587 = vmatprep.mubr.msk.f32.mxu0 %vm2684_vm6, %v9256_v38 }
0x3756   :  { %v5079_v34 = vpop.f32.mrb[50].mxu0 }
0x3757   :  { %v5080_v50 = vadd.f32 %v9692_v53, %v5079_v34  ;;  %v7557_v15 = vpop.f32.mrb[51].mxu0 }
0x3759   :  { %v5084_v62 = vrot.slane %v5080_v50, 2 }
0x375b   :  { %5093 = vrot.lane.b32.xlu1 %v5084_v62, %s8730_s21  ;;  %v5086_v2 = vadd.f32 %v5084_v62, %v9275_v22 }
0x375d   :  { %v6573_v58 = vmul.f32 -1.442695, %v5086_v2 }
0x375f   :  { %5100 = vperm.xlu1 %8321, %v9632_v28   ;;  %8564 = vpow2.f32 %v6573_v58  ;;  %v5111_v28 = vmul.f32 %v5109_v52, %v5009_v31 }
0x3763   :  { %8328 = vset.pattern.permute.xlu1 %v8732_v18 }
0x3769   :  { %v8565_v36 = vpop.eup %8564 }
0x376a   :  { %v5090_v43 = vadd.f32 1.0, %v8565_v36 }
0x376c   :  { %8566 = vrcp.f32 %v5090_v43 }
0x3776   :  { %v8567_v24 = vpop.eup %8566 }
0x37cd   :  { %v5094_v38 = vpop.permute.xlu1 %5093 }
0x37ce   :  { %v5096_v35 = vmul.f32 %v8567_v24, %v5094_v38 }
0x37d0   :  { %v5097_v44 = vadd.f32 %v5096_v35, %v9278_v23 }
0x37d2   :  { %8568 = vtanh.f32 %v5097_v44 }
0x37dc   :  { %v8569_v4 = vpop.eup %8568 }
0x37dd   :  { %v5104_v3 = vrot.slane %v8569_v4, 6 }
0x37de   :  { %v5101_v25 = vpop.permute.xlu1 %5100 }
0x37df   :  { %v5106_v45 = vmul.f32 %v5104_v3, %v5101_v25 }
0x37e1   :  { %v5112_v18 = vadd.f32 %v5111_v28, %v5106_v45  ;;  %v8625_v28 = vld [vmem:[#allocation7 + $0x210] ss:$0 sm:$0xff] }
0x37e3   :  { %5114 = vrot.lane.b32.xlu1 %v5112_v18, %s8731_s22 }
0x37e7   :  { %5117 = vrot.lane.b32.xlu1 %v9237_v41, %s8731_s22 }
0x3855   :  { %v5115_v34 = vpop.permute.xlu1 %5114 }
0x3856   :  { %v5120_v50 = vsel %vm66_vm0, %v9563_v33, %v5115_v34 }
0x3859   :  { %v9747_v15 = vpop.permute.xlu1 %5117 }
0x385a   :  { %v5121_v62 = vsel %vm2850_vm8, %v5120_v50, %v9747_v15 }
0x385b   :  { %7583 = vmatmul.mubr.msk.f32.vlgmr.msra.gmra.mrb[46].mxu1 %vm2853_vm9, %v5121_v62 }
0x385c   :  { %8171 = vmatpush3.bf16.msra.mxu1 %v9346_v48 }
0x385d   :  { %8173 = vmatprep.subr.bf16.mxu1 %v9348_v14 }
0x3860   :  { %8175 = vmatpush3.bf16.msra.mxu1 %v9348_v14 }
0x3861   :  { %8176 = vmatprep.subr.bf16.mxu1 %v8726_v19 }
0x392e   :  { %v5191_v31 = vpop.f32.mrb[46].mxu1 }
0x392f   :  { %v5192_v2 = vadd.f32 %v9560_v27, %v5191_v31  ;;  %v7584_v58 = vpop.f32.mrb[47].mxu1 }
0x3931   :  { %v9757_v33 = vmax.f32 %v5192_v2, 0.0 }
0x3933   :  { %7585 = vmatprep.subr.msk.mxu0 %vm2431_vm2, %v9757_v33 }
0x3934   :  { %7586 = vmatpush3.msk.msra.mxu0 %vm2431_vm2, %v9757_v33 }
0x3935   :  { %7588 = vmatmul.mubr.msk.f32.vlgmr.msra.gmra.mrb[52].mxu0 %vm2684_vm6, %v9265_v12  ;;  %8137 = vmatprep.subr.bf16.mxu0 %v9284_v0 }
0x3936   :  { %8139 = vmatpush3.bf16.msra.mxu0 %v9284_v0 }
0x3937   :  { %8141 = vmatprep.subr.bf16.mxu0 %v9286_v42 }
0x393a   :  { %8143 = vmatpush3.bf16.msra.mxu0 %v9286_v42 }
0x393b   :  { %8145 = vmatprep.subr.bf16.mxu0 %v9293_v56 }
0x393e   :  { %8147 = vmatpush3.bf16.msra.mxu0 %v9293_v56 }
0x393f   :  { %8149 = vmatprep.subr.bf16.mxu0 %v9297_v54 }
0x3942   :  { %8151 = vmatpush3.bf16.msra.mxu0 %v9297_v54 }
0x3943   :  { %8153 = vmatprep.subr.bf16.mxu0 %v9301_v5 }
0x3946   :  { %8155 = vmatpush3.bf16.msra.mxu0 %v9301_v5 }
0x3947   :  { %8157 = vmatprep.subr.bf16.mxu0 %v9305_v61 }
0x394a   :  { %8159 = vmatpush3.bf16.msra.mxu0 %v9305_v61 }
0x394b   :  { %8161 = vmatprep.subr.bf16.mxu0 %v9310_v49 }
0x394e   :  { %8163 = vmatpush3.bf16.msra.mxu0 %v9310_v49 }
0x394f   :  { %8165 = vmatprep.subr.bf16.mxu0 %v9314_v39 }
0x3952   :  { %8167 = vmatpush3.bf16.msra.mxu0 %v9314_v39 }
0x3953   :  { %8185 = vmatprep.subr.bf16.mxu0 %v8726_v19 }
0x3a08   :  { %v7589_v12 = vpop.f32.mrb[52].mxu0 }
0x3a09   :  { %5278 = vrot.lane.b32.xlu1 %v7589_v12, %s8731_s22  ;;  %v5265_v0 = vpop.f32.mrb[53].mxu0 }
0x3a0a   :  { %5276 = vrot.lane.b32.xlu0 %v5265_v0, %s8731_s22 }
0x3a7b   :  { %v5279_v42 = vpop.permute.xlu1 %5278 }
0x3a7c   :  { %v5285_v56 = vsub.f32 %v9234_v17, %v5279_v42  ;;  %v5277_v54 = vpop.permute.xlu0 %5276  ;;  %v5283_v39 = vmul.f32 %v5279_v42, %v9234_v17 }
0x3a7d   :  { %v5284_v5 = vsub.f32 %v9228_v37, %v5277_v54  ;;  %v5282_v14 = vmul.f32 %v5277_v54, %v9228_v37 }
0x3a7e   :  { %v5287_v61 = vand.u32 2147483647, %v5285_v56  ;;  %v5297_v27 = vsel %vm66_vm0, %v9326_v7, %v5283_v39  ;;  %v8624_v7 = vld [vmem:[#allocation7 + $0x1e8] ss:$0 sm:$0xff]  ;;  %v9960_v39 = vmov 1  }
0x3a7f   :  { %v5286_v49 = vand.u32 2147483647, %v5284_v5  ;;  %v5296_v36 = vsel %vm66_vm0, %v9328_v32, %v5282_v14  ;;  %v5299_v44 = vsel %vm2850_vm8, %v5297_v27, %v9332_v60  ;;  %v9961_v14 = vmov 2  }
0x3a80   :  { %v5298_v35 = vsel %vm2850_vm8, %v5296_v36, %v9334_v9 }
0x3a81   :  { %v8323_v48 = vpack.i.bf16 %v5287_v61, %v5286_v49 }
0x3a83   :  { %8324 = vrot.lane.b32.xlu0 %v8323_v48, %s8729_s2 }
0x3af5   :  { %v8325_v43 = vpop.permute.xlu0 %8324 }
0x3af6   :  { %v8327_v24 = vunpack.i.h.bf16 %v8325_v43  ;;  %v8326_v38 = vunpack.i.l.bf16 %v8325_v43 }
0x3af8   :  { %v5300_v4 = vsel %vm2853_vm9, %v5298_v35, %v8326_v38  ;;  %v5301_v17 = vsel %vm2853_vm9, %v5299_v44, %v8327_v24 }
0x3af9   :  { %7622 = vmatprep.mubr.f32.mxu0 %v5300_v4 }
0x3afa   :  { %7623 = vmatmul.mubr.f32.vlgmr.msra.gmra.mrb[54].mxu0 %v5301_v17 }
0x3afb   :  { %8187 = vmatpush3.bf16.msra.mxu0 %v9359_v26  ;;  %7662 = vmatprep.mubr.msk.f32.mxu0 %vm8727_vm1, %v8728_v29 }
0x3afc   :  { %8188 = vmatprep.subr.bf16.mxu0 %v8726_v19 }
0x3aff   :  { %8190 = vmatpush3.bf16.msra.mxu0 %v9364_v63 }
0x3b00   :  { %8197 = vmatprep.subr.bf16.mxu0 %v8726_v19 }
0x3bcd   :  { %v7624_v37 = vpop.f32.mrb[54].mxu0 }
0x3bce   :  { %v5374_v32 = vadd.f32 %v8624_v7, %v7624_v37  ;;  %v5368_v60 = vpop.f32.mrb[55].mxu0 }
0x3bcf   :  { %v5369_v9 = vadd.f32 %v8624_v7, %v5368_v60 }
0x3bd1   :  { %8570 = vtanh.f32 %v5369_v9 }
0x3bd2   :  { %8572 = vtanh.f32 %v5374_v32 }
0x3bdb   :  { %v8571_v3 = vpop.eup %8570 }
0x3bdc   :  { %v8573_v52 = vpop.eup %8572  ;;  %7633 = vmatprep.mubr.msk.f32.mxu1 %vm66_vm0, %v8571_v3 }
0x3bdd   :  { %7634 = vmatmul.mubr.msk.f32.vlgmr.msra.gmra.mrb[48].mxu1 %vm66_vm0, %v8573_v52 }
0x3bde   :  { %7640 = vmatprep.mubr.msk.f32.mxu1 %vm8727_vm1, %v8728_v29 }
0x3cb0   :  { %v7635_v25 = vpop.f32.mrb[48].mxu1 }
0x3cb1   :  { %v5457_v45 = vadd.f32 %v8625_v28, %v7635_v25  ;;  %v5451_v18 = vpop.f32.mrb[49].mxu1 }
0x3cb2   :  { %v5452_v34 = vadd.f32 %v8625_v28, %v5451_v18 }
0x3cb3   :  { %5467 = vperm.xlu0 %8329, %v5457_v45  }
0x3cb4   :  { %5462 = vperm.xlu1 %8328, %v5452_v34  }
0x3d32   :  { %v5468_v50 = vpop.permute.xlu0 %5467 }
0x3d33   :  { %v5471_v62 = vmul.f32 %v9390_v16, %v5468_v50  ;;  %v5463_v31 = vpop.permute.xlu1 %5462 }
0x3d34   :  { %v5470_v2 = vmul.f32 %v9393_v21, %v5463_v31 }
0x3d36   :  { %v8177_v58 = vpack.c.bf16 %v5471_v62, %v5470_v2 }
0x3d38   :  { %8178 = vmatpush3.bf16.msra.mxu1 %v8177_v58 }
0x3d39   :  { %8179 = vmatprep.subr.bf16.mxu1 %v8726_v19 }
0x3d3b   :  { %7641 = vmatmul.mubr.msk.f32.vlgmr.msra.gmra.mrb[50].mxu1 %vm3034_vm4, %v9400_v51 }
0x3d3c   :  { %8181 = vmatpush3.bf16.msra.mxu1 %v9359_v26  ;;  %7651 = vmatprep.mubr.msk.f32.mxu1 %vm8727_vm1, %v8728_v29 }
0x3d3d   :  { %8182 = vmatprep.subr.bf16.mxu1 %v8726_v19 }
0x3d40   :  { %8184 = vmatpush3.bf16.msra.mxu1 %v9364_v63 }
0x3d41   :  { %8191 = vmatprep.subr.bf16.mxu1 %v8726_v19 }
0x3e0e   :  { %v5538_v16 = vpop.f32.mrb[50].mxu1 }
0x3e0f   :  { %v5542_v21 = vsel %vm3108_vm5, %v5538_v16, -inf  ;;  %v7642_v12 = vpop.f32.mrb[51].mxu1 }
0x3e10   :  { %5543 = vmax.xlane.f32.xlu1 %v5542_v21 }
0x3e9d   :  { %v5544_v0 = vpop.xlane.xlu1 %5543 }
0x3e9e   :  { %v5545_v42 = vsub.f32 %v5538_v16, %v5544_v0 }
0x3ea0   :  { %v5546_v56 = vmul.f32 1.442695, %v5545_v42 }
0x3ea2   :  { %8574 = vpow2.f32 %v5546_v56 }
0x3eac   :  { %v8575_v51 = vpop.eup %8574 }
0x3ead   :  { %v5548_v54 = vsel %vm3108_vm5, %v8575_v51, 0.0 }
0x3eae   :  { %5549 = vadd.xlane.f32.xlu0 %v5548_v54 }
0x3f3b   :  { %v5550_v5 = vpop.xlane.xlu0 %5549 }
0x3f3c   :  { %8576 = vrcp.f32 %v5550_v5 }
0x3f46   :  { %v8577_v61 = vpop.eup %8576 }
0x3f47   :  { %v9822_v49 = vmul.f32 %v8577_v61, %v8575_v51 }
0x3f49   :  { %5555 = vperm.xlu1 %8328, %v9822_v49   ;;  %v5559_v48 = vsub.f32 1.0, %v9822_v49 }
0x3f4b   :  { %5562 = vperm.xlu0 %8329, %v5559_v48  }
0x3f4d   :  { %8330 = vset.pattern.permute.xlu1 %v9960_v39 }
0x3f4f   :  { %8331 = vset.pattern.permute.xlu0 %v9960_v39 }
0x3f50   :  { %5665 = vperm.xlu0 %8331, %v5559_v48  }
0x3f54   :  { %8333 = vset.pattern.permute.xlu0 %v9961_v14 }
0x3f55   :  { %5768 = vperm.xlu0 %8333, %v5559_v48  }
0x3f59   :  { %8335 = vset.pattern.permute.xlu0 %v8735_v46 }
0x3f5a   :  { %5871 = vperm.xlu0 %8335, %v5559_v48  }
0x3f5e   :  { %8337 = vset.pattern.permute.xlu0 %v8736_v6 }
0x3f5f   :  { %5969 = vperm.xlu0 %8337, %v5559_v48  }
0x3f63   :  { %8339 = vset.pattern.permute.xlu0 %v8737_v47 }
0x3f64   :  { %6072 = vperm.xlu0 %8339, %v5559_v48  }
0x3f68   :  { %8341 = vset.pattern.permute.xlu0 %v8738_v40 }
0x3f69   :  { %6175 = vperm.xlu0 %8341, %v5559_v48  }
0x3f6d   :  { %8343 = vset.pattern.permute.xlu0 %v8739_v10 }
0x3f6e   :  { %6278 = vperm.xlu0 %8343, %v5559_v48  }
0x3fc8   :  { %v5556_v27 = vpop.permute.xlu1 %5555 }
0x3fc9   :  { %v5558_v43 = vmul.f32 %v9439_v13, %v5556_v27 }
0x3fca   :  { %v5563_v36 = vpop.permute.xlu0 %5562 }
0x3fcb   :  { %v5565_v24 = vmul.f32 0.0, %v5563_v36 }
0x3fcd   :  { %v5566_v38 = vadd.f32 %v5565_v24, %v5558_v43 }
0x3fcf   :  { %7652 = vmatmul.mubr.msk.f32.vlgmr.msra.gmra.mrb[52].mxu1 %vm66_vm0, %v5566_v38  ;;  %v5666_v28 = vpop.permute.xlu0 %5665 }
0x3fd0   :  { %8193 = vmatpush3.bf16.msra.mxu1 %v9359_v26  ;;  %7673 = vmatprep.mubr.msk.f32.mxu1 %vm8727_vm1, %v8728_v29  ;;  %v5668_v34 = vmul.f32 %v5666_v28, %v5566_v38 }
0x3fd1   :  { %8194 = vmatprep.subr.bf16.mxu1 %v8726_v19 }
0x3fd4   :  { %8196 = vmatpush3.bf16.msra.mxu1 %v9364_v63  ;;  %v5769_v39 = vpop.permute.xlu0 %5768 }
0x3fd5   :  { %8203 = vmatprep.subr.bf16.mxu1 %v8726_v19 }
0x40a2   :  { %v5636_v35 = vpop.f32.mrb[52].mxu1 }
0x40a3   :  { %v5637_v44 = vadd.f32 %v9692_v53, %v5636_v35  ;;  %v7653_v4 = vpop.f32.mrb[53].mxu1 }
0x40a5   :  { %v5641_v13 = vrot.slane %v5637_v44, 6 }
0x40a7   :  { %5650 = vrot.lane.b32.xlu1 %v5641_v13, %s8730_s21  ;;  %v5643_v17 = vadd.f32 %v5641_v13, %v9431_v11 }
0x40a9   :  { %v6582_v37 = vmul.f32 -1.442695, %v5643_v17 }
0x40ab   :  { %5657 = vperm.xlu1 %8330, %v9822_v49   ;;  %8578 = vpow2.f32 %v6582_v37 }
0x40af   :  { %8332 = vset.pattern.permute.xlu1 %v9961_v14 }
0x40b5   :  { %v8579_v7 = vpop.eup %8578 }
0x40b6   :  { %v5647_v32 = vadd.f32 1.0, %v8579_v7 }
0x40b8   :  { %8580 = vrcp.f32 %v5647_v32 }
0x40c2   :  { %v8581_v60 = vpop.eup %8580 }
0x4119   :  { %v5651_v9 = vpop.permute.xlu1 %5650 }
0x411a   :  { %v5653_v3 = vmul.f32 %v8581_v60, %v5651_v9 }
0x411c   :  { %v5654_v52 = vadd.f32 %v5653_v3, %v9436_v8 }
0x411e   :  { %8582 = vtanh.f32 %v5654_v52  ;;  %v5872_v52 = vpop.permute.xlu0 %5871 }
0x4128   :  { %v8583_v25 = vpop.eup %8582 }
0x4129   :  { %v5661_v45 = vrot.slane %v8583_v25, 2 }
0x412a   :  { %v5658_v18 = vpop.permute.xlu1 %5657 }
0x412b   :  { %v5663_v50 = vmul.f32 %v5661_v45, %v5658_v18 }
0x412d   :  { %v5669_v62 = vadd.f32 %v5668_v34, %v5663_v50 }
0x412f   :  { %7663 = vmatmul.mubr.msk.f32.vlgmr.msra.gmra.mrb[56].mxu0 %vm66_vm0, %v5669_v62  ;;  %v5771_v27 = vmul.f32 %v5769_v39, %v5669_v62 }
0x4130   :  { %8199 = vmatpush3.bf16.msra.mxu0 %v9359_v26  ;;  %7684 = vmatprep.mubr.msk.f32.mxu0 %vm8727_vm1, %v8728_v29 }
0x4131   :  { %8200 = vmatprep.subr.bf16.mxu0 %v8726_v19 }
0x4134   :  { %8202 = vmatpush3.bf16.msra.mxu0 %v9364_v63 }
0x4135   :  { %8209 = vmatprep.subr.bf16.mxu0 %v8726_v19 }
0x4202   :  { %v5739_v31 = vpop.f32.mrb[56].mxu0 }
0x4203   :  { %v5740_v2 = vadd.f32 %v9692_v53, %v5739_v31  ;;  %v7664_v58 = vpop.f32.mrb[57].mxu0 }
0x4205   :  { %v5744_v16 = vrot.slane %v5740_v2, 4 }
0x4207   :  { %5753 = vrot.lane.b32.xlu1 %v5744_v16, %s8730_s21  ;;  %v5746_v21 = vadd.f32 %v5744_v16, %v9431_v11 }
0x4209   :  { %v6584_v12 = vmul.f32 -1.442695, %v5746_v21 }
0x420b   :  { %5760 = vperm.xlu1 %8332, %v9822_v49   ;;  %8584 = vpow2.f32 %v6584_v12 }
0x420f   :  { %8334 = vset.pattern.permute.xlu1 %v8735_v46 }
0x4215   :  { %v8585_v0 = vpop.eup %8584 }
0x4216   :  { %v5750_v42 = vadd.f32 1.0, %v8585_v0  ;;  %v5970_v0 = vpop.permute.xlu0 %5969 }
0x4218   :  { %8586 = vrcp.f32 %v5750_v42 }
0x4222   :  { %v8587_v56 = vpop.eup %8586 }
0x4279   :  { %v5754_v51 = vpop.permute.xlu1 %5753 }
0x427a   :  { %v5756_v54 = vmul.f32 %v8587_v56, %v5754_v51 }
0x427c   :  { %v5757_v5 = vadd.f32 %v5756_v54, %v9436_v8 }
0x427e   :  { %8588 = vtanh.f32 %v5757_v5 }
0x4288   :  { %v8589_v61 = vpop.eup %8588 }
0x4289   :  { %v5764_v48 = vrot.slane %v8589_v61, 4 }
0x428a   :  { %v5761_v14 = vpop.permute.xlu1 %5760 }
0x428b   :  { %v5766_v36 = vmul.f32 %v5764_v48, %v5761_v14 }
0x428d   :  { %v5772_v46 = vadd.f32 %v5771_v27, %v5766_v36 }
0x428f   :  { %7674 = vmatmul.mubr.msk.f32.vlgmr.msra.gmra.mrb[54].mxu1 %vm66_vm0, %v5772_v46  ;;  %v5874_v28 = vmul.f32 %v5872_v52, %v5772_v46 }
0x4290   :  { %8205 = vmatpush3.bf16.msra.mxu1 %v9359_v26  ;;  %7695 = vmatprep.mubr.msk.f32.mxu1 %vm8727_vm1, %v8728_v29 }
0x4291   :  { %8206 = vmatprep.subr.bf16.mxu1 %v8726_v19 }
0x4294   :  { %8208 = vmatpush3.bf16.msra.mxu1 %v9364_v63 }
0x4295   :  { %8215 = vmatprep.subr.bf16.mxu1 %v8726_v19 }
0x4362   :  { %v5842_v43 = vpop.f32.mrb[54].mxu1 }
0x4363   :  { %v5843_v24 = vadd.f32 %v9692_v53, %v5842_v43  ;;  %v7675_v38 = vpop.f32.mrb[55].mxu1 }
0x4365   :  { %v5847_v35 = vrot.slane %v5843_v24, 2 }
0x4367   :  { %5856 = vrot.lane.b32.xlu1 %v5847_v35, %s8730_s21  ;;  %v5849_v44 = vadd.f32 %v5847_v35, %v9431_v11  ;;  %v6073_v35 = vpop.permute.xlu0 %6072 }
0x4369   :  { %v6586_v4 = vmul.f32 -1.442695, %v5849_v44 }
0x436b   :  { %5863 = vperm.xlu1 %8334, %v9822_v49   ;;  %8590 = vpow2.f32 %v6586_v4 }
0x436f   :  { %8336 = vset.pattern.permute.xlu1 %v8736_v6 }
0x4375   :  { %v8591_v13 = vpop.eup %8590 }
0x4376   :  { %v5853_v17 = vadd.f32 1.0, %v8591_v13 }
0x4378   :  { %8592 = vrcp.f32 %v5853_v17 }
0x4382   :  { %v8593_v37 = vpop.eup %8592 }
0x43d9   :  { %v5857_v7 = vpop.permute.xlu1 %5856 }
0x43da   :  { %v5859_v32 = vmul.f32 %v8593_v37, %v5857_v7 }
0x43dc   :  { %v5860_v60 = vadd.f32 %v5859_v32, %v9436_v8 }
0x43de   :  { %8594 = vtanh.f32 %v5860_v60 }
0x43e8   :  { %v8595_v9 = vpop.eup %8594 }
0x43e9   :  { %v5867_v3 = vrot.slane %v8595_v9, 6 }
0x43ea   :  { %v5864_v25 = vpop.permute.xlu1 %5863 }
0x43eb   :  { %v5869_v45 = vmul.f32 %v5867_v3, %v5864_v25  ;;  %v6176_v25 = vpop.permute.xlu0 %6175 }
0x43ed   :  { %v5875_v6 = vadd.f32 %v5874_v28, %v5869_v45 }
0x43ef   :  { %7685 = vmatmul.mubr.msk.f32.vlgmr.msra.gmra.mrb[58].mxu0 %vm66_vm0, %v5875_v6  ;;  %v5972_v56 = vmul.f32 %v5970_v0, %v5875_v6  ;;  %v6367_v0 = vld [vmem:[#allocation7 + $0x290] sm:$0xff] }
0x43f0   :  { %8211 = vmatpush3.bf16.msra.mxu0 %v9359_v26  ;;  %7706 = vmatprep.mubr.msk.f32.mxu0 %vm8727_vm1, %v8728_v29 }
0x43f1   :  { %8212 = vmatprep.subr.bf16.mxu0 %v8726_v19 }
0x43f4   :  { %8214 = vmatpush3.bf16.msra.mxu0 %v9364_v63 }
0x43f5   :  { %8221 = vmatprep.subr.bf16.mxu0 %v8726_v19 }
0x44c2   :  { %v5945_v11 = vpop.f32.mrb[58].mxu0 }
0x44c3   :  { %v5946_v8 = vadd.f32 %v9692_v53, %v5945_v11  ;;  %v7686_v18 = vpop.f32.mrb[59].mxu0 }
0x44c5   :  { %5957 = vrot.lane.b32.xlu1 %v5946_v8, %s8730_s21  ;;  %v5949_v34 = vadd.f32 %v5946_v8, %v9275_v22 }
0x44c7   :  { %v6588_v50 = vmul.f32 -1.442695, %v5949_v34 }
0x44c9   :  { %5964 = vperm.xlu1 %8336, %v9822_v49   ;;  %8596 = vpow2.f32 %v6588_v50 }
0x44cd   :  { %8338 = vset.pattern.permute.xlu1 %v8737_v47 }
0x44d3   :  { %v8597_v62 = vpop.eup %8596 }
0x44d4   :  { %v5953_v31 = vadd.f32 1.0, %v8597_v62 }
0x44d6   :  { %8598 = vrcp.f32 %v5953_v31 }
0x44e0   :  { %v8599_v2 = vpop.eup %8598 }
0x4537   :  { %v5958_v58 = vpop.permute.xlu1 %5957 }
0x4538   :  { %v5960_v16 = vmul.f32 %v8599_v2, %v5958_v58 }
0x453a   :  { %v5961_v21 = vadd.f32 %v5960_v16, %v9278_v23 }
0x453c   :  { %8600 = vtanh.f32 %v5961_v21 }
0x4546   :  { %v8601_v12 = vpop.eup %8600 }
0x4548   :  { %v5965_v42 = vpop.permute.xlu1 %5964 }
0x4549   :  { %v5967_v51 = vmul.f32 %v8601_v12, %v5965_v42  ;;  %v6366_v12 = vld [vmem:[#allocation7 + $0x288] sm:$0xff] }
0x454b   :  { %v5973_v54 = vadd.f32 %v5972_v56, %v5967_v51  ;;  %v6368_v56 = vld [vmem:[#allocation7 + $0x298] sm:$0xff] }
0x454d   :  { %7696 = vmatmul.mubr.msk.f32.vlgmr.msra.gmra.mrb[56].mxu1 %vm66_vm0, %v5973_v54  ;;  %v6075_v4 = vmul.f32 %v6073_v35, %v5973_v54  ;;  %v6370_v54 = vld [vmem:[#allocation7 + $0x2a8] sm:$0xff] }
0x454e   :  { %8217 = vmatpush3.bf16.msra.mxu1 %v9359_v26  ;;  %7717 = vmatprep.mubr.msk.f32.mxu1 %vm8727_vm1, %v8728_v29 }
0x454f   :  { %8218 = vmatprep.subr.bf16.mxu1 %v8726_v19 }
0x4552   :  { %8220 = vmatpush3.bf16.msra.mxu1 %v9364_v63 }
0x4553   :  { %8239 = vmatprep.subr.bf16.mxu1 %v8726_v19 }
0x4620   :  { %v6043_v47 = vpop.f32.mrb[56].mxu1 }
0x4621   :  { %v6044_v5 = vadd.f32 %v9692_v53, %v6043_v47  ;;  %v7697_v61 = vpop.f32.mrb[57].mxu1 }
0x4623   :  { %v6048_v48 = vrot.slane %v6044_v5, 6  ;;  %v6279_v5 = vpop.permute.xlu0 %6278 }
0x4625   :  { %6057 = vrot.lane.b32.xlu1 %v6048_v48, %s8730_s21  ;;  %v6050_v26 = vadd.f32 %v6048_v48, %v9275_v22 }
0x4627   :  { %v6590_v39 = vmul.f32 -1.442695, %v6050_v26 }
0x4629   :  { %6064 = vperm.xlu1 %8338, %v9822_v49   ;;  %8602 = vpow2.f32 %v6590_v39 }
0x462d   :  { %8340 = vset.pattern.permute.xlu1 %v8738_v40 }
0x4633   :  { %v8603_v14 = vpop.eup %8602 }
0x4634   :  { %v6054_v27 = vadd.f32 1.0, %v8603_v14 }
0x4636   :  { %8604 = vrcp.f32 %v6054_v27 }
0x4640   :  { %v8605_v63 = vpop.eup %8604 }
0x4697   :  { %v6058_v36 = vpop.permute.xlu1 %6057 }
0x4698   :  { %v6060_v46 = vmul.f32 %v8605_v63, %v6058_v36  ;;  %v6371_v36 = vld [vmem:[#allocation7 + $0x2b0] sm:$0xff] }
0x469a   :  { %v6061_v43 = vadd.f32 %v6060_v46, %v9278_v23  ;;  %v6372_v46 = vld [vmem:[#allocation7 + $0x2b8] sm:$0xff] }
0x469c   :  { %8606 = vtanh.f32 %v6061_v43  ;;  %v8249_v43 = vpack.c.bf16 %v6372_v46, %v6371_v36 }
0x46a6   :  { %v8607_v24 = vpop.eup %8606 }
0x46a7   :  { %v6068_v38 = vrot.slane %v8607_v24, 2 }
0x46a8   :  { %v6065_v44 = vpop.permute.xlu1 %6064 }
0x46a9   :  { %v6070_v13 = vmul.f32 %v6068_v38, %v6065_v44  ;;  %v8626_v38 = vld [vmem:[#allocation7 + $0x278] ss:$0 sm:$0xff] }
0x46ab   :  { %v6076_v40 = vadd.f32 %v6075_v4, %v6070_v13 }
0x46ad   :  { %7707 = vmatmul.mubr.msk.f32.vlgmr.msra.gmra.mrb[60].mxu0 %vm66_vm0, %v6076_v40  ;;  %v6178_v45 = vmul.f32 %v6176_v25, %v6076_v40 }
0x46ae   :  { %8223 = vmatpush3.bf16.msra.mxu0 %v9526_v55  ;;  %7744 = vmatprep.mubr.msk.f32.mxu0 %vm8727_vm1, %v8728_v29 }
0x46af   :  { %8224 = vmatprep.subr.bf16.mxu0 %v8726_v19 }
0x46b2   :  { %8226 = vmatpush3.bf16.msra.mxu0 %v9529_v1 }
0x46b3   :  { %8227 = vmatprep.subr.bf16.mxu0 %v8726_v19 }
0x46b6   :  { %8229 = vmatpush3.bf16.msra.mxu0 %v9533_v20 }
0x46b7   :  { %8230 = vmatprep.subr.bf16.mxu0 %v8726_v19 }
0x46ba   :  { %8232 = vmatpush3.bf16.msra.mxu0 %v9537_v57 }
0x46bb   :  { %8233 = vmatprep.subr.bf16.mxu0 %v8726_v19 }
0x46be   :  { %8235 = vmatpush3.bf16.msra.mxu0 %v9541_v30 }
0x46bf   :  { %8236 = vmatprep.subr.bf16.mxu0 %v8726_v19 }
0x46c2   :  { %8238 = vmatpush3.bf16.msra.mxu0 %v9548_v59 }
0x4780   :  { %v6146_v55 = vpop.f32.mrb[60].mxu0 }
0x4781   :  { %v6147_v17 = vadd.f32 %v9692_v53, %v6146_v55  ;;  %v7708_v1 = vpop.f32.mrb[61].mxu0 }
0x4783   :  { %v6151_v37 = vrot.slane %v6147_v17, 4 }
0x4785   :  { %6160 = vrot.lane.b32.xlu1 %v6151_v37, %s8730_s21  ;;  %v6153_v20 = vadd.f32 %v6151_v37, %v9275_v22 }
0x4787   :  { %v6592_v57 = vmul.f32 -1.442695, %v6153_v20 }
0x4789   :  { %6167 = vperm.xlu1 %8340, %v9822_v49   ;;  %8608 = vpow2.f32 %v6592_v57 }
0x478d   :  { %8342 = vset.pattern.permute.xlu1 %v8739_v10 }
0x4793   :  { %v8609_v30 = vpop.eup %8608 }
0x4794   :  { %v6157_v7 = vadd.f32 1.0, %v8609_v30 }
0x4796   :  { %8610 = vrcp.f32 %v6157_v7 }
0x47a0   :  { %v8611_v32 = vpop.eup %8610 }
0x47f7   :  { %v6161_v59 = vpop.permute.xlu1 %6160 }
0x47f8   :  { %v6163_v60 = vmul.f32 %v8611_v32, %v6161_v59 }
0x47fa   :  { %v6164_v9 = vadd.f32 %v6163_v60, %v9278_v23 }
0x47fc   :  { %8612 = vtanh.f32 %v6164_v9 }
0x4806   :  { %v8613_v3 = vpop.eup %8612 }
0x4807   :  { %v6171_v52 = vrot.slane %v8613_v3, 4 }
0x4808   :  { %v6168_v28 = vpop.permute.xlu1 %6167 }
0x4809   :  { %v6173_v6 = vmul.f32 %v6171_v52, %v6168_v28 }
0x480b   :  { %v6179_v10 = vadd.f32 %v6178_v45, %v6173_v6 }
0x480d   :  { %7718 = vmatmul.mubr.msk.f32.vlgmr.msra.gmra.mrb[58].mxu1 %vm66_vm0, %v6179_v10  ;;  %v6281_v48 = vmul.f32 %v6279_v5, %v6179_v10 }
0x480e   :  { %7763 = vmatprep.mubr.msk.f32.mxu1 %vm8727_vm1, %v8728_v29  ;;  %vm6451_vm1 = vcmask 9216  }
0x48e0   :  { %v6249_v11 = vpop.f32.mrb[58].mxu1 }
0x48e1   :  { %v6250_v8 = vadd.f32 %v9692_v53, %v6249_v11  ;;  %v7719_v18 = vpop.f32.mrb[59].mxu1  ;;  %v6365_v53 = vld [vmem:[#allocation7 + $0x280] sm:$0xff] }
0x48e2   :  { %v8240_v42 = vpack.c.bf16 %v6366_v12, %v6365_v53 }
0x48e3   :  { %v6254_v34 = vrot.slane %v6250_v8, 2 }
0x48e4   :  { %8241 = vmatpush3.bf16.msra.mxu1 %v8240_v42 }
0x48e5   :  { %6263 = vrot.lane.b32.xlu1 %v6254_v34, %s8730_s21  ;;  %v6256_v50 = vadd.f32 %v6254_v34, %v9275_v22  ;;  %8242 = vmatprep.subr.bf16.mxu1 %v8726_v19  ;;  %v6369_v22 = vld [vmem:[#allocation7 + $0x2a0] sm:$0xff] }
0x48e7   :  { %v6594_v62 = vmul.f32 -1.442695, %v6256_v50 }
0x48e9   :  { %6270 = vperm.xlu1 %8342, %v9822_v49   ;;  %8614 = vpow2.f32 %v6594_v62  ;;  %v8243_v49 = vpack.c.bf16 %v6368_v56, %v6367_v0 }
0x48eb   :  { %8244 = vmatpush3.bf16.msra.mxu1 %v8243_v49 }
0x48ec   :  { %8245 = vmatprep.subr.bf16.mxu1 %v8726_v19 }
0x48f3   :  { %v8615_v31 = vpop.eup %8614 }
0x48f4   :  { %v6260_v2 = vadd.f32 1.0, %v8615_v31 }
0x48f6   :  { %8616 = vrcp.f32 %v6260_v2 }
0x4900   :  { %v8617_v58 = vpop.eup %8616 }
0x4957   :  { %v6264_v16 = vpop.permute.xlu1 %6263 }
0x4958   :  { %v6266_v21 = vmul.f32 %v8617_v58, %v6264_v16 }
0x495a   :  { %v6267_v29 = vadd.f32 %v6266_v21, %v9278_v23  ;;  %v8246_v23 = vpack.c.bf16 %v6370_v54, %v6369_v22 }
0x495c   :  { %8618 = vtanh.f32 %v6267_v29  ;;  %8247 = vmatpush3.bf16.msra.mxu1 %v8246_v23 }
0x495d   :  { %8248 = vmatprep.subr.bf16.mxu1 %v8726_v19 }
0x4960   :  { %8250 = vmatpush3.bf16.msra.mxu1 %v8249_v43 }
0x4966   :  { %v8619_v51 = vpop.eup %8618 }
0x4967   :  { %v6274_v47 = vrot.slane %v8619_v51, 6 }
0x4968   :  { %v6271_v61 = vpop.permute.xlu1 %6270 }
0x4969   :  { %v6276_v26 = vmul.f32 %v6274_v47, %v6271_v61 }
0x496b   :  { %v6282_v39 = vadd.f32 %v6281_v48, %v6276_v26 }
0x496d   :  { %6284 = vrot.lane.b32.xlu1 %v6282_v39, %s8731_s22 }
0x49df   :  { %v6285_v14 = vpop.permute.xlu1 %6284 }
0x49e0   :  { %v6287_v27 = vsel %vm66_vm0, %v9757_v33, %v6285_v14  ;;  %v6596_v33 = vld [vmem:[#allocation7 + $0x2c0] ss:$0 sm:$0xff] }
0x49e1   :  { %v6288_v63 = vsel %vm2850_vm8, %v6287_v27, %v9747_v15 }
0x49e2   :  { %7745 = vmatmul.mubr.msk.f32.vlgmr.msra.gmra.mrb[62].mxu0 %vm2853_vm9, %v6288_v63 }
0x4ab5   :  { %v6358_v24 = vpop.f32.mrb[62].mxu0 }
0x4ab6   :  { %v6359_v35 = vadd.f32 %v8626_v38, %v6358_v24  ;;  %v7746_v44 = vpop.f32.mrb[63].mxu0 }
0x4ab8   :  { %v6362_v4 = vmax.f32 %v6359_v35, 0.0 }
0x4aba   :  { %v6364_v19 = vsel %vm66_vm0, %v6362_v4, %v9237_v41 }
0x4abb   :  { %7764 = vmatmul.mubr.msk.f32.vlgmr.msra.gmra.mrb[60].mxu1 %vm2850_vm8, %v6364_v19 }
0x4b8e   :  { %v6447_v15 = vpop.f32.mrb[60].mxu1 }
0x4b8f   :  { %v6448_v13 = vadd.f32 %v6596_v33, %v6447_v15  ;;  %v7765_v40 = vpop.f32.mrb[61].mxu1 }
0x4b91   :  { %6452 = vst.msk [vmem:[#allocation8] sm:$0x3] %vm6451_vm1, %v6448_v13 }
0x4b92   :  { %8704 = shalt.err (!%p8701_p0)
}
0x4b93   :  { %s8705_s28 = scalar_lea.hbm %s9955_s3, 32 }
0x4b94   :  { %p8706_p1 = scmp.ne.s32.totalorder %s9955_s3, %s8705_s28  ;;  %p8709_p2 = scmp.lt.u32.totalorder %s8705_s28, %s9955_s3 }
0x4b96   :  { %p8711_p3 = pnand %p8709_p2, %p8706_p1 }
0x4b98   :  { %8714 = shalt.err (!%p8711_p3)
}
0x4b99   :  { %6462 = dma.vmem_to_hbm [thread:$0]  %s6460_s24, 32, %s9955_s3, [#allocation4]  }
0x4b9a   :  { %8719 = dma.done.wait [#allocation4], 32  }
0x4b9b   :  { %8720 = vsyncadd [#allocation4], 4294967264 }
0x4b9c   :  { %6466 = vsyncpa [#allocation3], 1 }
0x4b9d   :  { %6467 = vsyncpa [#allocation6], 1 }
0x4b9e   :  { %6468 = vsyncpa [#allocation4], 1 }

</bundles_post_ra>
